<compile_context>
chip_gen: v7x
topology: tpu7x:2x2x1
jax: 0.10.0
libtpu: 0.0.40
codegen_flags: <defaults>
</compile_context>

<pallas_src>
import jax
import jax.numpy as jnp
from jax import lax
from jax.experimental import pallas as pl
from jax.experimental.pallas import tpu as pltpu

# Static architecture (28x28 single-channel input is forced by fc2 in_features = 7560).
H = W = 28
C1_OUT, K1 = 10, 5          # conv1: 1 -> 10, kernel 5, pad 1
C2_OUT, K2 = 210, 4         # conv2: 10 -> 210, kernel 4, pad 1
S1 = H + 2 - K1 + 1         # 26 (conv1 spatial)
S1P = S1 // 2               # 13 (after pool)
S2 = S1P + 2 - K2 + 1       # 12 (conv2 spatial)
S2P = S2 // 2               # 6  (after pool)
N1 = S1P * S1P              # 169 pooled positions after conv1
N2 = S2P * S2P              # 36 pooled positions after conv2
KF1 = K1 * K1               # 25 conv1 patch features (C_in = 1)
KF2 = C1_OUT * K2 * K2      # 160 conv2 patch features
FLAT = C2_OUT * N2          # 7560 (PyTorch flatten size)
NUM_CLASSES = 10
NC_PAD = 128                # lane-dense padded class dim
C2_PAD = 256                # lane-dense padded conv2 channel dim
FLAT_PAD = N2 * C2_PAD      # 9216 (multiple of 128) padded fc input features


def _round_up(v, m):
    return (v + m - 1) // m * m


def _pick_tile(total, align, cap):
    """Largest `align`-aligned tile <= cap, preferring >= 2 grid steps when possible."""
    t = min(cap, _round_up(total, align))
    if total > align:
        t = min(t, _round_up((total + 1) // 2, align))
    return max(align, t)


# ---------------------------------------------------------------------------
# Kernels
# ---------------------------------------------------------------------------
def _conv1_kernel(p_ref, w_ref, b_ref, o_ref):
    # p: (4, 25, TN) bf16 phase-split patches; w: (10, 25) bf16; b: (10, 1) f32
    w = w_ref[...]
    z0 = jnp.dot(w, p_ref[0], preferred_element_type=jnp.float32)
    z1 = jnp.dot(w, p_ref[1], preferred_element_type=jnp.float32)
    z2 = jnp.dot(w, p_ref[2], preferred_element_type=jnp.float32)
    z3 = jnp.dot(w, p_ref[3], preferred_element_type=jnp.float32)
    m = jnp.maximum(jnp.maximum(z0, z1), jnp.maximum(z2, z3)) + b_ref[...]
    o_ref[...] = jnp.maximum(m, 0.0).astype(o_ref.dtype)     # (10, TN) bf16


def _conv2_kernel(p_ref, w_ref, b_ref, o_ref):
    # p: (4, TM, 160) bf16 phase-split patches; w: (160, 256) bf16; b: (1, 256) f32
    w = w_ref[...]
    z0 = jnp.dot(p_ref[0], w, preferred_element_type=jnp.float32)
    z1 = jnp.dot(p_ref[1], w, preferred_element_type=jnp.float32)
    z2 = jnp.dot(p_ref[2], w, preferred_element_type=jnp.float32)
    z3 = jnp.dot(p_ref[3], w, preferred_element_type=jnp.float32)
    m = jnp.maximum(jnp.maximum(z0, z1), jnp.maximum(z2, z3)) + b_ref[...]
    o_ref[...] = jnp.maximum(m, 0.0).astype(o_ref.dtype)     # (TM, 256) bf16


def _fc_kernel(x_ref, w_ref, o_ref):
    # x: (TM, 9216) bf16, w: (9216, 128) bf16 -> lane-dense (TM, 128) f32 output
    o_ref[...] = jnp.dot(x_ref[...], w_ref[...], preferred_element_type=jnp.float32)


# ---------------------------------------------------------------------------
# Wrapper-side patch extraction (pure JAX data movement)
# ---------------------------------------------------------------------------
def _conv1_patches(x2d):
    # x2d: (B, 28, 28) -> (4, 25, B*169) bf16;  phase = 2*py+px, col = 169*b + 13*y + x
    B = x2d.shape[0]
    xb = x2d.astype(jnp.bfloat16)
    xp = jnp.pad(xb, ((0, 0), (1, 1), (1, 1)))                      # pad=1 -> (B,30,30)
    taps = [xp[:, i:i + S1, j:j + S1] for i in range(K1) for j in range(K1)]
    t = jnp.stack(taps, axis=0)                                     # (25, B, 26, 26)
    t = t.reshape(KF1, B, S1P, 2, S1P, 2)                           # (k, B, y, py, x, px)
    t = t.transpose(3, 5, 0, 1, 2, 4)                               # (py, px, k, B, y, x)
    return t.reshape(4, KF1, B * N1)


def _conv2_patches(a1):
    # a1: (B, 10, 13, 13) bf16 -> (4, B*36, 160) bf16; row = 36*b + 6*Y + X, feat = 16*c+k
    B = a1.shape[0]
    ap = jnp.pad(a1, ((0, 0), (0, 0), (1, 1), (1, 1)))              # pad=1 -> (B,10,15,15)
    taps = [ap[:, :, i:i + S2, j:j + S2] for i in range(K2) for j in range(K2)]
    t = jnp.stack(taps, axis=2)                                     # (B, 10, 16, 12, 12)
    t = t.reshape(B, C1_OUT, K2 * K2, S2P, 2, S2P, 2)               # (B, c, k, Y, qy, X, qx)
    t = t.transpose(4, 6, 0, 3, 5, 1, 2)                            # (qy, qx, B, Y, X, c, k)
    return t.reshape(4, B * N2, KF2)


# ---------------------------------------------------------------------------
# Forward pass
# ---------------------------------------------------------------------------
@jax.jit
def cnn_forward(x, w1m, b1c, w2m_pad, b2r_pad, wfc_pad):
    B = x.shape[0]
    x2d = x.reshape(B, H, W).astype(jnp.float32)

    # ---- conv1 + maxpool + relu: batch folded into the matmul free (lane) dim ----
    p1 = _conv1_patches(x2d)                                 # (4, 25, B*169) bf16
    total1 = B * N1
    tn1 = _pick_tile(total1, 256, 1024)
    np1 = _round_up(total1, tn1)
    p1 = jnp.pad(p1, ((0, 0), (0, 0), (0, np1 - total1)))
    a1 = pl.pallas_call(
        _conv1_kernel,
        out_shape=jax.ShapeDtypeStruct((C1_OUT, np1), jnp.bfloat16),
        grid=(np1 // tn1,),
        in_specs=[
            pl.BlockSpec((4, KF1, tn1), lambda i: (0, 0, i)),
            pl.BlockSpec((C1_OUT, KF1), lambda i: (0, 0)),   # resident weights
            pl.BlockSpec((C1_OUT, 1), lambda i: (0, 0)),     # resident bias
        ],
        out_specs=pl.BlockSpec((C1_OUT, tn1), lambda i: (0, i)),
        compiler_params=pltpu.CompilerParams(dimension_semantics=("parallel",)),
    )(p1, w1m, b1c)
    # (10, B*169) -> (B, 10, 13, 13) for conv2 patch extraction (tiny bf16 transpose)
    a1 = a1[:, :total1].reshape(C1_OUT, B, S1P, S1P).transpose(1, 0, 2, 3)

    # ---- conv2 + maxpool + relu: batch folded into the matmul row dim ----
    p2 = _conv2_patches(a1)                                  # (4, B*36, 160) bf16
    total2 = B * N2
    tm2 = _pick_tile(total2, 64, 512)
    np2 = _round_up(total2, tm2)
    p2 = jnp.pad(p2, ((0, 0), (0, np2 - total2), (0, 0)))
    a2 = pl.pallas_call(
        _conv2_kernel,
        out_shape=jax.ShapeDtypeStruct((np2, C2_PAD), jnp.bfloat16),
        grid=(np2 // tm2,),
        in_specs=[
            pl.BlockSpec((4, tm2, KF2), lambda i: (0, i, 0)),
            pl.BlockSpec((KF2, C2_PAD), lambda i: (0, 0)),   # resident weights (chan-padded)
            pl.BlockSpec((1, C2_PAD), lambda i: (0, 0)),     # resident bias
        ],
        out_specs=pl.BlockSpec((tm2, C2_PAD), lambda i: (i, 0)),
        compiler_params=pltpu.CompilerParams(dimension_semantics=("parallel",)),
    )(p2, w2m_pad, b2r_pad)

    # ---- fc2: batch-tiled matmul; padded channels line up with zero-padded fc weight ----
    xflat = a2[:total2].reshape(B, FLAT_PAD)                 # (B, 9216) bf16, idx = 256*t + c
    tm = min(256, _round_up(B, 8))
    bp = _round_up(B, tm)
    xflat = jnp.pad(xflat, ((0, bp - B), (0, 0)))
    out = pl.pallas_call(
        _fc_kernel,
        out_shape=jax.ShapeDtypeStruct((bp, NC_PAD), jnp.float32),
        grid=(bp // tm,),
        in_specs=[
            pl.BlockSpec((tm, FLAT_PAD), lambda i: (i, 0)),
            pl.BlockSpec((FLAT_PAD, NC_PAD), lambda i: (0, 0)),   # resident fc2 weights
        ],
        out_specs=pl.BlockSpec((tm, NC_PAD), lambda i: (i, 0)),
        compiler_params=pltpu.CompilerParams(dimension_semantics=("parallel",)),
    )(xflat, wfc_pad)
    return out[:B, :NUM_CLASSES]


# ---------------------------------------------------------------------------
# Parameters
# ---------------------------------------------------------------------------
def init_params(key, num_classes=NUM_CLASSES):
    """Deterministic init mirroring PyTorch Conv2d/Linear default uniform bounds."""
    k1, k2, k3, k4, k5 = jax.random.split(key, 5)

    def u(k, shape, fan_in):
        b = 1.0 / (fan_in ** 0.5)
        return jax.random.uniform(k, shape, jnp.float32, -b, b)

    w1 = u(k1, (C1_OUT, 1, K1, K1), K1 * K1)
    b1 = u(k2, (C1_OUT,), K1 * K1)
    w2 = u(k3, (C2_OUT, C1_OUT, K2, K2), KF2)
    b2 = u(k4, (C2_OUT,), KF2)
    wfc = u(k5, (num_classes, FLAT), FLAT)
    # Round matmul weights to bf16-representable values (identical in kernel & reference).
    rt = lambda a: a.astype(jnp.bfloat16).astype(jnp.float32)
    return rt(w1), b1, rt(w2), b2, rt(wfc)


def pack_params(w1, b1, w2, b2, wfc):
    """Reformat / pad weights for the kernels (done once, outside the hot path)."""
    w1m = w1.reshape(C1_OUT, KF1).astype(jnp.bfloat16)                   # (10, 25)
    b1c = b1.reshape(C1_OUT, 1)                                          # (10, 1)  f32
    w2m = w2.reshape(C2_OUT, KF2).T                                      # (160, 210)
    w2m_pad = jnp.pad(w2m, ((0, 0), (0, C2_PAD - C2_OUT))).astype(jnp.bfloat16)  # (160,256)
    b2r_pad = jnp.pad(b2.reshape(1, C2_OUT), ((0, 0), (0, C2_PAD - C2_OUT)))     # (1,256) f32
    # fc2 weight: PyTorch flat index = 36*c + t ; kernel xflat index = 256*t + c.
    # Permute + zero-pad channels 210 -> 256 and classes 10 -> 128 (lane-dense output).
    nc = wfc.shape[0]
    w3 = wfc.reshape(nc, C2_OUT, N2).transpose(2, 1, 0)                  # (36, 210, nc)
    w3 = jnp.pad(w3, ((0, 0), (0, C2_PAD - C2_OUT), (0, NC_PAD - nc)))   # (36, 256, 128)
    wfc_pad = w3.reshape(FLAT_PAD, NC_PAD).astype(jnp.bfloat16)          # (9216, 128)
    return w1m, b1c, w2m_pad, b2r_pad, wfc_pad


# ---------------------------------------------------------------------------
# Pure-JAX reference (independent of the im2col path), f32 highest precision.
# Tolerance 5e-2 is driven by bf16 inputs/activations/weights in the kernel path.
# ---------------------------------------------------------------------------
def reference_forward(x, w1, b1, w2, b2, wfc):
    hp = lax.Precision.HIGHEST
    y = lax.conv_general_dilated(x, w1, (1, 1), ((1, 1), (1, 1)),
                                 dimension_numbers=("NCHW", "OIHW", "NCHW"), precision=hp)
    y = y + b1[None, :, None, None]
    y = lax.reduce_window(y, -jnp.inf, lax.max, (1, 1, 2, 2), (1, 1, 2, 2), "VALID")
    y = jnp.maximum(y, 0.0)
    y = lax.conv_general_dilated(y, w2, (1, 1), ((1, 1), (1, 1)),
                                 dimension_numbers=("NCHW", "OIHW", "NCHW"), precision=hp)
    y = y + b2[None, :, None, None]
    y = lax.reduce_window(y, -jnp.inf, lax.max, (1, 1, 2, 2), (1, 1, 2, 2), "VALID")
    y = jnp.maximum(y, 0.0)
    y = y.reshape(y.shape[0], -1)
    return jnp.dot(y, wfc.T, precision=hp)


if __name__ == "__main__":
    key = jax.random.PRNGKey(0)
    kx, kp = jax.random.split(key)

    B = 2
    x = jax.random.normal(kx, (B, 1, H, W), dtype=jnp.float32)

    w1, b1, w2, b2, wfc = init_params(kp)
    packed = pack_params(w1, b1, w2, b2, wfc)

    out = cnn_forward(x, *packed)
    out = jax.block_until_ready(out)

    ref = reference_forward(x, w1, b1, w2, b2, wfc)
    assert out.shape == (B, NUM_CLASSES)
    assert jnp.allclose(out, ref, atol=5e-2, rtol=5e-2), float(jnp.max(jnp.abs(out - ref)))

    print("KERNEL_OK")
</pallas_src>

<mosaic_0001>
module attributes {stable_mosaic.version = 11 : i64} {
  func.func @_conv1_kernel(%arg0: i32, %arg1: memref<4x25x256xbf16, #tpu.memory_space<vmem>>, %arg2: memref<10x25xbf16, #tpu.memory_space<vmem>>, %arg3: memref<10x1xf32, #tpu.memory_space<vmem>>, %arg4: memref<10x256xbf16, #tpu.memory_space<vmem>>) attributes {dimension_semantics = [#tpu.dimension_semantics<parallel>], iteration_bounds = array<i64: 2>, scalar_prefetch = 0 : i64, scratch_operands = 0 : i64, tpu.core_type = #tpu.core_type<tc>, window_params = [{transform_indices = @transform_0, window_bounds = array<i64: 4, 25, 256>}, {pipeline_mode = #tpu.pipeline_mode<synchronous>, transform_indices = @transform_1, window_bounds = array<i64: 10, 25>}, {pipeline_mode = #tpu.pipeline_mode<synchronous>, transform_indices = @transform_2, window_bounds = array<i64: 10, 1>}, {transform_indices = @transform_3, window_bounds = array<i64: 10, 256>}]} {
    %c0 = arith.constant 0 : index
    %c0_0 = arith.constant 0 : index
    %0 = vector.load %arg2[%c0, %c0_0] : memref<10x25xbf16, #tpu.memory_space<vmem>>, vector<10x25xbf16>
    %c0_1 = arith.constant 0 : index
    %c0_2 = arith.constant 0 : index
    %c0_3 = arith.constant 0 : index
    %1 = vector.load %arg1[%c0_1, %c0_2, %c0_3] : memref<4x25x256xbf16, #tpu.memory_space<vmem>>, vector<1x25x256xbf16>
    %2 = vector.shape_cast %1 : vector<1x25x256xbf16> to vector<25x256xbf16>
    %cst = arith.constant dense<0.000000e+00> : vector<10x256xf32>
    %3 = tpu.matmul %0, %2, %cst {dimension_numbers = #tpu.dot_dimension_numbers<[1], [0], [0], [1], [0, 0, 1, 1], [], []>} : vector<10x25xbf16>, vector<25x256xbf16>, vector<10x256xf32> -> vector<10x256xf32>
    %c1 = arith.constant 1 : index
    %c0_4 = arith.constant 0 : index
    %c0_5 = arith.constant 0 : index
    %4 = vector.load %arg1[%c1, %c0_4, %c0_5] : memref<4x25x256xbf16, #tpu.memory_space<vmem>>, vector<1x25x256xbf16>
    %5 = vector.shape_cast %4 : vector<1x25x256xbf16> to vector<25x256xbf16>
    %cst_6 = arith.constant dense<0.000000e+00> : vector<10x256xf32>
    %6 = tpu.matmul %0, %5, %cst_6 {dimension_numbers = #tpu.dot_dimension_numbers<[1], [0], [0], [1], [0, 0, 1, 1], [], []>} : vector<10x25xbf16>, vector<25x256xbf16>, vector<10x256xf32> -> vector<10x256xf32>
    %c2 = arith.constant 2 : index
    %c0_7 = arith.constant 0 : index
    %c0_8 = arith.constant 0 : index
    %7 = vector.load %arg1[%c2, %c0_7, %c0_8] : memref<4x25x256xbf16, #tpu.memory_space<vmem>>, vector<1x25x256xbf16>
    %8 = vector.shape_cast %7 : vector<1x25x256xbf16> to vector<25x256xbf16>
    %cst_9 = arith.constant dense<0.000000e+00> : vector<10x256xf32>
    %9 = tpu.matmul %0, %8, %cst_9 {dimension_numbers = #tpu.dot_dimension_numbers<[1], [0], [0], [1], [0, 0, 1, 1], [], []>} : vector<10x25xbf16>, vector<25x256xbf16>, vector<10x256xf32> -> vector<10x256xf32>
    %c3 = arith.constant 3 : index
    %c0_10 = arith.constant 0 : index
    %c0_11 = arith.constant 0 : index
    %10 = vector.load %arg1[%c3, %c0_10, %c0_11] : memref<4x25x256xbf16, #tpu.memory_space<vmem>>, vector<1x25x256xbf16>
    %11 = vector.shape_cast %10 : vector<1x25x256xbf16> to vector<25x256xbf16>
    %cst_12 = arith.constant dense<0.000000e+00> : vector<10x256xf32>
    %12 = tpu.matmul %0, %11, %cst_12 {dimension_numbers = #tpu.dot_dimension_numbers<[1], [0], [0], [1], [0, 0, 1, 1], [], []>} : vector<10x25xbf16>, vector<25x256xbf16>, vector<10x256xf32> -> vector<10x256xf32>
    %13 = arith.maximumf %3, %6 : vector<10x256xf32>
    %14 = arith.maximumf %9, %12 : vector<10x256xf32>
    %15 = arith.maximumf %13, %14 : vector<10x256xf32>
    %c0_13 = arith.constant 0 : index
    %c0_14 = arith.constant 0 : index
    %16 = vector.load %arg3[%c0_13, %c0_14] : memref<10x1xf32, #tpu.memory_space<vmem>>, vector<10x1xf32>
    %17 = vector.broadcast %16 : vector<10x1xf32> to vector<10x256xf32>
    %18 = arith.addf %15, %17 : vector<10x256xf32>
    %cst_15 = arith.constant 0.000000e+00 : f32
    %19 = vector.broadcast %cst_15 : f32 to vector<10x256xf32>
    %20 = arith.maximumf %18, %19 : vector<10x256xf32>
    %21 = arith.truncf %20 : vector<10x256xf32> to vector<10x256xbf16>
    %c0_16 = arith.constant 0 : index
    %c0_17 = arith.constant 0 : index
    %22 = vector.load %arg4[%c0_16, %c0_17] : memref<10x256xbf16, #tpu.memory_space<vmem>>, vector<10x256xbf16>
    tpu.vector_store %arg4[%c0_16, %c0_17], %21 {strides = array<i32>} : memref<10x256xbf16, #tpu.memory_space<vmem>>, vector<10x256xbf16>,
    return
  }
  func.func @transform_0(%arg0: i32) -> (i32, i32, i32) {
    %c0_i32 = arith.constant 0 : i32
    %c0_i32_0 = arith.constant 0 : i32
    %c0_i32_1 = arith.constant 0 : i32
    return %c0_i32, %c0_i32_0, %arg0 : i32, i32, i32
  }
  func.func @transform_1(%arg0: i32) -> (i32, i32) {
    %c0_i32 = arith.constant 0 : i32
    %c0_i32_0 = arith.constant 0 : i32
    %c0_i32_1 = arith.constant 0 : i32
    return %c0_i32, %c0_i32_0 : i32, i32
  }
  func.func @transform_2(%arg0: i32) -> (i32, i32) {
    %c0_i32 = arith.constant 0 : i32
    %c0_i32_0 = arith.constant 0 : i32
    %c0_i32_1 = arith.constant 0 : i32
    return %c0_i32, %c0_i32_0 : i32, i32
  }
  func.func @transform_3(%arg0: i32) -> (i32, i32) {
    %c0_i32 = arith.constant 0 : i32
    %c0_i32_0 = arith.constant 0 : i32
    return %c0_i32, %arg0 : i32, i32
  }
}

module attributes {stable_mosaic.version = 11 : i64} {
  func.func @_conv2_kernel(%arg0: i32, %arg1: memref<4x64x160xbf16, #tpu.memory_space<vmem>>, %arg2: memref<160x256xbf16, #tpu.memory_space<vmem>>, %arg3: memref<1x256xf32, #tpu.memory_space<vmem>>, %arg4: memref<64x256xbf16, #tpu.memory_space<vmem>>) attributes {dimension_semantics = [#tpu.dimension_semantics<parallel>], iteration_bounds = array<i64: 2>, scalar_prefetch = 0 : i64, scratch_operands = 0 : i64, tpu.core_type = #tpu.core_type<tc>, window_params = [{transform_indices = @transform_0, window_bounds = array<i64: 4, 64, 160>}, {pipeline_mode = #tpu.pipeline_mode<synchronous>, transform_indices = @transform_1, window_bounds = array<i64: 160, 256>}, {pipeline_mode = #tpu.pipeline_mode<synchronous>, transform_indices = @transform_2, window_bounds = array<i64: 1, 256>}, {transform_indices = @transform_3, window_bounds = array<i64: 64, 256>}]} {
    %c0 = arith.constant 0 : index
    %c0_0 = arith.constant 0 : index
    %0 = vector.load %arg2[%c0, %c0_0] : memref<160x256xbf16, #tpu.memory_space<vmem>>, vector<160x256xbf16>
    %c0_1 = arith.constant 0 : index
    %c0_2 = arith.constant 0 : index
    %c0_3 = arith.constant 0 : index
    %1 = vector.load %arg1[%c0_1, %c0_2, %c0_3] : memref<4x64x160xbf16, #tpu.memory_space<vmem>>, vector<1x64x160xbf16>
    %2 = vector.shape_cast %1 : vector<1x64x160xbf16> to vector<64x160xbf16>
    %cst = arith.constant dense<0.000000e+00> : vector<64x256xf32>
    %3 = tpu.matmul %2, %0, %cst {dimension_numbers = #tpu.dot_dimension_numbers<[1], [0], [0], [1], [0, 0, 1, 1], [], []>} : vector<64x160xbf16>, vector<160x256xbf16>, vector<64x256xf32> -> vector<64x256xf32>
    %c1 = arith.constant 1 : index
    %c0_4 = arith.constant 0 : index
    %c0_5 = arith.constant 0 : index
    %4 = vector.load %arg1[%c1, %c0_4, %c0_5] : memref<4x64x160xbf16, #tpu.memory_space<vmem>>, vector<1x64x160xbf16>
    %5 = vector.shape_cast %4 : vector<1x64x160xbf16> to vector<64x160xbf16>
    %cst_6 = arith.constant dense<0.000000e+00> : vector<64x256xf32>
    %6 = tpu.matmul %5, %0, %cst_6 {dimension_numbers = #tpu.dot_dimension_numbers<[1], [0], [0], [1], [0, 0, 1, 1], [], []>} : vector<64x160xbf16>, vector<160x256xbf16>, vector<64x256xf32> -> vector<64x256xf32>
    %c2 = arith.constant 2 : index
    %c0_7 = arith.constant 0 : index
    %c0_8 = arith.constant 0 : index
    %7 = vector.load %arg1[%c2, %c0_7, %c0_8] : memref<4x64x160xbf16, #tpu.memory_space<vmem>>, vector<1x64x160xbf16>
    %8 = vector.shape_cast %7 : vector<1x64x160xbf16> to vector<64x160xbf16>
    %cst_9 = arith.constant dense<0.000000e+00> : vector<64x256xf32>
    %9 = tpu.matmul %8, %0, %cst_9 {dimension_numbers = #tpu.dot_dimension_numbers<[1], [0], [0], [1], [0, 0, 1, 1], [], []>} : vector<64x160xbf16>, vector<160x256xbf16>, vector<64x256xf32> -> vector<64x256xf32>
    %c3 = arith.constant 3 : index
    %c0_10 = arith.constant 0 : index
    %c0_11 = arith.constant 0 : index
    %10 = vector.load %arg1[%c3, %c0_10, %c0_11] : memref<4x64x160xbf16, #tpu.memory_space<vmem>>, vector<1x64x160xbf16>
    %11 = vector.shape_cast %10 : vector<1x64x160xbf16> to vector<64x160xbf16>
    %cst_12 = arith.constant dense<0.000000e+00> : vector<64x256xf32>
    %12 = tpu.matmul %11, %0, %cst_12 {dimension_numbers = #tpu.dot_dimension_numbers<[1], [0], [0], [1], [0, 0, 1, 1], [], []>} : vector<64x160xbf16>, vector<160x256xbf16>, vector<64x256xf32> -> vector<64x256xf32>
    %13 = arith.maximumf %3, %6 : vector<64x256xf32>
    %14 = arith.maximumf %9, %12 : vector<64x256xf32>
    %15 = arith.maximumf %13, %14 : vector<64x256xf32>
    %c0_13 = arith.constant 0 : index
    %c0_14 = arith.constant 0 : index
    %16 = vector.load %arg3[%c0_13, %c0_14] : memref<1x256xf32, #tpu.memory_space<vmem>>, vector<1x256xf32>
    %17 = vector.broadcast %16 : vector<1x256xf32> to vector<64x256xf32>
    %18 = arith.addf %15, %17 : vector<64x256xf32>
    %cst_15 = arith.constant 0.000000e+00 : f32
    %19 = vector.broadcast %cst_15 : f32 to vector<64x256xf32>
    %20 = arith.maximumf %18, %19 : vector<64x256xf32>
    %21 = arith.truncf %20 : vector<64x256xf32> to vector<64x256xbf16>
    %c0_16 = arith.constant 0 : index
    %c0_17 = arith.constant 0 : index
    %22 = vector.load %arg4[%c0_16, %c0_17] : memref<64x256xbf16, #tpu.memory_space<vmem>>, vector<64x256xbf16>
    tpu.vector_store %arg4[%c0_16, %c0_17], %21 {strides = array<i32>} : memref<64x256xbf16, #tpu.memory_space<vmem>>, vector<64x256xbf16>,
    return
  }
  func.func @transform_0(%arg0: i32) -> (i32, i32, i32) {
    %c0_i32 = arith.constant 0 : i32
    %c0_i32_0 = arith.constant 0 : i32
    %c0_i32_1 = arith.constant 0 : i32
    return %c0_i32, %arg0, %c0_i32_0 : i32, i32, i32
  }
  func.func @transform_1(%arg0: i32) -> (i32, i32) {
    %c0_i32 = arith.constant 0 : i32
    %c0_i32_0 = arith.constant 0 : i32
    %c0_i32_1 = arith.constant 0 : i32
    return %c0_i32, %c0_i32_0 : i32, i32
  }
  func.func @transform_2(%arg0: i32) -> (i32, i32) {
    %c0_i32 = arith.constant 0 : i32
    %c0_i32_0 = arith.constant 0 : i32
    %c0_i32_1 = arith.constant 0 : i32
    return %c0_i32, %c0_i32_0 : i32, i32
  }
  func.func @transform_3(%arg0: i32) -> (i32, i32) {
    %c0_i32 = arith.constant 0 : i32
    %c0_i32_0 = arith.constant 0 : i32
    return %arg0, %c0_i32 : i32, i32
  }
}

module attributes {stable_mosaic.version = 11 : i64} {
  func.func @_fc_kernel(%arg0: i32, %arg1: memref<8x9216xbf16, #tpu.memory_space<vmem>>, %arg2: memref<9216x128xbf16, #tpu.memory_space<vmem>>, %arg3: memref<8x128xf32, #tpu.memory_space<vmem>>) attributes {dimension_semantics = [#tpu.dimension_semantics<parallel>], iteration_bounds = array<i64: 1>, scalar_prefetch = 0 : i64, scratch_operands = 0 : i64, tpu.core_type = #tpu.core_type<tc>, window_params = [{transform_indices = @transform_0, window_bounds = array<i64: 8, 9216>}, {pipeline_mode = #tpu.pipeline_mode<synchronous>, transform_indices = @transform_1, window_bounds = array<i64: 9216, 128>}, {transform_indices = @transform_2, window_bounds = array<i64: 8, 128>}]} {
    %c0 = arith.constant 0 : index
    %c0_0 = arith.constant 0 : index
    %0 = vector.load %arg1[%c0, %c0_0] : memref<8x9216xbf16, #tpu.memory_space<vmem>>, vector<8x9216xbf16>
    %c0_1 = arith.constant 0 : index
    %c0_2 = arith.constant 0 : index
    %1 = vector.load %arg2[%c0_1, %c0_2] : memref<9216x128xbf16, #tpu.memory_space<vmem>>, vector<9216x128xbf16>
    %cst = arith.constant dense<0.000000e+00> : vector<8x128xf32>
    %2 = tpu.matmul %0, %1, %cst {dimension_numbers = #tpu.dot_dimension_numbers<[1], [0], [0], [1], [0, 0, 1, 1], [], []>} : vector<8x9216xbf16>, vector<9216x128xbf16>, vector<8x128xf32> -> vector<8x128xf32>
    %c0_3 = arith.constant 0 : index
    %c0_4 = arith.constant 0 : index
    %3 = vector.load %arg3[%c0_3, %c0_4] : memref<8x128xf32, #tpu.memory_space<vmem>>, vector<8x128xf32>
    tpu.vector_store %arg3[%c0_3, %c0_4], %2 {strides = array<i32>} : memref<8x128xf32, #tpu.memory_space<vmem>>, vector<8x128xf32>,
    return
  }
  func.func @transform_0(%arg0: i32) -> (i32, i32) {
    %c0_i32 = arith.constant 0 : i32
    %c0_i32_0 = arith.constant 0 : i32
    return %arg0, %c0_i32 : i32, i32
  }
  func.func @transform_1(%arg0: i32) -> (i32, i32) {
    %c0_i32 = arith.constant 0 : i32
    %c0_i32_0 = arith.constant 0 : i32
    %c0_i32_1 = arith.constant 0 : i32
    return %c0_i32, %c0_i32_0 : i32, i32
  }
  func.func @transform_2(%arg0: i32) -> (i32, i32) {
    %c0_i32 = arith.constant 0 : i32
    %c0_i32_0 = arith.constant 0 : i32
    return %arg0, %c0_i32 : i32, i32
  }
}

</mosaic_0001>

<bundles_post_ra>
// kernel: cnn_forward.3
= control target key start
LH: loop header
LB: loop body
LE: loop exit
PB: predicated region body
PF: predicated region fallthrough
CT: control target
= control target key end

     0   :  { %s865_s12 = smov 0   ;;  %s867_s13 = smov 0   ;;  %s978_s0 = inlined_call_operand.vmem [shape: bf16[4,25,512], index: 0, kind: input, shape index: {}]   ;;  %s979_s1 = inlined_call_operand.vmem [shape: bf16[10,25], index: 1, kind: input, shape index: {}]   ;;  %s980_s2 = inlined_call_operand.vmem [shape: f32[10,1], index: 2, kind: input, shape index: {}]   ;;  %s981_s3 = inlined_call_operand.vmem [shape: bf16[10,512], index: 3, kind: output, shape index: {}]  }
   0x1   :  { %s869_s14 = smov 0  }
   0x2 LB: > { %s713_s15 = sadd.s32 4294967295, %s841_s14   ;;  %s882_s16 = sadd.s32 1, %s841_s14   ;;  %s841_s14 = sphi %s869_s14, %s985_s14   ;;  %s837_s13 = sphi %s867_s13, %s984_s13   ;;  %s833_s12 = sphi %s865_s12, %s983_s12  }
   0x3   : > { %s17_s17 = ssub.s32 %s841_s14, %s882_s16  ;;  %s20_s18 = sadd.s32 1, %s837_s13 }
   0x4   : > { %p18_p0 = scmp.eq.s32.totalorder %s17_s17, 0  ;;  %p27_p1 = scmp.ne.s32.totalorder %s837_s13, %s833_s12 }
   0x5   : > { %p28_p2 = scmp.eq.s32.totalorder %s841_s14, 0  ;;  %p99_p3 = scmp.eq.s32.totalorder %s713_s15, 1 }
   0x6   : > { %s893_s19 = scalar_select %p18_p0, %s837_s13, %s20_s18  }
   0x7   : > { %p29_p4 = por %p28_p2, %p27_p1  ;;  %p895_p5 = por %p99_p3, %p27_p1 }
   0x8   : > { %p716_p6 = scmp.ge.s32.totalorder %s841_s14, 2 }
   0xa   : > { %127 = sbr.rel (%p716_p6) target bundleno = 29 (0x1d), region = 24 }
  0x11   : > { %130 = sbr.rel (!%p29_p4) target bundleno = 29 (0x1d), region = 28  ;;  %s132_s21 = sand.u32 (%p29_p4), 1, %s837_s13  }
  0x12   : > { %s763_s22 = sshll.u32 (%p29_p4), %s841_s14, 3  ;;  %s717_s23 = sshll.u32 (%p29_p4), %s132_s21, 7 }
  0x13   : > { %s905_s26 = scalar_lea.vmem (%p29_p4), %s978_s0, %s763_s22  ;;  %s134_s27 = scalar_lea.vmem (%p29_p4), [#allocation2], %s717_s23 }
  0x14   : > { %v195_v0 = vld [vmem:[%s905_s26] sm:$0xff] (%p29_p4)  ;;  %v197_v1 = vld [vmem:[%s905_s26 + $0x10] sm:$0xff] (%p29_p4) }
  0x15   : > { %v199_v2 = vld [vmem:[%s905_s26 + $0x20] sm:$0xff] (%p29_p4)  ;;  %196 = vst [vmem:[%s134_s27] sm:$0xff] (%p29_p4), %v195_v0  ;;  %198 = vst [vmem:[%s134_s27 + $0x8] sm:$0xff] (%p29_p4), %v197_v1  ;;  %v201_v3 = vld [vmem:[%s905_s26 + $0x30] sm:$0xff] (%p29_p4) }
  0x16   : > { %200 = vst [vmem:[%s134_s27 + $0x10] sm:$0xff] (%p29_p4), %v199_v2  ;;  %v203_v4 = vld [vmem:[%s905_s26 + $0x40] sm:$0xff] (%p29_p4)  ;;  %v205_v5 = vld [vmem:[%s905_s26 + $0x50] sm:$0xff] (%p29_p4)  ;;  %202 = vst [vmem:[%s134_s27 + $0x18] sm:$0xff] (%p29_p4), %v201_v3 }
  0x17   : > { %204 = vst [vmem:[%s134_s27 + $0x20] sm:$0xff] (%p29_p4), %v203_v4  ;;  %206 = vst [vmem:[%s134_s27 + $0x28] sm:$0xff] (%p29_p4), %v205_v5  ;;  %v207_v6 = vld [vmem:[%s905_s26 + $0x60] sm:$0xff] (%p29_p4)  ;;  %v209_v7 = vld [vmem:[%s905_s26 + $0x70] sm:$0xff] (%p29_p4) }
  0x18   : > { %v211_v8 = vld [vmem:[%s905_s26 + $0x80] sm:$0xff]  ;;  %208 = vst [vmem:[%s134_s27 + $0x30] sm:$0xff] %v207_v6  ;;  %210 = vst [vmem:[%s134_s27 + $0x38] sm:$0xff] %v209_v7  ;;  %v213_v9 = vld [vmem:[%s905_s26 + $0x90] sm:$0xff] }
  0x19   : > { %212 = vst [vmem:[%s134_s27 + $0x40] sm:$0xff] %v211_v8  ;;  %v215_v10 = vld [vmem:[%s905_s26 + $0xa0] sm:$0xff]  ;;  %v217_v11 = vld [vmem:[%s905_s26 + $0xb0] sm:$0xff]  ;;  %214 = vst [vmem:[%s134_s27 + $0x48] sm:$0xff] %v213_v9 }
  0x1a   : > { %216 = vst [vmem:[%s134_s27 + $0x50] sm:$0xff] %v215_v10  ;;  %218 = vst [vmem:[%s134_s27 + $0x58] sm:$0xff] %v217_v11  ;;  %v219_v12 = vld [vmem:[%s905_s26 + $0xc0] sm:$0xff]  ;;  %v221_v13 = vld [vmem:[%s905_s26 + $0xd0] sm:$0xff] }
  0x1b   : > { %v223_v14 = vld [vmem:[%s905_s26 + $0xe0] sm:$0xff]  ;;  %220 = vst [vmem:[%s134_s27 + $0x60] sm:$0xff] %v219_v12  ;;  %222 = vst [vmem:[%s134_s27 + $0x68] sm:$0xff] %v221_v13  ;;  %v225_v15 = vld [vmem:[%s905_s26 + $0xf0] sm:$0xff] }
  0x1c   : > { %224 = vst [vmem:[%s134_s27 + $0x70] sm:$0xff] %v223_v14  ;;  %226 = vst [vmem:[%s134_s27 + $0x78] sm:$0xff] %v225_v15 }
  0x1d PF: > { %p720_p7 = scmp.ge.s32.totalorder %s841_s14, 1  ;;  %p231_p8 = scmp.lt.s32.totalorder %s841_s14, 3 }
  0x1f   : > { %p232_p9 = pnand %p720_p7, %p231_p8 }
  0x20   : > { %s238_s28 = sand.u32 (!%p232_p9), 1, %s833_s12   ;;  %vm296_vm0 = vcmask (!%p232_p9), 1043456   ;;  %v577_v16 = vld [vmem:[%s980_s2] sm:$0xff] (!%p232_p9)  ;;  %v843_v17 = vmov (!%p232_p9), 0   ;;  %vm297_vm1 = vcmask (!%p232_p9), 1044480   ;;  %v844_v18 = vmov (!%p232_p9), 65535  }
  0x21   : > { %235 = sbr.rel (%p232_p9) target bundleno = 287 (0x11f), region = 66  ;;  %s721_s4 = sshll.u32 (!%p232_p9), %s238_s28, 7  ;;  %338 = vmatprep.mubr.bf16.mxu0 (!%p232_p9), %v843_v17  ;;  %410 = vmatprep.mubr.bf16.mxu1 (!%p232_p9), %v843_v17  ;;  %v298_v19 = vsel (!%p232_p9), %vm296_vm0, 4294967295, %v844_v18  ;;  %v806_v31 = vld [vmem:[%s979_s1] sm:$0x1f] (!%p232_p9)   ;;  %vm292_vm2 = vcmask (!%p232_p9), 203776  }
  0x22   : > { %793 = vset.pattern.permute.xlu0 (!%p232_p9), %v843_v17  ;;  %s931_s5 = scalar_lea.vmem (!%p232_p9), [#allocation2], %s721_s4  ;;  %v299_v24 = vsel (!%p232_p9), %vm297_vm1, %v298_v19, 0  ;;  %v578_v46 = vld [vmem:[%s980_s2 + $0x8] sm:$0x3] (!%p232_p9)  ;;  %s722_s10 = sshll.u32 (!%p232_p9), %s238_s28, 4 }
  0x23   : > { %v794_v20 = vld [vmem:[%s931_s5 + $0x4] ss:$8 sps:$4 sm:$0xff] (!%p232_p9)   ;;  %581 = vperm.xlu0 (!%p232_p9), %793, %v577_v16   ;;  %v798_v22 = vld [vmem:[%s931_s5] ss:$8 sps:$4 sm:$0xff] (!%p232_p9)   ;;  %s259_s11 = scalar_lea.vmem (!%p232_p9), [#allocation3], %s722_s10 }
  0x24   : > { %v796_v21 = vld [vmem:[%s931_s5 + $0x24] ss:$8 sps:$4 sm:$0xff] (!%p232_p9)   ;;  %306 = vmatprep.subr.bf16.mxu0 (!%p232_p9), %v794_v20  ;;  %v799_v23 = vld [vmem:[%s931_s5 + $0x20] ss:$8 sps:$4 sm:$0xff] (!%p232_p9)  }
  0x25   : > { %378 = vmatprep.subr.bf16.mxu1 (!%p232_p9), %v796_v21  ;;  %v800_v25 = vld [vmem:[%s931_s5 + $0x14] ss:$8 sps:$4 sm:$0x1f] (!%p232_p9)   ;;  %307 = vmatpush1.bf16.msra.mxu0 (!%p232_p9), %v798_v22  ;;  %v804_v28 = vld [vmem:[%s931_s5 + $0x10] ss:$8 sps:$4 sm:$0x1f] (!%p232_p9)  }
  0x26   : > { %379 = vmatpush1.bf16.msra.mxu1 (!%p232_p9), %v799_v23  ;;  %v802_v26 = vld [vmem:[%s931_s5 + $0x34] ss:$8 sps:$4 sm:$0x1f] (!%p232_p9)   ;;  %v304_v27 = vand.u32 (!%p232_p9), %v800_v25, %v299_v24  ;;  %v805_v29 = vld [vmem:[%s931_s5 + $0x30] ss:$8 sps:$4 sm:$0x1f] (!%p232_p9)   ;;  %v301_v33 = vand.u32 (!%p232_p9), %v804_v28, %v299_v24 }
  0x27   : > { %v376_v30 = vand.u32 (!%p232_p9), %v802_v26, %v299_v24  ;;  %v809_v32 = vld [vmem:[%s931_s5 + $0x44] ss:$8 sps:$4 sm:$0xff] (!%p232_p9)   ;;  %v373_v34 = vand.u32 (!%p232_p9), %v805_v29, %v299_v24  ;;  %v807_v35 = vld [vmem:[%s931_s5 + $0x40] ss:$8 sps:$4 sm:$0xff] (!%p232_p9)   ;;  %586 = vperm.xlu0 (!%p232_p9), %793, %v578_v46  }
  0x28   : > { %308 = vmatprep.subr.bf16.mxu0 %v304_v27  ;;  %v810_v36 = vld [vmem:[%s931_s5 + $0x60] ss:$8 sps:$4 sm:$0xff]   ;;  %v812_v37 = vld [vmem:[%s931_s5 + $0x64] ss:$8 sps:$4 sm:$0xff]   ;;  %s766_s17 = sshll.u32 (%p895_p5), %s713_s15, 3 }
  0x29   : > { %380 = vmatprep.subr.bf16.mxu1 %v376_v30  ;;  %309 = vmatpush1.bf16.msra.mxu0 %v301_v33  ;;  %v813_v38 = vld [vmem:[%s931_s5 + $0x50] ss:$8 sps:$4 sm:$0x1f]   ;;  %v815_v39 = vld [vmem:[%s931_s5 + $0x54] ss:$8 sps:$4 sm:$0x1f]   ;;  %s620_s21 = scalar_lea.vmem (%p895_p5), %s981_s3, %s766_s17 }
  0x2a   : > { %381 = vmatpush1.bf16.msra.mxu1 %v373_v34  ;;  %450 = vmatprep.subr.bf16.mxu0 %v809_v32  ;;  %v816_v40 = vld [vmem:[%s931_s5 + $0x70] ss:$8 sps:$4 sm:$0x1f]   ;;  %v448_v41 = vand.u32 %v815_v39, %v299_v24  ;;  %v818_v42 = vld [vmem:[%s931_s5 + $0x74] ss:$8 sps:$4 sm:$0x1f]   ;;  %v445_v44 = vand.u32 %v813_v38, %v299_v24 }
  0x2b   : > { %522 = vmatprep.subr.bf16.mxu1 %v812_v37  ;;  %v520_v43 = vand.u32 %v818_v42, %v299_v24  ;;  %v517_v45 = vand.u32 %v816_v40, %v299_v24 }
  0x2c   : > { %728 = vmatmul.mubr.msk.bf16.vlgmr.msra.gmra.mrb[0].mxu0 %vm292_vm2, %v806_v31 }
  0x2d   : > { %737 = vmatmul.mubr.msk.bf16.vlgmr.msra.gmra.mrb[0].mxu1 %vm292_vm2, %v806_v31  ;;  %451 = vmatpush1.bf16.msra.mxu0 %v807_v35 }
  0x2e   : > { %523 = vmatpush1.bf16.msra.mxu1 %v810_v36  ;;  %452 = vmatprep.subr.bf16.mxu0 %v448_v41 }
  0x2f   : > { %482 = vmatprep.mubr.bf16.mxu0 %v843_v17  ;;  %524 = vmatprep.subr.bf16.mxu1 %v520_v43 }
  0x30   : > { %554 = vmatprep.mubr.bf16.mxu1 %v843_v17 }
  0x31   : > { %453 = vmatpush1.bf16.msra.mxu0 %v445_v44 }
  0x32   : > { %525 = vmatpush1.bf16.msra.mxu1 %v517_v45 }
  0x34   : > { %746 = vmatmul.mubr.msk.bf16.vlgmr.msra.gmra.mrb[4].mxu0 %vm292_vm2, %v806_v31 }
  0x35   : > { %755 = vmatmul.mubr.msk.bf16.vlgmr.msra.gmra.mrb[4].mxu1 %vm292_vm2, %v806_v31 }
  0xa2   : > { %v582_v59 = vpop.permute.xlu0 %581 }
  0xa6   : > { %v587_v13 = vpop.permute.xlu0 %586 }
  0xff   : > { %v340_v47 = vpop.f32.mrb[0].mxu0 }
 0x100   : > { %v412_v48 = vpop.f32.mrb[0].mxu1  ;;  %v342_v50 = vpop.f32.mrb[1].mxu0 }
 0x101   : > { %v565_v49 = vmax.f32 %v340_v47, %v412_v48  ;;  %v414_v51 = vpop.f32.mrb[1].mxu1  ;;  %v344_v53 = vpop.f32.mrb[2].mxu0 }
 0x102   : > { %v566_v52 = vmax.f32 %v342_v50, %v414_v51  ;;  %v416_v54 = vpop.f32.mrb[2].mxu1  ;;  %v346_v56 = vpop.f32.mrb[3].mxu0 }
 0x103   : > { %v567_v55 = vmax.f32 %v344_v53, %v416_v54  ;;  %v418_v57 = vpop.f32.mrb[3].mxu1 }
 0x104   : > { %v568_v58 = vmax.f32 %v346_v56, %v418_v57 }
 0x107   : > { %v484_v60 = vpop.f32.mrb[4].mxu0 }
 0x108   : > { %v556_v61 = vpop.f32.mrb[4].mxu1  ;;  %v486_v63 = vpop.f32.mrb[5].mxu0 }
 0x109   : > { %v569_v62 = vmax.f32 %v484_v60, %v556_v61  ;;  %v558_v0 = vpop.f32.mrb[5].mxu1  ;;  %v488_v2 = vpop.f32.mrb[6].mxu0 }
 0x10a   : > { %v570_v1 = vmax.f32 %v486_v63, %v558_v0  ;;  %v560_v3 = vpop.f32.mrb[6].mxu1  ;;  %v490_v6 = vpop.f32.mrb[7].mxu0 }
 0x10b   : > { %v573_v4 = vmax.f32 %v565_v49, %v569_v62  ;;  %v571_v5 = vmax.f32 %v488_v2, %v560_v3  ;;  %v562_v7 = vpop.f32.mrb[7].mxu1 }
 0x10c   : > { %v574_v8 = vmax.f32 %v566_v52, %v570_v1  ;;  %v572_v9 = vmax.f32 %v490_v6, %v562_v7 }
 0x10d   : > { %v589_v10 = vadd.f32 %v582_v59, %v573_v4  ;;  %v575_v11 = vmax.f32 %v567_v55, %v571_v5 }
 0x10e   : > { %v590_v12 = vadd.f32 %v582_v59, %v574_v8  ;;  %v576_v14 = vmax.f32 %v568_v58, %v572_v9 }
 0x10f   : > { %v593_v15 = vmax.f32 %v589_v10, 0.0  ;;  %v591_v16 = vadd.f32 %v587_v13, %v575_v11 }
 0x110   : > { %v594_v17 = vmax.f32 %v590_v12, 0.0  ;;  %v592_v18 = vadd.f32 %v587_v13, %v576_v14  ;;  %617 = sbr.rel (!%p895_p5) target bundleno = 287 (0x11f), region = 74 }
 0x111   : > { %v595_v19 = vmax.f32 %v591_v16, 0.0 }
 0x112   : > { %v764_v20 = vpack.c.bf16 %v594_v17, %v593_v15  ;;  %v596_v21 = vmax.f32 %v592_v18, 0.0 }
 0x114   : > { %v765_v22 = vpack.c.bf16 %v596_v21, %v595_v19  ;;  %609 = vst [vmem:[%s259_s11] sm:$0xff] %v764_v20 }
 0x116   : > { %610 = vst [vmem:[%s259_s11 + $0x8] sm:$0x11] %v765_v22 }
 0x11b   : > { %v650_v23 = vld [vmem:[%s259_s11] sm:$0xff] }
 0x11c   : > { %651 = vst [vmem:[%s620_s21] sm:$0xff] %v650_v23 }
 0x11d   : > { %v652_v24 = vld [vmem:[%s259_s11 + $0x8] sm:$0xff] }
 0x11e   : > { %653 = vst [vmem:[%s620_s21 + $0x10] sm:$0xff] %v652_v24 }
 0x11f PF: > { %p10_p10 = scmp.ge.s32.totalorder %s882_s16, 4   ;;  %s983_s12 = smov %s837_s13 }
 0x120   : > { %s984_s13 = smov %s893_s19  ;;  %s985_s14 = smov %s882_s16 }
 0x121   :  { %12 = sbr.rel (!%p10_p10) target bundleno = 2 (0x2), region = 146 }

// kernel: cnn_forward.4
= control target key start
LH: loop header
LB: loop body
LE: loop exit
PB: predicated region body
PF: predicated region fallthrough
CT: control target
= control target key end

     0   :  { %s1460_s12 = smov 0   ;;  %s1462_s13 = smov 0   ;;  %s1987_s0 = inlined_call_operand.vmem [shape: bf16[4,128,160], index: 0, kind: input, shape index: {}]   ;;  %s1988_s1 = inlined_call_operand.vmem [shape: bf16[160,256], index: 1, kind: input, shape index: {}]   ;;  %s1989_s2 = inlined_call_operand.vmem [shape: f32[1,256], index: 2, kind: input, shape index: {}]   ;;  %s1990_s3 = inlined_call_operand.vmem [shape: bf16[128,256], index: 3, kind: output, shape index: {}]  }
   0x1   :  { %s1464_s14 = smov 0  }
   0x2 LB: > { %s1188_s15 = sadd.s32 4294967295, %s1438_s14   ;;  %s1477_s16 = sadd.s32 1, %s1438_s14   ;;  %s1438_s14 = sphi %s1464_s14, %s1994_s14   ;;  %s1434_s13 = sphi %s1462_s13, %s1993_s13   ;;  %s1430_s12 = sphi %s1460_s12, %s1992_s12  }
   0x3   : > { %s17_s17 = ssub.s32 %s1438_s14, %s1477_s16  ;;  %s20_s18 = sadd.s32 1, %s1434_s13 }
   0x4   : > { %p18_p0 = scmp.eq.s32.totalorder %s17_s17, 0  ;;  %p27_p1 = scmp.ne.s32.totalorder %s1434_s13, %s1430_s12 }
   0x5   : > { %p28_p2 = scmp.eq.s32.totalorder %s1438_s14, 0  ;;  %p1191_p4 = scmp.ge.s32.totalorder %s1438_s14, 2 }
   0x6   : > { %s1486_s19 = scalar_select %p18_p0, %s1434_s13, %s20_s18  }
   0x7   : > { %p29_p3 = por %p28_p2, %p27_p1  ;;  %127 = sbr.rel (%p1191_p4) target bundleno = 34 (0x22), region = 24 }
   0xe   : > { %130 = sbr.rel (!%p29_p3) target bundleno = 34 (0x22), region = 28  ;;  %s132_s20 = sand.u32 (%p29_p3), 1, %s1434_s13  }
   0xf   : > { %s1304_s21 = sshll.u32 (%p29_p3), %s1438_s14, 6  ;;  %s1192_s22 = sshll.u32 (%p29_p3), %s132_s20, 8 }
  0x10   : > { %s1494_s25 = scalar_lea.vmem (%p29_p3), %s1987_s0, %s1304_s21  ;;  %s1499_s26 = scalar_lea.vmem (%p29_p3), [#allocation2], %s1192_s22 }
  0x11   : > { %v228_v0 = vld [vmem:[%s1494_s25] sm:$0xff] (%p29_p3)  ;;  %v230_v1 = vld [vmem:[%s1494_s25 + $0x8] sm:$0xff] (%p29_p3)  ;;  %v232_v2 = vld [vmem:[%s1494_s25 + $0x10] sm:$0xff] (%p29_p3) }
  0x12   : > { %229 = vst [vmem:[%s1499_s26] sm:$0xff] (%p29_p3), %v228_v0  ;;  %231 = vst [vmem:[%s1499_s26 + $0x8] sm:$0xff] (%p29_p3), %v230_v1  ;;  %v234_v3 = vld [vmem:[%s1494_s25 + $0x18] sm:$0xff] (%p29_p3)  ;;  %v236_v4 = vld [vmem:[%s1494_s25 + $0x20] sm:$0xff] (%p29_p3) }
  0x13   : > { %233 = vst [vmem:[%s1499_s26 + $0x10] sm:$0xff] (%p29_p3), %v232_v2  ;;  %v238_v5 = vld [vmem:[%s1494_s25 + $0x28] sm:$0xff] (%p29_p3)  ;;  %235 = vst [vmem:[%s1499_s26 + $0x18] sm:$0xff] (%p29_p3), %v234_v3  ;;  %v240_v6 = vld [vmem:[%s1494_s25 + $0x30] sm:$0xff] (%p29_p3) }
  0x14   : > { %237 = vst [vmem:[%s1499_s26 + $0x20] sm:$0xff] (%p29_p3), %v236_v4  ;;  %239 = vst [vmem:[%s1499_s26 + $0x28] sm:$0xff] (%p29_p3), %v238_v5  ;;  %v242_v7 = vld [vmem:[%s1494_s25 + $0x38] sm:$0xff] (%p29_p3)  ;;  %v244_v8 = vld [vmem:[%s1494_s25 + $0x80] sm:$0xff] (%p29_p3) }
  0x15   : > { %241 = vst [vmem:[%s1499_s26 + $0x30] sm:$0xff] %v240_v6  ;;  %243 = vst [vmem:[%s1499_s26 + $0x38] sm:$0xff] %v242_v7  ;;  %v246_v9 = vld [vmem:[%s1494_s25 + $0x88] sm:$0xff]  ;;  %v248_v10 = vld [vmem:[%s1494_s25 + $0x90] sm:$0xff] }
  0x16   : > { %245 = vst [vmem:[%s1499_s26 + $0x40] sm:$0xff] %v244_v8  ;;  %v250_v11 = vld [vmem:[%s1494_s25 + $0x98] sm:$0xff]  ;;  %247 = vst [vmem:[%s1499_s26 + $0x48] sm:$0xff] %v246_v9  ;;  %v252_v12 = vld [vmem:[%s1494_s25 + $0xa0] sm:$0xff] }
  0x17   : > { %249 = vst [vmem:[%s1499_s26 + $0x50] sm:$0xff] %v248_v10  ;;  %251 = vst [vmem:[%s1499_s26 + $0x58] sm:$0xff] %v250_v11  ;;  %v254_v13 = vld [vmem:[%s1494_s25 + $0xa8] sm:$0xff]  ;;  %v256_v14 = vld [vmem:[%s1494_s25 + $0xb0] sm:$0xff] }
  0x18   : > { %253 = vst [vmem:[%s1499_s26 + $0x60] sm:$0xff] %v252_v12  ;;  %255 = vst [vmem:[%s1499_s26 + $0x68] sm:$0xff] %v254_v13  ;;  %v258_v15 = vld [vmem:[%s1494_s25 + $0xb8] sm:$0xff]  ;;  %v260_v16 = vld [vmem:[%s1494_s25 + $0x100] sm:$0xff] }
  0x19   : > { %257 = vst [vmem:[%s1499_s26 + $0x70] sm:$0xff] %v256_v14  ;;  %v262_v17 = vld [vmem:[%s1494_s25 + $0x108] sm:$0xff]  ;;  %259 = vst [vmem:[%s1499_s26 + $0x78] sm:$0xff] %v258_v15  ;;  %v264_v18 = vld [vmem:[%s1494_s25 + $0x110] sm:$0xff] }
  0x1a   : > { %261 = vst [vmem:[%s1499_s26 + $0x80] sm:$0xff] %v260_v16  ;;  %263 = vst [vmem:[%s1499_s26 + $0x88] sm:$0xff] %v262_v17  ;;  %v266_v19 = vld [vmem:[%s1494_s25 + $0x118] sm:$0xff]  ;;  %v268_v20 = vld [vmem:[%s1494_s25 + $0x120] sm:$0xff] }
  0x1b   : > { %265 = vst [vmem:[%s1499_s26 + $0x90] sm:$0xff] %v264_v18  ;;  %267 = vst [vmem:[%s1499_s26 + $0x98] sm:$0xff] %v266_v19  ;;  %v270_v21 = vld [vmem:[%s1494_s25 + $0x128] sm:$0xff]  ;;  %v272_v22 = vld [vmem:[%s1494_s25 + $0x130] sm:$0xff] }
  0x1c   : > { %269 = vst [vmem:[%s1499_s26 + $0xa0] sm:$0xff] %v268_v20  ;;  %v274_v23 = vld [vmem:[%s1494_s25 + $0x138] sm:$0xff]  ;;  %271 = vst [vmem:[%s1499_s26 + $0xa8] sm:$0xff] %v270_v21  ;;  %v276_v24 = vld [vmem:[%s1494_s25 + $0x180] sm:$0xff] }
  0x1d   : > { %273 = vst [vmem:[%s1499_s26 + $0xb0] sm:$0xff] %v272_v22  ;;  %275 = vst [vmem:[%s1499_s26 + $0xb8] sm:$0xff] %v274_v23  ;;  %v278_v25 = vld [vmem:[%s1494_s25 + $0x188] sm:$0xff]  ;;  %v280_v26 = vld [vmem:[%s1494_s25 + $0x190] sm:$0xff] }
  0x1e   : > { %277 = vst [vmem:[%s1499_s26 + $0xc0] sm:$0xff] %v276_v24  ;;  %279 = vst [vmem:[%s1499_s26 + $0xc8] sm:$0xff] %v278_v25  ;;  %v282_v27 = vld [vmem:[%s1494_s25 + $0x198] sm:$0xff]  ;;  %v284_v28 = vld [vmem:[%s1494_s25 + $0x1a0] sm:$0xff] }
  0x1f   : > { %281 = vst [vmem:[%s1499_s26 + $0xd0] sm:$0xff] %v280_v26  ;;  %v286_v29 = vld [vmem:[%s1494_s25 + $0x1a8] sm:$0xff]  ;;  %283 = vst [vmem:[%s1499_s26 + $0xd8] sm:$0xff] %v282_v27  ;;  %v288_v30 = vld [vmem:[%s1494_s25 + $0x1b0] sm:$0xff] }
  0x20   : > { %285 = vst [vmem:[%s1499_s26 + $0xe0] sm:$0xff] %v284_v28  ;;  %287 = vst [vmem:[%s1499_s26 + $0xe8] sm:$0xff] %v286_v29  ;;  %v290_v31 = vld [vmem:[%s1494_s25 + $0x1b8] sm:$0xff] }
  0x21   : > { %289 = vst [vmem:[%s1499_s26 + $0xf0] sm:$0xff] %v288_v30  ;;  %291 = vst [vmem:[%s1499_s26 + $0xf8] sm:$0xff] %v290_v31 }
  0x22 PF: > { %p1196_p5 = scmp.ge.s32.totalorder %s1438_s14, 1  ;;  %p296_p6 = scmp.lt.s32.totalorder %s1438_s14, 3 }
  0x24   : > { %p297_p7 = pnand %p1196_p5, %p296_p6 }
  0x25   : > { %v1567_v32 = vld [vmem:[%s1988_s1 + $0x4] ss:$8 sps:$4 sm:$0xff] (!%p297_p7)   ;;  %v1572_v33 = vld [vmem:[%s1988_s1] ss:$8 sps:$4 sm:$0xff] (!%p297_p7)   ;;  %v1579_v34 = vld [vmem:[%s1988_s1 + $0x14] ss:$8 sps:$4 sm:$0xff] (!%p297_p7)  }
  0x26   : > { %300 = sbr.rel (%p297_p7) target bundleno = 368 (0x170), region = 66  ;;  %513 = vmatprep.subr.bf16.mxu0 (!%p297_p7), %v1567_v32  ;;  %643 = vmatprep.subr.bf16.mxu1 (!%p297_p7), %v1567_v32  ;;  %v1586_v35 = vld [vmem:[%s1988_s1 + $0x10] ss:$8 sps:$4 sm:$0xff] (!%p297_p7)   ;;  %v1593_v36 = vld [vmem:[%s1988_s1 + $0x24] ss:$8 sps:$4 sm:$0xff] (!%p297_p7)   ;;  %s303_s10 = sand.u32 (!%p297_p7), 1, %s1430_s12  }
  0x27   : > { %514 = vmatpush1.bf16.msra.mxu0 (!%p297_p7), %v1572_v33  ;;  %644 = vmatpush1.bf16.msra.mxu1 (!%p297_p7), %v1572_v33  ;;  %v1601_v37 = vld [vmem:[%s1988_s1 + $0x20] ss:$8 sps:$4 sm:$0xff] (!%p297_p7)   ;;  %v1608_v38 = vld [vmem:[%s1988_s1 + $0x34] ss:$8 sps:$4 sm:$0xff] (!%p297_p7)   ;;  %s1197_s21 = sshll.u32 (!%p297_p7), %s303_s10, 8  ;;  %vm500_vm0 = vcmask (!%p297_p7), 261120  }
  0x28   : > { %515 = vmatprep.subr.bf16.mxu0 (!%p297_p7), %v1579_v34  ;;  %645 = vmatprep.subr.bf16.mxu1 (!%p297_p7), %v1579_v34  ;;  %v1615_v39 = vld [vmem:[%s1988_s1 + $0x30] ss:$8 sps:$4 sm:$0xff] (!%p297_p7)   ;;  %v1622_v40 = vld [vmem:[%s1988_s1 + $0x44] ss:$8 sps:$4 sm:$0xff] (!%p297_p7)   ;;  %s1624_s25 = scalar_lea.vmem (!%p297_p7), [#allocation2], %s1197_s21 }
  0x29   : > { %v1370_v41 = vld [vmem:[%s1624_s25 + $0x4] ss:$8 sps:$4 sm:$0xff] (!%p297_p7)   ;;  %v1632_v42 = vld [vmem:[%s1988_s1 + $0x40] ss:$8 sps:$4 sm:$0xff] (!%p297_p7)   ;;  %v1640_v44 = vld [vmem:[%s1988_s1 + $0x54] ss:$8 sps:$4 sm:$0xff] (!%p297_p7)  }
  0x2a   : > { %v1373_v43 = vld [vmem:[%s1624_s25 + $0x44] ss:$8 sps:$4 sm:$0xff] (!%p297_p7)   ;;  %1229 = vmatprep.mubr.msk.bf16.mxu0 (!%p297_p7), %vm500_vm0, %v1370_v41  ;;  %v1649_v45 = vld [vmem:[%s1988_s1 + $0x50] ss:$8 sps:$4 sm:$0xff] (!%p297_p7)   ;;  %v1663_v47 = vld [vmem:[%s1988_s1 + $0x60] ss:$8 sps:$4 sm:$0xff] (!%p297_p7)  }
  0x2b   : > { %516 = vmatpush1.bf16.msra.mxu0 (!%p297_p7), %v1586_v35  ;;  %646 = vmatpush1.bf16.msra.mxu1 (!%p297_p7), %v1586_v35  ;;  %v1656_v46 = vld [vmem:[%s1988_s1 + $0x64] ss:$8 sps:$4 sm:$0xff] (!%p297_p7)   ;;  %v1670_v48 = vld [vmem:[%s1988_s1 + $0x74] ss:$8 sps:$4 sm:$0xff] (!%p297_p7)   ;;  %v1677_v49 = vld [vmem:[%s1988_s1 + $0x70] ss:$8 sps:$4 sm:$0xff] (!%p297_p7)  }
  0x2c   : > { %517 = vmatprep.subr.bf16.mxu0 (!%p297_p7), %v1593_v36  ;;  %647 = vmatprep.subr.bf16.mxu1 (!%p297_p7), %v1593_v36  ;;  %v1684_v50 = vld [vmem:[%s1988_s1 + $0x84] ss:$8 sps:$4 sm:$0xff] (!%p297_p7)   ;;  %v1691_v51 = vld [vmem:[%s1988_s1 + $0x80] ss:$8 sps:$4 sm:$0xff] (!%p297_p7)   ;;  %v1698_v52 = vld [vmem:[%s1988_s1 + $0x94] ss:$8 sps:$4 sm:$0xff] (!%p297_p7)  }
  0x2d   : > { %1249 = vmatprep.mubr.msk.bf16.mxu1 %vm500_vm0, %v1373_v43  ;;  %v1705_v53 = vld [vmem:[%s1988_s1 + $0x90] ss:$8 sps:$4 sm:$0xff]   ;;  %v1368_v54 = vld [vmem:[%s1624_s25] ss:$8 sps:$4 sm:$0xff]   ;;  %v1374_v56 = vld [vmem:[%s1624_s25 + $0x14] ss:$8 sps:$4 sm:$0xff]  }
  0x2e   : > { %v1371_v55 = vld [vmem:[%s1624_s25 + $0x40] ss:$8 sps:$4 sm:$0xff]   ;;  %v1376_v57 = vld [vmem:[%s1624_s25 + $0x54] ss:$8 sps:$4 sm:$0xff]   ;;  %v1378_v58 = vld [vmem:[%s1624_s25 + $0x10] ss:$8 sps:$4 sm:$0xff]  }
  0x2f   : > { %518 = vmatpush1.bf16.msra.mxu0 %v1601_v37  ;;  %648 = vmatpush1.bf16.msra.mxu1 %v1601_v37  ;;  %v1379_v59 = vld [vmem:[%s1624_s25 + $0x50] ss:$8 sps:$4 sm:$0xff]   ;;  %v1380_v60 = vld [vmem:[%s1624_s25 + $0x24] ss:$8 sps:$4 sm:$0xff]   ;;  %v1384_v62 = vld [vmem:[%s1624_s25 + $0x20] ss:$8 sps:$4 sm:$0xff]  }
  0x30   : > { %519 = vmatprep.subr.bf16.mxu0 %v1608_v38  ;;  %649 = vmatprep.subr.bf16.mxu1 %v1608_v38  ;;  %v1382_v61 = vld [vmem:[%s1624_s25 + $0x64] ss:$8 sps:$4 sm:$0xff]   ;;  %v1385_v63 = vld [vmem:[%s1624_s25 + $0x60] ss:$8 sps:$4 sm:$0xff]   ;;  %v1386_v0 = vld [vmem:[%s1624_s25 + $0x34] ss:$8 sps:$4 sm:$0xff]  }
  0x31   : > { %v1388_v1 = vld [vmem:[%s1624_s25 + $0x74] ss:$8 sps:$4 sm:$0xff]   ;;  %v1390_v2 = vld [vmem:[%s1624_s25 + $0x30] ss:$8 sps:$4 sm:$0xff]   ;;  %v1394_v4 = vld [vmem:[%s1624_s25 + $0x84] ss:$8 sps:$4 sm:$0xff]  }
  0x32   : > { %v1391_v3 = vld [vmem:[%s1624_s25 + $0x70] ss:$8 sps:$4 sm:$0xff]   ;;  %v1397_v5 = vld [vmem:[%s1624_s25 + $0xc4] ss:$8 sps:$4 sm:$0xff]   ;;  %v1392_v6 = vld [vmem:[%s1624_s25 + $0x80] ss:$8 sps:$4 sm:$0xff]  }
  0x33   : > { %520 = vmatpush1.bf16.msra.mxu0 %v1615_v39  ;;  %650 = vmatpush1.bf16.msra.mxu1 %v1615_v39  ;;  %v1395_v7 = vld [vmem:[%s1624_s25 + $0xc0] ss:$8 sps:$4 sm:$0xff]   ;;  %v1398_v8 = vld [vmem:[%s1624_s25 + $0x94] ss:$8 sps:$4 sm:$0xff]   ;;  %v1402_v10 = vld [vmem:[%s1624_s25 + $0x90] ss:$8 sps:$4 sm:$0xff]  }
  0x34   : > { %521 = vmatprep.subr.bf16.mxu0 %v1622_v40  ;;  %651 = vmatprep.subr.bf16.mxu1 %v1622_v40  ;;  %v1400_v9 = vld [vmem:[%s1624_s25 + $0xd4] ss:$8 sps:$4 sm:$0xff]   ;;  %v1403_v11 = vld [vmem:[%s1624_s25 + $0xd0] ss:$8 sps:$4 sm:$0xff]   ;;  %v1404_v12 = vld [vmem:[%s1624_s25 + $0xa4] ss:$8 sps:$4 sm:$0xff]  }
  0x35   : > { %v1406_v13 = vld [vmem:[%s1624_s25 + $0xe4] ss:$8 sps:$4 sm:$0xff]   ;;  %v1408_v14 = vld [vmem:[%s1624_s25 + $0xa0] ss:$8 sps:$4 sm:$0xff]   ;;  %v1410_v16 = vld [vmem:[%s1624_s25 + $0xb4] ss:$8 sps:$4 sm:$0xff]  }
  0x36   : > { %v1409_v15 = vld [vmem:[%s1624_s25 + $0xe0] ss:$8 sps:$4 sm:$0xff]   ;;  %v1412_v17 = vld [vmem:[%s1624_s25 + $0xf4] ss:$8 sps:$4 sm:$0xff]   ;;  %v1414_v18 = vld [vmem:[%s1624_s25 + $0xb0] ss:$8 sps:$4 sm:$0xff]  }
  0x37   : > { %522 = vmatpush1.bf16.msra.mxu0 %v1632_v42  ;;  %652 = vmatpush1.bf16.msra.mxu1 %v1632_v42  ;;  %v1415_v19 = vld [vmem:[%s1624_s25 + $0xf0] ss:$8 sps:$4 sm:$0xff]   ;;  %s1198_s25 = sshll.u32 %s1188_s15, 3 }
  0x38   : > { %523 = vmatprep.subr.bf16.mxu0 %v1640_v44  ;;  %653 = vmatprep.subr.bf16.mxu1 %v1640_v44  ;;  %p329_p8 = scmp.lt.s32.totalorder %s1198_s25, 15 }
  0x3a   : > { %s1996_s25 = smov (!%p329_p8, %s1198_s25), 15 }
  0x3b   : > { %524 = vmatpush1.bf16.msra.mxu0 %v1649_v45  ;;  %654 = vmatpush1.bf16.msra.mxu1 %v1649_v45  ;;  %s1305_s14 = sshll.u32 %s1996_s25, 3 }
  0x3c   : > { %525 = vmatprep.subr.bf16.mxu0 %v1656_v46  ;;  %655 = vmatprep.subr.bf16.mxu1 %v1656_v46  ;;  %s1919_s30 = scalar_lea.vmem %s1990_s3, %s1305_s14 }
  0x3f   : > { %526 = vmatpush1.bf16.msra.mxu0 %v1663_v47  ;;  %656 = vmatpush1.bf16.msra.mxu1 %v1663_v47 }
  0x40   : > { %527 = vmatprep.subr.bf16.mxu0 %v1670_v48  ;;  %657 = vmatprep.subr.bf16.mxu1 %v1670_v48 }
  0x43   : > { %528 = vmatpush1.bf16.msra.mxu0 %v1677_v49  ;;  %658 = vmatpush1.bf16.msra.mxu1 %v1677_v49 }
  0x44   : > { %529 = vmatprep.subr.bf16.mxu0 %v1684_v50  ;;  %659 = vmatprep.subr.bf16.mxu1 %v1684_v50 }
  0x47   : > { %530 = vmatpush1.bf16.msra.mxu0 %v1691_v51  ;;  %660 = vmatpush1.bf16.msra.mxu1 %v1691_v51 }
  0x48   : > { %531 = vmatprep.subr.bf16.mxu0 %v1698_v52  ;;  %661 = vmatprep.subr.bf16.mxu1 %v1698_v52 }
  0x4b   : > { %532 = vmatpush1.bf16.msra.mxu0 %v1705_v53  ;;  %662 = vmatpush1.bf16.msra.mxu1 %v1705_v53 }
  0x4c   : > { %773 = vmatprep.subr.bf16.mxu0 %v1567_v32  ;;  %903 = vmatprep.subr.bf16.mxu1 %v1567_v32 }
  0x4e   : > { %546 = vmatmul.mubr.bf16.vlgmr.msra.gmra.mrb[0].mxu0 %v1368_v54  ;;  %676 = vmatmul.mubr.bf16.vlgmr.msra.gmra.mrb[0].mxu1 %v1371_v55 }
  0x4f   : > { %774 = vmatpush1.bf16.msra.mxu0 %v1572_v33  ;;  %904 = vmatpush1.bf16.msra.mxu1 %v1572_v33 }
  0x50   : > { %775 = vmatprep.subr.bf16.mxu0 %v1579_v34  ;;  %905 = vmatprep.subr.bf16.mxu1 %v1579_v34 }
  0x51   : > { %1230 = vmatprep.mubr.msk.bf16.mxu0 %vm500_vm0, %v1374_v56  ;;  %1250 = vmatprep.mubr.msk.bf16.mxu1 %vm500_vm0, %v1376_v57 }
  0x53   : > { %776 = vmatpush1.bf16.msra.mxu0 %v1586_v35  ;;  %906 = vmatpush1.bf16.msra.mxu1 %v1586_v35 }
  0x54   : > { %777 = vmatprep.subr.bf16.mxu0 %v1593_v36  ;;  %907 = vmatprep.subr.bf16.mxu1 %v1593_v36 }
  0x56   : > { %556 = vmatmul.mubr.bf16.gmra.mrb[4].mxu0 %v1378_v58  ;;  %686 = vmatmul.mubr.bf16.gmra.mrb[4].mxu1 %v1379_v59 }
  0x57   : > { %778 = vmatpush1.bf16.msra.mxu0 %v1601_v37  ;;  %908 = vmatpush1.bf16.msra.mxu1 %v1601_v37 }
  0x58   : > { %779 = vmatprep.subr.bf16.mxu0 %v1608_v38  ;;  %909 = vmatprep.subr.bf16.mxu1 %v1608_v38 }
  0x59   : > { %1231 = vmatprep.mubr.msk.bf16.mxu0 %vm500_vm0, %v1380_v60  ;;  %1251 = vmatprep.mubr.msk.bf16.mxu1 %vm500_vm0, %v1382_v61 }
  0x5b   : > { %780 = vmatpush1.bf16.msra.mxu0 %v1615_v39  ;;  %910 = vmatpush1.bf16.msra.mxu1 %v1615_v39 }
  0x5c   : > { %781 = vmatprep.subr.bf16.mxu0 %v1622_v40  ;;  %911 = vmatprep.subr.bf16.mxu1 %v1622_v40 }
  0x5e   : > { %566 = vmatmul.mubr.bf16.gmra.mrb[8].mxu0 %v1384_v62  ;;  %696 = vmatmul.mubr.bf16.gmra.mrb[8].mxu1 %v1385_v63 }
  0x5f   : > { %782 = vmatpush1.bf16.msra.mxu0 %v1632_v42  ;;  %912 = vmatpush1.bf16.msra.mxu1 %v1632_v42 }
  0x60   : > { %783 = vmatprep.subr.bf16.mxu0 %v1640_v44  ;;  %913 = vmatprep.subr.bf16.mxu1 %v1640_v44 }
  0x61   : > { %1232 = vmatprep.mubr.msk.bf16.mxu0 %vm500_vm0, %v1386_v0  ;;  %1252 = vmatprep.mubr.msk.bf16.mxu1 %vm500_vm0, %v1388_v1 }
  0x63   : > { %784 = vmatpush1.bf16.msra.mxu0 %v1649_v45  ;;  %914 = vmatpush1.bf16.msra.mxu1 %v1649_v45 }
  0x64   : > { %785 = vmatprep.subr.bf16.mxu0 %v1656_v46  ;;  %915 = vmatprep.subr.bf16.mxu1 %v1656_v46 }
  0x66   : > { %576 = vmatmul.mubr.bf16.gmra.mrb[12].mxu0 %v1390_v2  ;;  %706 = vmatmul.mubr.bf16.gmra.mrb[12].mxu1 %v1391_v3 }
  0x67   : > { %786 = vmatpush1.bf16.msra.mxu0 %v1663_v47  ;;  %916 = vmatpush1.bf16.msra.mxu1 %v1663_v47 }
  0x68   : > { %787 = vmatprep.subr.bf16.mxu0 %v1670_v48  ;;  %917 = vmatprep.subr.bf16.mxu1 %v1670_v48 }
  0x69   : > { %1269 = vmatprep.mubr.msk.bf16.mxu0 %vm500_vm0, %v1394_v4  ;;  %1289 = vmatprep.mubr.msk.bf16.mxu1 %vm500_vm0, %v1397_v5  ;;  %v1026_v4 = vlaneseq }
  0x6b   : > { %788 = vmatpush1.bf16.msra.mxu0 %v1677_v49  ;;  %918 = vmatpush1.bf16.msra.mxu1 %v1677_v49  ;;  %v1027_v5 = vshrl.u32 %v1026_v4, 7 }
  0x6c   : > { %789 = vmatprep.subr.bf16.mxu0 %v1684_v50  ;;  %919 = vmatprep.subr.bf16.mxu1 %v1684_v50 }
  0x6f   : > { %790 = vmatpush1.bf16.msra.mxu0 %v1691_v51  ;;  %920 = vmatpush1.bf16.msra.mxu1 %v1691_v51 }
  0x70   : > { %791 = vmatprep.subr.bf16.mxu0 %v1698_v52  ;;  %921 = vmatprep.subr.bf16.mxu1 %v1698_v52 }
  0x73   : > { %792 = vmatpush1.bf16.msra.mxu0 %v1705_v53  ;;  %922 = vmatpush1.bf16.msra.mxu1 %v1705_v53 }
  0x76   : > { %806 = vmatmul.mubr.bf16.vlgmr.msra.gmra.mrb[16].mxu0 %v1392_v6  ;;  %936 = vmatmul.mubr.bf16.vlgmr.msra.gmra.mrb[16].mxu1 %v1395_v7  ;;  %v1028_v6 = vsub.s32 0, %v1027_v5  ;;  %v1024_v7 = vld [vmem:[%s1989_s2] sm:$0x3] }
  0x77   : > { %1270 = vmatprep.mubr.msk.bf16.mxu0 %vm500_vm0, %v1398_v8  ;;  %1290 = vmatprep.mubr.msk.bf16.mxu1 %vm500_vm0, %v1400_v9  ;;  %v1032_v8 = vsub.s32 1, %v1027_v5 }
  0x7e   : > { %816 = vmatmul.mubr.bf16.gmra.mrb[20].mxu0 %v1402_v10  ;;  %946 = vmatmul.mubr.bf16.gmra.mrb[20].mxu1 %v1403_v11 }
  0x7f   : > { %1271 = vmatprep.mubr.msk.bf16.mxu0 %vm500_vm0, %v1404_v12  ;;  %1291 = vmatprep.mubr.msk.bf16.mxu1 %vm500_vm0, %v1406_v13  ;;  %v1896_v12 = vrot.slane %v1024_v7, %v1028_v6 }
  0x86   : > { %826 = vmatmul.mubr.bf16.gmra.mrb[24].mxu0 %v1408_v14  ;;  %956 = vmatmul.mubr.bf16.gmra.mrb[24].mxu1 %v1409_v15 }
  0x87   : > { %1272 = vmatprep.mubr.msk.bf16.mxu0 %vm500_vm0, %v1410_v16  ;;  %1292 = vmatprep.mubr.msk.bf16.mxu1 %vm500_vm0, %v1412_v17  ;;  %v1898_v16 = vrot.slane %v1024_v7, %v1032_v8 }
  0x8e   : > { %836 = vmatmul.mubr.bf16.gmra.mrb[28].mxu0 %v1414_v18  ;;  %966 = vmatmul.mubr.bf16.gmra.mrb[28].mxu1 %v1415_v19 }
 0x121   : > { %v1795_v20 = vpop.f32.mrb[0].mxu0  ;;  %v1797_v21 = vpop.f32.mrb[0].mxu1 }
 0x122   : > { %v976_v22 = vmax.f32 %v1795_v20, %v1797_v21  ;;  %v1801_v23 = vpop.f32.mrb[1].mxu0  ;;  %v1803_v24 = vpop.f32.mrb[1].mxu1 }
 0x123   : > { %v977_v25 = vmax.f32 %v1801_v23, %v1803_v24  ;;  %v1807_v26 = vpop.f32.mrb[2].mxu0  ;;  %v1809_v27 = vpop.f32.mrb[2].mxu1 }
 0x124   : > { %v978_v28 = vmax.f32 %v1807_v26, %v1809_v27  ;;  %v1813_v29 = vpop.f32.mrb[3].mxu0  ;;  %v1815_v30 = vpop.f32.mrb[3].mxu1 }
 0x125   : > { %v979_v31 = vmax.f32 %v1813_v29, %v1815_v30 }
 0x129   : > { %v1819_v32 = vpop.f32.mrb[4].mxu0  ;;  %v1821_v33 = vpop.f32.mrb[4].mxu1 }
 0x12a   : > { %v980_v34 = vmax.f32 %v1819_v32, %v1821_v33  ;;  %v1825_v35 = vpop.f32.mrb[5].mxu0  ;;  %v1827_v36 = vpop.f32.mrb[5].mxu1 }
 0x12b   : > { %v981_v37 = vmax.f32 %v1825_v35, %v1827_v36  ;;  %v1831_v38 = vpop.f32.mrb[6].mxu0  ;;  %v1833_v39 = vpop.f32.mrb[6].mxu1 }
 0x12c   : > { %v982_v40 = vmax.f32 %v1831_v38, %v1833_v39  ;;  %v1837_v41 = vpop.f32.mrb[7].mxu0  ;;  %v1839_v42 = vpop.f32.mrb[7].mxu1 }
 0x12d   : > { %v983_v43 = vmax.f32 %v1837_v41, %v1839_v42 }
 0x131   : > { %v1843_v44 = vpop.f32.mrb[8].mxu0  ;;  %v1845_v45 = vpop.f32.mrb[8].mxu1 }
 0x132   : > { %v984_v46 = vmax.f32 %v1843_v44, %v1845_v45  ;;  %v1849_v47 = vpop.f32.mrb[9].mxu0  ;;  %v1851_v48 = vpop.f32.mrb[9].mxu1 }
 0x133   : > { %v985_v49 = vmax.f32 %v1849_v47, %v1851_v48  ;;  %v1855_v50 = vpop.f32.mrb[10].mxu0  ;;  %v1857_v51 = vpop.f32.mrb[10].mxu1 }
 0x134   : > { %v986_v52 = vmax.f32 %v1855_v50, %v1857_v51  ;;  %v1861_v53 = vpop.f32.mrb[11].mxu0  ;;  %v1863_v54 = vpop.f32.mrb[11].mxu1 }
 0x135   : > { %v987_v55 = vmax.f32 %v1861_v53, %v1863_v54 }
 0x139   : > { %v1867_v56 = vpop.f32.mrb[12].mxu0  ;;  %v1869_v57 = vpop.f32.mrb[12].mxu1 }
 0x13a   : > { %v988_v58 = vmax.f32 %v1867_v56, %v1869_v57  ;;  %v1873_v59 = vpop.f32.mrb[13].mxu0  ;;  %v1875_v60 = vpop.f32.mrb[13].mxu1 }
 0x13b   : > { %v989_v61 = vmax.f32 %v1873_v59, %v1875_v60  ;;  %v1879_v62 = vpop.f32.mrb[14].mxu0  ;;  %v1881_v63 = vpop.f32.mrb[14].mxu1 }
 0x13c   : > { %v990_v0 = vmax.f32 %v1879_v62, %v1881_v63  ;;  %v1885_v1 = vpop.f32.mrb[15].mxu0  ;;  %v1887_v2 = vpop.f32.mrb[15].mxu1 }
 0x13d   : > { %v1991_v57 = vmax.f32 %v1885_v1, %v1887_v2 }
 0x149   : > { %v807_v9 = vpop.f32.mrb[16].mxu0  ;;  %v937_v10 = vpop.f32.mrb[16].mxu1 }
 0x14a   : > { %v992_v11 = vmax.f32 %v807_v9, %v937_v10  ;;  %v809_v13 = vpop.f32.mrb[17].mxu0  ;;  %v939_v14 = vpop.f32.mrb[17].mxu1 }
 0x14b   : > { %v993_v15 = vmax.f32 %v809_v13, %v939_v14  ;;  %v811_v17 = vpop.f32.mrb[18].mxu0  ;;  %v941_v18 = vpop.f32.mrb[18].mxu1 }
 0x14c   : > { %v1008_v19 = vmax.f32 %v976_v22, %v992_v11  ;;  %v994_v4 = vmax.f32 %v811_v17, %v941_v18  ;;  %v813_v3 = vpop.f32.mrb[19].mxu0  ;;  %v943_v5 = vpop.f32.mrb[19].mxu1 }
 0x14d   : > { %v1009_v6 = vmax.f32 %v977_v25, %v993_v15  ;;  %v995_v9 = vmax.f32 %v813_v3, %v943_v5 }
 0x14e   : > { %v1036_v10 = vadd.f32 %v1896_v12, %v1008_v19  ;;  %v1010_v7 = vmax.f32 %v978_v28, %v994_v4 }
 0x14f   : > { %v1037_v8 = vadd.f32 %v1898_v16, %v1009_v6  ;;  %v1011_v20 = vmax.f32 %v979_v31, %v995_v9 }
 0x150   : > { %v1052_v21 = vmax.f32 %v1036_v10, 0.0  ;;  %v1038_v22 = vadd.f32 %v1896_v12, %v1010_v7 }
 0x151   : > { %v1053_v11 = vmax.f32 %v1037_v8, 0.0  ;;  %v1039_v23 = vadd.f32 %v1898_v16, %v1011_v20  ;;  %v817_v24 = vpop.f32.mrb[20].mxu0  ;;  %v947_v25 = vpop.f32.mrb[20].mxu1 }
 0x152   : > { %v1054_v26 = vmax.f32 %v1038_v22, 0.0  ;;  %v996_v27 = vmax.f32 %v817_v24, %v947_v25  ;;  %v819_v28 = vpop.f32.mrb[21].mxu0  ;;  %v949_v3 = vpop.f32.mrb[21].mxu1 }
 0x153   : > { %v1306_v29 = vpack.c.bf16 %v1053_v11, %v1052_v21  ;;  %v1055_v30 = vmax.f32 %v1039_v23, 0.0  ;;  %v997_v31 = vmax.f32 %v819_v28, %v949_v3  ;;  %v821_v13 = vpop.f32.mrb[22].mxu0  ;;  %v951_v14 = vpop.f32.mrb[22].mxu1 }
 0x154   : > { %v1012_v15 = vmax.f32 %v980_v34, %v996_v27  ;;  %v998_v17 = vmax.f32 %v821_v13, %v951_v14  ;;  %v823_v18 = vpop.f32.mrb[23].mxu0  ;;  %v953_v19 = vpop.f32.mrb[23].mxu1 }
 0x155   : > { %1116 = vst [vmem:[%s1919_s30] sm:$0xff] %v1306_v29  ;;  %v1307_v4 = vpack.c.bf16 %v1055_v30, %v1054_v26  ;;  %v1013_v5 = vmax.f32 %v981_v37, %v997_v31  ;;  %v999_v6 = vmax.f32 %v823_v18, %v953_v19 }
 0x156   : > { %v1040_v9 = vadd.f32 %v1896_v12, %v1012_v15  ;;  %v1014_v10 = vmax.f32 %v982_v40, %v998_v17 }
 0x157   : > { %1117 = vst [vmem:[%s1919_s30 + $0x8] sm:$0xff] %v1307_v4  ;;  %v1041_v32 = vadd.f32 %v1898_v16, %v1013_v5  ;;  %v1015_v33 = vmax.f32 %v983_v43, %v999_v6 }
 0x158   : > { %v1056_v34 = vmax.f32 %v1040_v9, 0.0  ;;  %v1042_v7 = vadd.f32 %v1896_v12, %v1014_v10 }
 0x159   : > { %v1057_v8 = vmax.f32 %v1041_v32, 0.0  ;;  %v1043_v35 = vadd.f32 %v1898_v16, %v1015_v33  ;;  %v827_v36 = vpop.f32.mrb[24].mxu0  ;;  %v957_v37 = vpop.f32.mrb[24].mxu1 }
 0x15a   : > { %v1058_v20 = vmax.f32 %v1042_v7, 0.0  ;;  %v1000_v21 = vmax.f32 %v827_v36, %v957_v37  ;;  %v829_v38 = vpop.f32.mrb[25].mxu0  ;;  %v959_v39 = vpop.f32.mrb[25].mxu1 }
 0x15b   : > { %v1308_v40 = vpack.c.bf16 %v1057_v8, %v1056_v34  ;;  %v1059_v22 = vmax.f32 %v1043_v35, 0.0  ;;  %v1001_v11 = vmax.f32 %v829_v38, %v959_v39  ;;  %v831_v23 = vpop.f32.mrb[26].mxu0  ;;  %v961_v41 = vpop.f32.mrb[26].mxu1 }
 0x15c   : > { %v1016_v42 = vmax.f32 %v984_v46, %v1000_v21  ;;  %v1002_v43 = vmax.f32 %v831_v23, %v961_v41  ;;  %v833_v24 = vpop.f32.mrb[27].mxu0  ;;  %v963_v25 = vpop.f32.mrb[27].mxu1 }
 0x15d   : > { %1118 = vst [vmem:[%s1919_s30 + $0x10] sm:$0xff] %v1308_v40  ;;  %v1309_v26 = vpack.c.bf16 %v1059_v22, %v1058_v20  ;;  %v1017_v27 = vmax.f32 %v985_v49, %v1001_v11  ;;  %v1003_v28 = vmax.f32 %v833_v24, %v963_v25 }
 0x15e   : > { %v1044_v3 = vadd.f32 %v1896_v12, %v1016_v42  ;;  %v1018_v29 = vmax.f32 %v986_v52, %v1002_v43 }
 0x15f   : > { %1119 = vst [vmem:[%s1919_s30 + $0x18] sm:$0xff] %v1309_v26  ;;  %v1045_v44 = vadd.f32 %v1898_v16, %v1017_v27  ;;  %v1019_v45 = vmax.f32 %v987_v55, %v1003_v28 }
 0x160   : > { %v1060_v46 = vmax.f32 %v1044_v3, 0.0  ;;  %v1046_v30 = vadd.f32 %v1896_v12, %v1018_v29 }
 0x161   : > { %v1061_v31 = vmax.f32 %v1045_v44, 0.0  ;;  %v1047_v47 = vadd.f32 %v1898_v16, %v1019_v45  ;;  %v837_v48 = vpop.f32.mrb[28].mxu0  ;;  %v967_v49 = vpop.f32.mrb[28].mxu1 }
 0x162   : > { %v1062_v13 = vmax.f32 %v1046_v30, 0.0  ;;  %v1004_v14 = vmax.f32 %v837_v48, %v967_v49  ;;  %v839_v50 = vpop.f32.mrb[29].mxu0  ;;  %v969_v51 = vpop.f32.mrb[29].mxu1 }
 0x163   : > { %v1310_v52 = vpack.c.bf16 %v1061_v31, %v1060_v46  ;;  %v1063_v15 = vmax.f32 %v1047_v47, 0.0  ;;  %v1005_v17 = vmax.f32 %v839_v50, %v969_v51  ;;  %v841_v18 = vpop.f32.mrb[30].mxu0  ;;  %v971_v53 = vpop.f32.mrb[30].mxu1 }
 0x164   : > { %v1020_v54 = vmax.f32 %v988_v58, %v1004_v14  ;;  %v1006_v55 = vmax.f32 %v841_v18, %v971_v53  ;;  %v843_v19 = vpop.f32.mrb[31].mxu0  ;;  %v973_v4 = vpop.f32.mrb[31].mxu1 }
 0x165   : > { %1120 = vst [vmem:[%s1919_s30 + $0x20] sm:$0xff] %v1310_v52  ;;  %v1311_v5 = vpack.c.bf16 %v1063_v15, %v1062_v13  ;;  %v1021_v6 = vmax.f32 %v989_v61, %v1005_v17  ;;  %v1007_v9 = vmax.f32 %v843_v19, %v973_v4 }
 0x166   : > { %v1048_v10 = vadd.f32 %v1896_v12, %v1020_v54  ;;  %v1022_v32 = vmax.f32 %v990_v0, %v1006_v55 }
 0x167   : > { %1121 = vst [vmem:[%s1919_s30 + $0x28] sm:$0xff] %v1311_v5  ;;  %v1049_v56 = vadd.f32 %v1898_v16, %v1021_v6  ;;  %v1023_v58 = vmax.f32 %v1991_v57, %v1007_v9 }
 0x168   : > { %v1064_v33 = vmax.f32 %v1048_v10, 0.0  ;;  %v1050_v34 = vadd.f32 %v1896_v12, %v1022_v32 }
 0x169   : > { %v1065_v59 = vmax.f32 %v1049_v56, 0.0  ;;  %v1051_v60 = vadd.f32 %v1898_v16, %v1023_v58 }
 0x16a   : > { %v1066_v61 = vmax.f32 %v1050_v34, 0.0 }
 0x16b   : > { %v1312_v7 = vpack.c.bf16 %v1065_v59, %v1064_v33  ;;  %v1067_v8 = vmax.f32 %v1051_v60, 0.0 }
 0x16d   : > { %1122 = vst [vmem:[%s1919_s30 + $0x30] sm:$0xff] %v1312_v7  ;;  %v1313_v35 = vpack.c.bf16 %v1067_v8, %v1066_v61 }
 0x16f   : > { %1123 = vst [vmem:[%s1919_s30 + $0x38] sm:$0xff] %v1313_v35 }
 0x170 PF: > { %p10_p9 = scmp.ge.s32.totalorder %s1477_s16, 4   ;;  %s1992_s12 = smov %s1434_s13 }
 0x171   : > { %s1993_s13 = smov %s1486_s19  ;;  %s1994_s14 = smov %s1477_s16 }
 0x172   :  { %12 = sbr.rel (!%p10_p9) target bundleno = 2 (0x2), region = 108 }

// kernel: cnn_forward.5
= control target key start
LH: loop header
LB: loop body
LE: loop exit
PB: predicated region body
PF: predicated region fallthrough
CT: control target
= control target key end

     0   :  { %s10325_s1 = inlined_call_operand.vmem [shape: bf16[9216,128], index: 1, kind: input, shape index: {}]   ;;  %s10326_s0 = inlined_call_operand.vmem [shape: bf16[8,9216], index: 0, kind: input, shape index: {}]   ;;  %s10327_s2 = inlined_call_operand.vmem [shape: f32[8,128], index: 2, kind: output, shape index: {}]  }
   0x1   :  { %v7793_v0 = vld [vmem:[%s10325_s1 + $0x40] sm:$0xff]   ;;  %v7797_v4 = vld [vmem:[%s10325_s1 + $0x48] sm:$0xff]   ;;  %v7801_v8 = vld [vmem:[%s10325_s1 + $0x50] sm:$0xff]  }
   0x2   :  { %v7794_v1 = vld [vmem:[%s10325_s1 + $0xc0] sm:$0xff]   ;;  %7001 = vmatprep.subr.bf16.mxu0 %v7793_v0  ;;  %v7798_v5 = vld [vmem:[%s10325_s1 + $0xc8] sm:$0xff]   ;;  %v7802_v9 = vld [vmem:[%s10325_s1 + $0xd0] sm:$0xff]  }
   0x3   :  { %v7795_v2 = vld [vmem:[%s10325_s1] sm:$0xff]   ;;  %7023 = vmatprep.subr.bf16.mxu1 %v7794_v1  ;;  %v7799_v6 = vld [vmem:[%s10325_s1 + $0x8] sm:$0xff]   ;;  %v7803_v10 = vld [vmem:[%s10325_s1 + $0x10] sm:$0xff]  }
   0x4   :  { %v7796_v3 = vld [vmem:[%s10325_s1 + $0x80] sm:$0xff]   ;;  %7002 = vmatpush3.bf16.msra.mxu0 %v7795_v2  ;;  %v7800_v7 = vld [vmem:[%s10325_s1 + $0x88] sm:$0xff]   ;;  %v7804_v11 = vld [vmem:[%s10325_s1 + $0x90] sm:$0xff]  }
   0x5   :  { %7024 = vmatpush3.bf16.msra.mxu1 %v7796_v3  ;;  %7003 = vmatprep.subr.bf16.mxu0 %v7797_v4  ;;  %v7805_v12 = vld [vmem:[%s10325_s1 + $0x58] sm:$0xff]   ;;  %v7809_v16 = vld [vmem:[%s10325_s1 + $0x60] sm:$0xff]   ;;  %v7813_v20 = vld [vmem:[%s10325_s1 + $0x68] sm:$0xff]  }
   0x6   :  { %7025 = vmatprep.subr.bf16.mxu1 %v7798_v5  ;;  %v7806_v13 = vld [vmem:[%s10325_s1 + $0xd8] sm:$0xff]   ;;  %v7810_v17 = vld [vmem:[%s10325_s1 + $0xe0] sm:$0xff]   ;;  %v7814_v21 = vld [vmem:[%s10325_s1 + $0xe8] sm:$0xff]  }
   0x7   :  { %v7807_v14 = vld [vmem:[%s10325_s1 + $0x18] sm:$0xff]   ;;  %v7811_v18 = vld [vmem:[%s10325_s1 + $0x20] sm:$0xff]   ;;  %v7815_v22 = vld [vmem:[%s10325_s1 + $0x28] sm:$0xff]  }
   0x8   :  { %7004 = vmatpush3.bf16.msra.mxu0 %v7799_v6  ;;  %v7808_v15 = vld [vmem:[%s10325_s1 + $0x98] sm:$0xff]   ;;  %v7812_v19 = vld [vmem:[%s10325_s1 + $0xa0] sm:$0xff]   ;;  %v7816_v23 = vld [vmem:[%s10325_s1 + $0xa8] sm:$0xff]  }
   0x9   :  { %7026 = vmatpush3.bf16.msra.mxu1 %v7800_v7  ;;  %7005 = vmatprep.subr.bf16.mxu0 %v7801_v8  ;;  %v7817_v24 = vld [vmem:[%s10325_s1 + $0x70] sm:$0xff]   ;;  %v7821_v28 = vld [vmem:[%s10325_s1 + $0x78] sm:$0xff]   ;;  %v12_v32 = vld [vmem:[%s10326_s0] sm:$0xff] }
   0xa   :  { %7027 = vmatprep.subr.bf16.mxu1 %v7802_v9  ;;  %v7818_v25 = vld [vmem:[%s10325_s1 + $0xf0] sm:$0xff]   ;;  %v7822_v29 = vld [vmem:[%s10325_s1 + $0xf8] sm:$0xff]   ;;  %v13_v33 = vld [vmem:[%s10326_s0 + $0x8] sm:$0xff]  ;;  %v6353_v34 = vcombine.low %v12_v32, %v12_v32  ;;  %v6354_v35 = vcombine.high %v12_v32, %v12_v32 }
   0xb   :  { %v7819_v26 = vld [vmem:[%s10325_s1 + $0x30] sm:$0xff]   ;;  %v7823_v30 = vld [vmem:[%s10325_s1 + $0x38] sm:$0xff]   ;;  %v6355_v36 = vcombine.low %v13_v33, %v13_v33  ;;  %v6356_v37 = vcombine.high %v13_v33, %v13_v33  ;;  %v7829_v38 = vld [vmem:[%s10325_s1 + $0x140] sm:$0xff]  }
   0xc   :  { %7006 = vmatpush3.bf16.msra.mxu0 %v7803_v10  ;;  %v7820_v27 = vld [vmem:[%s10325_s1 + $0xb0] sm:$0xff]   ;;  %v7824_v31 = vld [vmem:[%s10325_s1 + $0xb8] sm:$0xff]   ;;  %v7830_v39 = vld [vmem:[%s10325_s1 + $0x1c0] sm:$0xff]   ;;  %4940 = vmatprep.mubr.bf16.mxu0 %v6354_v35 }
   0xd   :  { %7028 = vmatpush3.bf16.msra.mxu1 %v7804_v11  ;;  %7007 = vmatprep.subr.bf16.mxu0 %v7805_v12  ;;  %v7831_v40 = vld [vmem:[%s10325_s1 + $0x100] sm:$0xff]   ;;  %v7833_v42 = vld [vmem:[%s10325_s1 + $0x148] sm:$0xff]   ;;  %v7837_v46 = vld [vmem:[%s10325_s1 + $0x150] sm:$0xff]  }
   0xe   :  { %7029 = vmatprep.subr.bf16.mxu1 %v7806_v13  ;;  %4980 = vmatprep.mubr.bf16.mxu1 %v6356_v37  ;;  %v7832_v41 = vld [vmem:[%s10325_s1 + $0x180] sm:$0xff]   ;;  %v7834_v43 = vld [vmem:[%s10325_s1 + $0x1c8] sm:$0xff]   ;;  %v7838_v47 = vld [vmem:[%s10325_s1 + $0x1d0] sm:$0xff]  }
   0xf   :  { %v7835_v44 = vld [vmem:[%s10325_s1 + $0x108] sm:$0xff]   ;;  %v7839_v48 = vld [vmem:[%s10325_s1 + $0x110] sm:$0xff]   ;;  %v7841_v50 = vld [vmem:[%s10325_s1 + $0x158] sm:$0xff]  }
  0x10   :  { %7008 = vmatpush3.bf16.msra.mxu0 %v7807_v14  ;;  %v7836_v45 = vld [vmem:[%s10325_s1 + $0x188] sm:$0xff]   ;;  %v7840_v49 = vld [vmem:[%s10325_s1 + $0x190] sm:$0xff]   ;;  %v7842_v51 = vld [vmem:[%s10325_s1 + $0x1d8] sm:$0xff]  }
  0x11   :  { %7030 = vmatpush3.bf16.msra.mxu1 %v7808_v15  ;;  %7009 = vmatprep.subr.bf16.mxu0 %v7809_v16  ;;  %v7843_v52 = vld [vmem:[%s10325_s1 + $0x118] sm:$0xff]   ;;  %v7845_v54 = vld [vmem:[%s10325_s1 + $0x160] sm:$0xff]   ;;  %v7849_v58 = vld [vmem:[%s10325_s1 + $0x168] sm:$0xff]  }
  0x12   :  { %7031 = vmatprep.subr.bf16.mxu1 %v7810_v17  ;;  %v7844_v53 = vld [vmem:[%s10325_s1 + $0x198] sm:$0xff]   ;;  %v7846_v55 = vld [vmem:[%s10325_s1 + $0x1e0] sm:$0xff]   ;;  %v7850_v59 = vld [vmem:[%s10325_s1 + $0x1e8] sm:$0xff]  }
  0x13   :  { %v7847_v56 = vld [vmem:[%s10325_s1 + $0x120] sm:$0xff]   ;;  %v7851_v60 = vld [vmem:[%s10325_s1 + $0x128] sm:$0xff]   ;;  %v7853_v62 = vld [vmem:[%s10325_s1 + $0x170] sm:$0xff]  }
  0x14   :  { %7010 = vmatpush3.bf16.msra.mxu0 %v7811_v18  ;;  %v7848_v57 = vld [vmem:[%s10325_s1 + $0x1a0] sm:$0xff]   ;;  %v7852_v61 = vld [vmem:[%s10325_s1 + $0x1a8] sm:$0xff]   ;;  %v7854_v63 = vld [vmem:[%s10325_s1 + $0x1f0] sm:$0xff]  }
  0x15   :  { %7032 = vmatpush3.bf16.msra.mxu1 %v7812_v19  ;;  %7011 = vmatprep.subr.bf16.mxu0 %v7813_v20  ;;  %v7855_v0 = vld [vmem:[%s10325_s1 + $0x130] sm:$0xff]   ;;  %v7857_v2 = vld [vmem:[%s10325_s1 + $0x178] sm:$0xff]   ;;  %v7865_v12 = vld [vmem:[%s10325_s1 + $0x240] sm:$0xff]  }
  0x16   :  { %7033 = vmatprep.subr.bf16.mxu1 %v7814_v21  ;;  %v7856_v1 = vld [vmem:[%s10325_s1 + $0x1b0] sm:$0xff]   ;;  %v7858_v3 = vld [vmem:[%s10325_s1 + $0x1f8] sm:$0xff]   ;;  %v7866_v13 = vld [vmem:[%s10325_s1 + $0x2c0] sm:$0xff]  }
  0x17   :  { %v7859_v4 = vld [vmem:[%s10325_s1 + $0x138] sm:$0xff]   ;;  %v14_v6 = vld [vmem:[%s10326_s0 + $0x10] sm:$0xff]  ;;  %v7867_v14 = vld [vmem:[%s10325_s1 + $0x200] sm:$0xff]  }
  0x18   :  { %7012 = vmatpush3.bf16.msra.mxu0 %v7815_v22  ;;  %v7860_v5 = vld [vmem:[%s10325_s1 + $0x1b8] sm:$0xff]   ;;  %v6357_v7 = vcombine.low %v14_v6, %v14_v6  ;;  %v6358_v8 = vcombine.high %v14_v6, %v14_v6  ;;  %v7868_v15 = vld [vmem:[%s10325_s1 + $0x280] sm:$0xff]   ;;  %v7869_v16 = vld [vmem:[%s10325_s1 + $0x248] sm:$0xff]  }
  0x19   :  { %7034 = vmatpush3.bf16.msra.mxu1 %v7816_v23  ;;  %7013 = vmatprep.subr.bf16.mxu0 %v7817_v24  ;;  %v15_v9 = vld [vmem:[%s10326_s0 + $0x18] sm:$0xff]  ;;  %v7870_v17 = vld [vmem:[%s10325_s1 + $0x2c8] sm:$0xff]   ;;  %v7873_v20 = vld [vmem:[%s10325_s1 + $0x250] sm:$0xff]  }
  0x1a   :  { %7035 = vmatprep.subr.bf16.mxu1 %v7818_v25  ;;  %v6359_v10 = vcombine.low %v15_v9, %v15_v9  ;;  %v6360_v11 = vcombine.high %v15_v9, %v15_v9  ;;  %v7871_v18 = vld [vmem:[%s10325_s1 + $0x208] sm:$0xff]   ;;  %v7874_v21 = vld [vmem:[%s10325_s1 + $0x2d0] sm:$0xff]   ;;  %v7877_v24 = vld [vmem:[%s10325_s1 + $0x258] sm:$0xff]  }
  0x1b   :  { %v7872_v19 = vld [vmem:[%s10325_s1 + $0x288] sm:$0xff]   ;;  %v7875_v22 = vld [vmem:[%s10325_s1 + $0x210] sm:$0xff]   ;;  %v7878_v25 = vld [vmem:[%s10325_s1 + $0x2d8] sm:$0xff]  }
  0x1c   :  { %7014 = vmatpush3.bf16.msra.mxu0 %v7819_v26  ;;  %v7876_v23 = vld [vmem:[%s10325_s1 + $0x290] sm:$0xff]   ;;  %v7879_v26 = vld [vmem:[%s10325_s1 + $0x218] sm:$0xff]   ;;  %v7885_v32 = vld [vmem:[%s10325_s1 + $0x268] sm:$0xff]  }
  0x1d   :  { %7036 = vmatpush3.bf16.msra.mxu1 %v7820_v27  ;;  %7015 = vmatprep.subr.bf16.mxu0 %v7821_v28  ;;  %v7880_v27 = vld [vmem:[%s10325_s1 + $0x298] sm:$0xff]   ;;  %v7881_v28 = vld [vmem:[%s10325_s1 + $0x260] sm:$0xff]   ;;  %v7886_v33 = vld [vmem:[%s10325_s1 + $0x2e8] sm:$0xff]  }
  0x1e   :  { %7037 = vmatprep.subr.bf16.mxu1 %v7822_v29  ;;  %v7882_v29 = vld [vmem:[%s10325_s1 + $0x2e0] sm:$0xff]   ;;  %v7888_v35 = vld [vmem:[%s10325_s1 + $0x2a8] sm:$0xff]   ;;  %v7890_v37 = vld [vmem:[%s10325_s1 + $0x2f0] sm:$0xff]  }
  0x1f   :  { %v7921_v6 = vld [vmem:[%s10325_s1 + $0x368] sm:$0xff]  }
  0x20   :  { %7016 = vmatpush3.bf16.msra.mxu0 %v7823_v30  ;;  %v7883_v30 = vld [vmem:[%s10325_s1 + $0x220] sm:$0xff]   ;;  %v7924_v9 = vld [vmem:[%s10325_s1 + $0x3a8] sm:$0xff]  }
  0x21   :  { %7038 = vmatpush3.bf16.msra.mxu1 %v7824_v31  ;;  %7045 = vmatprep.subr.bf16.mxu0 %v7829_v38  ;;  %v7884_v31 = vld [vmem:[%s10325_s1 + $0x2a0] sm:$0xff]   ;;  %v7891_v38 = vld [vmem:[%s10325_s1 + $0x230] sm:$0xff]  }
  0x22   :  { %7067 = vmatprep.subr.bf16.mxu1 %v7830_v39  ;;  %v7892_v39 = vld [vmem:[%s10325_s1 + $0x2b0] sm:$0xff]  }
  0x23   :  { %4941 = vmatmul.mubr.bf16.vlgmr.msra.gmra.mrb[0].mxu0 %v6353_v34  ;;  %v7887_v34 = vld [vmem:[%s10325_s1 + $0x228] sm:$0xff]  }
  0x24   :  { %4981 = vmatmul.mubr.bf16.vlgmr.msra.gmra.mrb[0].mxu1 %v6355_v36  ;;  %7046 = vmatpush3.bf16.msra.mxu0 %v7831_v40  ;;  %v7889_v36 = vld [vmem:[%s10325_s1 + $0x270] sm:$0xff]   ;;  %v7893_v40 = vld [vmem:[%s10325_s1 + $0x278] sm:$0xff]  }
  0x25   :  { %7068 = vmatpush3.bf16.msra.mxu1 %v7832_v41  ;;  %7047 = vmatprep.subr.bf16.mxu0 %v7833_v42  ;;  %v7894_v41 = vld [vmem:[%s10325_s1 + $0x2f8] sm:$0xff]  }
  0x26   :  { %7069 = vmatprep.subr.bf16.mxu1 %v7834_v43  ;;  %5020 = vmatprep.mubr.bf16.mxu0 %v6358_v8  ;;  %v7895_v42 = vld [vmem:[%s10325_s1 + $0x238] sm:$0xff]   ;;  %v7923_v8 = vld [vmem:[%s10325_s1 + $0x328] sm:$0xff]  }
  0x27   :  { %5060 = vmatprep.mubr.bf16.mxu1 %v6360_v11  ;;  %v7896_v43 = vld [vmem:[%s10325_s1 + $0x2b8] sm:$0xff]   ;;  %v7926_v11 = vld [vmem:[%s10325_s1 + $0x3f0] sm:$0xff]  }
  0x28   :  { %7048 = vmatpush3.bf16.msra.mxu0 %v7835_v44  ;;  %v16_v44 = vld [vmem:[%s10326_s0 + $0x20] sm:$0xff] }
  0x29   :  { %7070 = vmatpush3.bf16.msra.mxu1 %v7836_v45  ;;  %7049 = vmatprep.subr.bf16.mxu0 %v7837_v46  ;;  %v17_v45 = vld [vmem:[%s10326_s0 + $0x28] sm:$0xff]  ;;  %v6361_v46 = vcombine.low %v16_v44, %v16_v44 }
  0x2a   :  { %7071 = vmatprep.subr.bf16.mxu1 %v7838_v47  ;;  %v6362_v47 = vcombine.high %v16_v44, %v16_v44  ;;  %v7957_v44 = vld [vmem:[%s10325_s1 + $0x468] sm:$0xff]  }
  0x2c   :  { %7050 = vmatpush3.bf16.msra.mxu0 %v7839_v48  ;;  %v6363_v48 = vcombine.low %v17_v45, %v17_v45 }
  0x2d   :  { %7072 = vmatpush3.bf16.msra.mxu1 %v7840_v49  ;;  %7051 = vmatprep.subr.bf16.mxu0 %v7841_v50  ;;  %v6364_v49 = vcombine.high %v17_v45, %v17_v45  ;;  %v7901_v50 = vld [vmem:[%s10325_s1 + $0x340] sm:$0xff]   ;;  %v7958_v45 = vld [vmem:[%s10325_s1 + $0x4e8] sm:$0xff]  }
  0x2e   :  { %7073 = vmatprep.subr.bf16.mxu1 %v7842_v51  ;;  %v7902_v51 = vld [vmem:[%s10325_s1 + $0x3c0] sm:$0xff]  }
  0x30   :  { %7052 = vmatpush3.bf16.msra.mxu0 %v7843_v52  ;;  %v7903_v52 = vld [vmem:[%s10325_s1 + $0x300] sm:$0xff]  }
  0x31   :  { %7074 = vmatpush3.bf16.msra.mxu1 %v7844_v53  ;;  %7053 = vmatprep.subr.bf16.mxu0 %v7845_v54  ;;  %v7904_v53 = vld [vmem:[%s10325_s1 + $0x380] sm:$0xff]   ;;  %v7905_v54 = vld [vmem:[%s10325_s1 + $0x348] sm:$0xff]  }
  0x32   :  { %7075 = vmatprep.subr.bf16.mxu1 %v7846_v55  ;;  %v7906_v55 = vld [vmem:[%s10325_s1 + $0x3c8] sm:$0xff]  }
  0x34   :  { %7054 = vmatpush3.bf16.msra.mxu0 %v7847_v56  ;;  %v7907_v56 = vld [vmem:[%s10325_s1 + $0x308] sm:$0xff]  }
  0x35   :  { %7076 = vmatpush3.bf16.msra.mxu1 %v7848_v57  ;;  %7055 = vmatprep.subr.bf16.mxu0 %v7849_v58  ;;  %v7908_v57 = vld [vmem:[%s10325_s1 + $0x388] sm:$0xff]   ;;  %v7909_v58 = vld [vmem:[%s10325_s1 + $0x350] sm:$0xff]  }
  0x36   :  { %7077 = vmatprep.subr.bf16.mxu1 %v7850_v59  ;;  %v7910_v59 = vld [vmem:[%s10325_s1 + $0x3d0] sm:$0xff]  }
  0x38   :  { %7056 = vmatpush3.bf16.msra.mxu0 %v7851_v60  ;;  %v7911_v60 = vld [vmem:[%s10325_s1 + $0x310] sm:$0xff]  }
  0x39   :  { %7078 = vmatpush3.bf16.msra.mxu1 %v7852_v61  ;;  %7057 = vmatprep.subr.bf16.mxu0 %v7853_v62  ;;  %v7912_v61 = vld [vmem:[%s10325_s1 + $0x390] sm:$0xff]   ;;  %v7913_v62 = vld [vmem:[%s10325_s1 + $0x358] sm:$0xff]  }
  0x3a   :  { %7079 = vmatprep.subr.bf16.mxu1 %v7854_v63  ;;  %v7914_v63 = vld [vmem:[%s10325_s1 + $0x3d8] sm:$0xff]  }
  0x3c   :  { %7058 = vmatpush3.bf16.msra.mxu0 %v7855_v0  ;;  %v7915_v0 = vld [vmem:[%s10325_s1 + $0x318] sm:$0xff]  }
  0x3d   :  { %7080 = vmatpush3.bf16.msra.mxu1 %v7856_v1  ;;  %7059 = vmatprep.subr.bf16.mxu0 %v7857_v2  ;;  %v7916_v1 = vld [vmem:[%s10325_s1 + $0x398] sm:$0xff]   ;;  %v7917_v2 = vld [vmem:[%s10325_s1 + $0x360] sm:$0xff]  }
  0x3e   :  { %7081 = vmatprep.subr.bf16.mxu1 %v7858_v3  ;;  %v7918_v3 = vld [vmem:[%s10325_s1 + $0x3e0] sm:$0xff]  }
  0x40   :  { %7060 = vmatpush3.bf16.msra.mxu0 %v7859_v4  ;;  %v7919_v4 = vld [vmem:[%s10325_s1 + $0x320] sm:$0xff]  }
  0x41   :  { %7082 = vmatpush3.bf16.msra.mxu1 %v7860_v5  ;;  %7089 = vmatprep.subr.bf16.mxu0 %v7865_v12  ;;  %v7920_v5 = vld [vmem:[%s10325_s1 + $0x3a0] sm:$0xff]   ;;  %v7927_v12 = vld [vmem:[%s10325_s1 + $0x330] sm:$0xff]  }
  0x42   :  { %7111 = vmatprep.subr.bf16.mxu1 %v7866_v13  ;;  %v7928_v13 = vld [vmem:[%s10325_s1 + $0x3b0] sm:$0xff]  }
  0x43   :  { %5021 = vmatmul.mubr.bf16.vlgmr.msra.gmra.mrb[4].mxu0 %v6357_v7  ;;  %v7922_v7 = vld [vmem:[%s10325_s1 + $0x3e8] sm:$0xff]  }
  0x44   :  { %5061 = vmatmul.mubr.bf16.vlgmr.msra.gmra.mrb[4].mxu1 %v6359_v10  ;;  %7090 = vmatpush3.bf16.msra.mxu0 %v7867_v14  ;;  %v7925_v10 = vld [vmem:[%s10325_s1 + $0x370] sm:$0xff]   ;;  %v7929_v14 = vld [vmem:[%s10325_s1 + $0x378] sm:$0xff]  }
  0x45   :  { %7112 = vmatpush3.bf16.msra.mxu1 %v7868_v15  ;;  %7091 = vmatprep.subr.bf16.mxu0 %v7869_v16  ;;  %v7930_v15 = vld [vmem:[%s10325_s1 + $0x3f8] sm:$0xff]  }
  0x46   :  { %7113 = vmatprep.subr.bf16.mxu1 %v7870_v17  ;;  %5100 = vmatprep.mubr.bf16.mxu0 %v6362_v47  ;;  %v7931_v16 = vld [vmem:[%s10325_s1 + $0x338] sm:$0xff]   ;;  %v7960_v47 = vld [vmem:[%s10325_s1 + $0x4a8] sm:$0xff]  }
  0x47   :  { %5140 = vmatprep.mubr.bf16.mxu1 %v6364_v49  ;;  %v7932_v17 = vld [vmem:[%s10325_s1 + $0x3b8] sm:$0xff]   ;;  %v7962_v49 = vld [vmem:[%s10325_s1 + $0x4f0] sm:$0xff]  }
  0x48   :  { %7092 = vmatpush3.bf16.msra.mxu0 %v7871_v18  ;;  %v18_v18 = vld [vmem:[%s10326_s0 + $0x30] sm:$0xff] }
  0x49   :  { %7114 = vmatpush3.bf16.msra.mxu1 %v7872_v19  ;;  %7093 = vmatprep.subr.bf16.mxu0 %v7873_v20  ;;  %v19_v19 = vld [vmem:[%s10326_s0 + $0x38] sm:$0xff]  ;;  %v6365_v20 = vcombine.low %v18_v18, %v18_v18 }
  0x4a   :  { %7115 = vmatprep.subr.bf16.mxu1 %v7874_v21  ;;  %v6366_v21 = vcombine.high %v18_v18, %v18_v18  ;;  %v7993_v18 = vld [vmem:[%s10325_s1 + $0x568] sm:$0xff]  }
  0x4c   :  { %7094 = vmatpush3.bf16.msra.mxu0 %v7875_v22  ;;  %v6367_v22 = vcombine.low %v19_v19, %v19_v19 }
  0x4d   :  { %7116 = vmatpush3.bf16.msra.mxu1 %v7876_v23  ;;  %7095 = vmatprep.subr.bf16.mxu0 %v7877_v24  ;;  %v7937_v23 = vld [vmem:[%s10325_s1 + $0x440] sm:$0xff]   ;;  %v6368_v24 = vcombine.high %v19_v19, %v19_v19  ;;  %v7994_v19 = vld [vmem:[%s10325_s1 + $0x5e8] sm:$0xff]  }
  0x4e   :  { %7117 = vmatprep.subr.bf16.mxu1 %v7878_v25  ;;  %v7938_v25 = vld [vmem:[%s10325_s1 + $0x4c0] sm:$0xff]  }
  0x50   :  { %7096 = vmatpush3.bf16.msra.mxu0 %v7879_v26  ;;  %v7939_v26 = vld [vmem:[%s10325_s1 + $0x400] sm:$0xff]  }
  0x51   :  { %7118 = vmatpush3.bf16.msra.mxu1 %v7880_v27  ;;  %7097 = vmatprep.subr.bf16.mxu0 %v7881_v28  ;;  %v7940_v27 = vld [vmem:[%s10325_s1 + $0x480] sm:$0xff]   ;;  %v7941_v28 = vld [vmem:[%s10325_s1 + $0x448] sm:$0xff]  }
  0x52   :  { %7119 = vmatprep.subr.bf16.mxu1 %v7882_v29  ;;  %v7942_v29 = vld [vmem:[%s10325_s1 + $0x4c8] sm:$0xff]  }
  0x54   :  { %7098 = vmatpush3.bf16.msra.mxu0 %v7883_v30  ;;  %v7943_v30 = vld [vmem:[%s10325_s1 + $0x408] sm:$0xff]  }
  0x55   :  { %7120 = vmatpush3.bf16.msra.mxu1 %v7884_v31  ;;  %7099 = vmatprep.subr.bf16.mxu0 %v7885_v32  ;;  %v7944_v31 = vld [vmem:[%s10325_s1 + $0x488] sm:$0xff]   ;;  %v7945_v32 = vld [vmem:[%s10325_s1 + $0x450] sm:$0xff]  }
  0x56   :  { %7121 = vmatprep.subr.bf16.mxu1 %v7886_v33  ;;  %v7946_v33 = vld [vmem:[%s10325_s1 + $0x4d0] sm:$0xff]  }
  0x58   :  { %7100 = vmatpush3.bf16.msra.mxu0 %v7887_v34  ;;  %v7947_v34 = vld [vmem:[%s10325_s1 + $0x410] sm:$0xff]  }
  0x59   :  { %7122 = vmatpush3.bf16.msra.mxu1 %v7888_v35  ;;  %7101 = vmatprep.subr.bf16.mxu0 %v7889_v36  ;;  %v7948_v35 = vld [vmem:[%s10325_s1 + $0x490] sm:$0xff]   ;;  %v7949_v36 = vld [vmem:[%s10325_s1 + $0x458] sm:$0xff]  }
  0x5a   :  { %7123 = vmatprep.subr.bf16.mxu1 %v7890_v37  ;;  %v7950_v37 = vld [vmem:[%s10325_s1 + $0x4d8] sm:$0xff]  }
  0x5c   :  { %7102 = vmatpush3.bf16.msra.mxu0 %v7891_v38  ;;  %v7951_v38 = vld [vmem:[%s10325_s1 + $0x418] sm:$0xff]  }
  0x5d   :  { %7124 = vmatpush3.bf16.msra.mxu1 %v7892_v39  ;;  %7103 = vmatprep.subr.bf16.mxu0 %v7893_v40  ;;  %v7952_v39 = vld [vmem:[%s10325_s1 + $0x498] sm:$0xff]   ;;  %v7953_v40 = vld [vmem:[%s10325_s1 + $0x460] sm:$0xff]  }
  0x5e   :  { %7125 = vmatprep.subr.bf16.mxu1 %v7894_v41  ;;  %v7954_v41 = vld [vmem:[%s10325_s1 + $0x4e0] sm:$0xff]  }
  0x60   :  { %7104 = vmatpush3.bf16.msra.mxu0 %v7895_v42  ;;  %v7955_v42 = vld [vmem:[%s10325_s1 + $0x420] sm:$0xff]  }
  0x61   :  { %7126 = vmatpush3.bf16.msra.mxu1 %v7896_v43  ;;  %7133 = vmatprep.subr.bf16.mxu0 %v7901_v50  ;;  %v7956_v43 = vld [vmem:[%s10325_s1 + $0x4a0] sm:$0xff]   ;;  %v7963_v50 = vld [vmem:[%s10325_s1 + $0x430] sm:$0xff]  }
  0x62   :  { %7155 = vmatprep.subr.bf16.mxu1 %v7902_v51  ;;  %v7964_v51 = vld [vmem:[%s10325_s1 + $0x4b0] sm:$0xff]  }
  0x63   :  { %5101 = vmatmul.mubr.bf16.vlgmr.msra.gmra.mrb[8].mxu0 %v6361_v46  ;;  %v7959_v46 = vld [vmem:[%s10325_s1 + $0x428] sm:$0xff]  }
  0x64   :  { %5141 = vmatmul.mubr.bf16.vlgmr.msra.gmra.mrb[8].mxu1 %v6363_v48  ;;  %7134 = vmatpush3.bf16.msra.mxu0 %v7903_v52  ;;  %v7961_v48 = vld [vmem:[%s10325_s1 + $0x470] sm:$0xff]   ;;  %v7965_v52 = vld [vmem:[%s10325_s1 + $0x478] sm:$0xff]  }
  0x65   :  { %7156 = vmatpush3.bf16.msra.mxu1 %v7904_v53  ;;  %7135 = vmatprep.subr.bf16.mxu0 %v7905_v54  ;;  %v7966_v53 = vld [vmem:[%s10325_s1 + $0x4f8] sm:$0xff]  }
  0x66   :  { %7157 = vmatprep.subr.bf16.mxu1 %v7906_v55  ;;  %5180 = vmatprep.mubr.bf16.mxu0 %v6366_v21  ;;  %v7967_v54 = vld [vmem:[%s10325_s1 + $0x438] sm:$0xff]   ;;  %v7996_v21 = vld [vmem:[%s10325_s1 + $0x5a8] sm:$0xff]  }
  0x67   :  { %5220 = vmatprep.mubr.bf16.mxu1 %v6368_v24  ;;  %v7968_v55 = vld [vmem:[%s10325_s1 + $0x4b8] sm:$0xff]   ;;  %v7999_v24 = vld [vmem:[%s10325_s1 + $0x530] sm:$0xff]  }
  0x68   :  { %7136 = vmatpush3.bf16.msra.mxu0 %v7907_v56  ;;  %v20_v56 = vld [vmem:[%s10326_s0 + $0x40] sm:$0xff] }
  0x69   :  { %7158 = vmatpush3.bf16.msra.mxu1 %v7908_v57  ;;  %7137 = vmatprep.subr.bf16.mxu0 %v7909_v58  ;;  %v6369_v57 = vcombine.low %v20_v56, %v20_v56  ;;  %v6370_v58 = vcombine.high %v20_v56, %v20_v56  ;;  %v8029_v56 = vld [vmem:[%s10325_s1 + $0x668] sm:$0xff]  }
  0x6a   :  { %7159 = vmatprep.subr.bf16.mxu1 %v7910_v59  ;;  %v21_v59 = vld [vmem:[%s10326_s0 + $0x48] sm:$0xff] }
  0x6c   :  { %7138 = vmatpush3.bf16.msra.mxu0 %v7911_v60  ;;  %v6371_v60 = vcombine.low %v21_v59, %v21_v59 }
  0x6d   :  { %7160 = vmatpush3.bf16.msra.mxu1 %v7912_v61  ;;  %7139 = vmatprep.subr.bf16.mxu0 %v7913_v62  ;;  %v6372_v61 = vcombine.high %v21_v59, %v21_v59  ;;  %v7973_v62 = vld [vmem:[%s10325_s1 + $0x540] sm:$0xff]   ;;  %v8032_v59 = vld [vmem:[%s10325_s1 + $0x6a8] sm:$0xff]  }
  0x6e   :  { %7161 = vmatprep.subr.bf16.mxu1 %v7914_v63  ;;  %v7974_v63 = vld [vmem:[%s10325_s1 + $0x5c0] sm:$0xff]  }
  0x70   :  { %7140 = vmatpush3.bf16.msra.mxu0 %v7915_v0  ;;  %v7975_v0 = vld [vmem:[%s10325_s1 + $0x500] sm:$0xff]  }
  0x71   :  { %7162 = vmatpush3.bf16.msra.mxu1 %v7916_v1  ;;  %7141 = vmatprep.subr.bf16.mxu0 %v7917_v2  ;;  %v7976_v1 = vld [vmem:[%s10325_s1 + $0x580] sm:$0xff]   ;;  %v7977_v2 = vld [vmem:[%s10325_s1 + $0x548] sm:$0xff]  }
  0x72   :  { %7163 = vmatprep.subr.bf16.mxu1 %v7918_v3  ;;  %v7978_v3 = vld [vmem:[%s10325_s1 + $0x5c8] sm:$0xff]  }
  0x74   :  { %7142 = vmatpush3.bf16.msra.mxu0 %v7919_v4  ;;  %v7979_v4 = vld [vmem:[%s10325_s1 + $0x508] sm:$0xff]  }
  0x75   :  { %7164 = vmatpush3.bf16.msra.mxu1 %v7920_v5  ;;  %7143 = vmatprep.subr.bf16.mxu0 %v7921_v6  ;;  %v7980_v5 = vld [vmem:[%s10325_s1 + $0x588] sm:$0xff]   ;;  %v7981_v6 = vld [vmem:[%s10325_s1 + $0x550] sm:$0xff]  }
  0x76   :  { %7165 = vmatprep.subr.bf16.mxu1 %v7922_v7  ;;  %v7982_v7 = vld [vmem:[%s10325_s1 + $0x5d0] sm:$0xff]  }
  0x78   :  { %7144 = vmatpush3.bf16.msra.mxu0 %v7923_v8  ;;  %v7983_v8 = vld [vmem:[%s10325_s1 + $0x510] sm:$0xff]  }
  0x79   :  { %7166 = vmatpush3.bf16.msra.mxu1 %v7924_v9  ;;  %7145 = vmatprep.subr.bf16.mxu0 %v7925_v10  ;;  %v7984_v9 = vld [vmem:[%s10325_s1 + $0x590] sm:$0xff]   ;;  %v7985_v10 = vld [vmem:[%s10325_s1 + $0x558] sm:$0xff]  }
  0x7a   :  { %7167 = vmatprep.subr.bf16.mxu1 %v7926_v11  ;;  %v7986_v11 = vld [vmem:[%s10325_s1 + $0x5d8] sm:$0xff]  }
  0x7c   :  { %7146 = vmatpush3.bf16.msra.mxu0 %v7927_v12  ;;  %v7987_v12 = vld [vmem:[%s10325_s1 + $0x518] sm:$0xff]  }
  0x7d   :  { %7168 = vmatpush3.bf16.msra.mxu1 %v7928_v13  ;;  %7147 = vmatprep.subr.bf16.mxu0 %v7929_v14  ;;  %v7988_v13 = vld [vmem:[%s10325_s1 + $0x598] sm:$0xff]   ;;  %v7989_v14 = vld [vmem:[%s10325_s1 + $0x560] sm:$0xff]  }
  0x7e   :  { %7169 = vmatprep.subr.bf16.mxu1 %v7930_v15  ;;  %v7990_v15 = vld [vmem:[%s10325_s1 + $0x5e0] sm:$0xff]  }
  0x80   :  { %7148 = vmatpush3.bf16.msra.mxu0 %v7931_v16  ;;  %v7991_v16 = vld [vmem:[%s10325_s1 + $0x520] sm:$0xff]  }
  0x81   :  { %7170 = vmatpush3.bf16.msra.mxu1 %v7932_v17  ;;  %7177 = vmatprep.subr.bf16.mxu0 %v7937_v23  ;;  %v7992_v17 = vld [vmem:[%s10325_s1 + $0x5a0] sm:$0xff]   ;;  %v7998_v23 = vld [vmem:[%s10325_s1 + $0x5f0] sm:$0xff]  }
  0x82   :  { %7199 = vmatprep.subr.bf16.mxu1 %v7938_v25  ;;  %v8000_v25 = vld [vmem:[%s10325_s1 + $0x5b0] sm:$0xff]  }
  0x83   :  { %5181 = vmatmul.mubr.bf16.vlgmr.msra.gmra.mrb[12].mxu0 %v6365_v20  ;;  %v7995_v20 = vld [vmem:[%s10325_s1 + $0x528] sm:$0xff]  }
  0x84   :  { %5221 = vmatmul.mubr.bf16.vlgmr.msra.gmra.mrb[12].mxu1 %v6367_v22  ;;  %7178 = vmatpush3.bf16.msra.mxu0 %v7939_v26  ;;  %v7997_v22 = vld [vmem:[%s10325_s1 + $0x570] sm:$0xff]   ;;  %v8001_v26 = vld [vmem:[%s10325_s1 + $0x578] sm:$0xff]  }
  0x85   :  { %7200 = vmatpush3.bf16.msra.mxu1 %v7940_v27  ;;  %7179 = vmatprep.subr.bf16.mxu0 %v7941_v28  ;;  %v8002_v27 = vld [vmem:[%s10325_s1 + $0x5f8] sm:$0xff]  }
  0x86   :  { %7201 = vmatprep.subr.bf16.mxu1 %v7942_v29  ;;  %5260 = vmatprep.mubr.bf16.mxu0 %v6370_v58  ;;  %v8003_v28 = vld [vmem:[%s10325_s1 + $0x538] sm:$0xff]   ;;  %v8031_v58 = vld [vmem:[%s10325_s1 + $0x628] sm:$0xff]  }
  0x87   :  { %5300 = vmatprep.mubr.bf16.mxu1 %v6372_v61  ;;  %v8004_v29 = vld [vmem:[%s10325_s1 + $0x5b8] sm:$0xff]   ;;  %v8034_v61 = vld [vmem:[%s10325_s1 + $0x6f0] sm:$0xff]  }
  0x88   :  { %7180 = vmatpush3.bf16.msra.mxu0 %v7943_v30  ;;  %v22_v30 = vld [vmem:[%s10326_s0 + $0x50] sm:$0xff] }
  0x89   :  { %7202 = vmatpush3.bf16.msra.mxu1 %v7944_v31  ;;  %7181 = vmatprep.subr.bf16.mxu0 %v7945_v32  ;;  %v23_v31 = vld [vmem:[%s10326_s0 + $0x58] sm:$0xff]  ;;  %v6373_v32 = vcombine.low %v22_v30, %v22_v30 }
  0x8a   :  { %7203 = vmatprep.subr.bf16.mxu1 %v7946_v33  ;;  %v6374_v33 = vcombine.high %v22_v30, %v22_v30  ;;  %v8064_v30 = vld [vmem:[%s10325_s1 + $0x7a0] sm:$0xff]  }
  0x8c   :  { %7182 = vmatpush3.bf16.msra.mxu0 %v7947_v34  ;;  %v6375_v34 = vcombine.low %v23_v31, %v23_v31 }
  0x8d   :  { %7204 = vmatpush3.bf16.msra.mxu1 %v7948_v35  ;;  %7183 = vmatprep.subr.bf16.mxu0 %v7949_v36  ;;  %v6376_v35 = vcombine.high %v23_v31, %v23_v31  ;;  %v8009_v36 = vld [vmem:[%s10325_s1 + $0x640] sm:$0xff]  }
  0x8e   :  { %7205 = vmatprep.subr.bf16.mxu1 %v7950_v37  ;;  %v8010_v37 = vld [vmem:[%s10325_s1 + $0x6c0] sm:$0xff]  }
  0x90   :  { %7184 = vmatpush3.bf16.msra.mxu0 %v7951_v38  ;;  %v8011_v38 = vld [vmem:[%s10325_s1 + $0x600] sm:$0xff]  }
  0x91   :  { %7206 = vmatpush3.bf16.msra.mxu1 %v7952_v39  ;;  %7185 = vmatprep.subr.bf16.mxu0 %v7953_v40  ;;  %v8012_v39 = vld [vmem:[%s10325_s1 + $0x680] sm:$0xff]   ;;  %v8013_v40 = vld [vmem:[%s10325_s1 + $0x648] sm:$0xff]  }
  0x92   :  { %7207 = vmatprep.subr.bf16.mxu1 %v7954_v41  ;;  %v8014_v41 = vld [vmem:[%s10325_s1 + $0x6c8] sm:$0xff]  }
  0x94   :  { %7186 = vmatpush3.bf16.msra.mxu0 %v7955_v42  ;;  %v8015_v42 = vld [vmem:[%s10325_s1 + $0x608] sm:$0xff]  }
  0x95   :  { %7208 = vmatpush3.bf16.msra.mxu1 %v7956_v43  ;;  %7187 = vmatprep.subr.bf16.mxu0 %v7957_v44  ;;  %v8016_v43 = vld [vmem:[%s10325_s1 + $0x688] sm:$0xff]   ;;  %v8017_v44 = vld [vmem:[%s10325_s1 + $0x650] sm:$0xff]  }
  0x96   :  { %7209 = vmatprep.subr.bf16.mxu1 %v7958_v45  ;;  %v8018_v45 = vld [vmem:[%s10325_s1 + $0x6d0] sm:$0xff]  }
  0x98   :  { %7188 = vmatpush3.bf16.msra.mxu0 %v7959_v46  ;;  %v8019_v46 = vld [vmem:[%s10325_s1 + $0x610] sm:$0xff]  }
  0x99   :  { %7210 = vmatpush3.bf16.msra.mxu1 %v7960_v47  ;;  %7189 = vmatprep.subr.bf16.mxu0 %v7961_v48  ;;  %v8020_v47 = vld [vmem:[%s10325_s1 + $0x690] sm:$0xff]   ;;  %v8021_v48 = vld [vmem:[%s10325_s1 + $0x658] sm:$0xff]  }
  0x9a   :  { %7211 = vmatprep.subr.bf16.mxu1 %v7962_v49  ;;  %v8022_v49 = vld [vmem:[%s10325_s1 + $0x6d8] sm:$0xff]  }
  0x9c   :  { %7190 = vmatpush3.bf16.msra.mxu0 %v7963_v50  ;;  %v8023_v50 = vld [vmem:[%s10325_s1 + $0x618] sm:$0xff]  }
  0x9d   :  { %7212 = vmatpush3.bf16.msra.mxu1 %v7964_v51  ;;  %7191 = vmatprep.subr.bf16.mxu0 %v7965_v52  ;;  %v8024_v51 = vld [vmem:[%s10325_s1 + $0x698] sm:$0xff]   ;;  %v8025_v52 = vld [vmem:[%s10325_s1 + $0x660] sm:$0xff]  }
  0x9e   :  { %7213 = vmatprep.subr.bf16.mxu1 %v7966_v53  ;;  %v8026_v53 = vld [vmem:[%s10325_s1 + $0x6e0] sm:$0xff]  }
  0xa0   :  { %7192 = vmatpush3.bf16.msra.mxu0 %v7967_v54  ;;  %v8027_v54 = vld [vmem:[%s10325_s1 + $0x620] sm:$0xff]  }
  0xa1   :  { %7214 = vmatpush3.bf16.msra.mxu1 %v7968_v55  ;;  %7221 = vmatprep.subr.bf16.mxu0 %v7973_v62  ;;  %v8028_v55 = vld [vmem:[%s10325_s1 + $0x6a0] sm:$0xff]   ;;  %v8035_v62 = vld [vmem:[%s10325_s1 + $0x630] sm:$0xff]  }
  0xa2   :  { %7243 = vmatprep.subr.bf16.mxu1 %v7974_v63  ;;  %v8036_v63 = vld [vmem:[%s10325_s1 + $0x6b0] sm:$0xff]  }
  0xa3   :  { %5261 = vmatmul.mubr.bf16.vlgmr.msra.gmra.mrb[16].mxu0 %v6369_v57  ;;  %v8030_v57 = vld [vmem:[%s10325_s1 + $0x6e8] sm:$0xff]  }
  0xa4   :  { %5301 = vmatmul.mubr.bf16.vlgmr.msra.gmra.mrb[16].mxu1 %v6371_v60  ;;  %7222 = vmatpush3.bf16.msra.mxu0 %v7975_v0  ;;  %v8033_v60 = vld [vmem:[%s10325_s1 + $0x670] sm:$0xff]   ;;  %v8037_v0 = vld [vmem:[%s10325_s1 + $0x678] sm:$0xff]  }
  0xa5   :  { %7244 = vmatpush3.bf16.msra.mxu1 %v7976_v1  ;;  %7223 = vmatprep.subr.bf16.mxu0 %v7977_v2  ;;  %v8038_v1 = vld [vmem:[%s10325_s1 + $0x6f8] sm:$0xff]  }
  0xa6   :  { %7245 = vmatprep.subr.bf16.mxu1 %v7978_v3  ;;  %5340 = vmatprep.mubr.bf16.mxu0 %v6374_v33  ;;  %v8039_v2 = vld [vmem:[%s10325_s1 + $0x638] sm:$0xff]   ;;  %v8065_v33 = vld [vmem:[%s10325_s1 + $0x768] sm:$0xff]  }
  0xa7   :  { %5380 = vmatprep.mubr.bf16.mxu1 %v6376_v35  ;;  %v8040_v3 = vld [vmem:[%s10325_s1 + $0x6b8] sm:$0xff]  }
  0xa8   :  { %7224 = vmatpush3.bf16.msra.mxu0 %v7979_v4  ;;  %v24_v4 = vld [vmem:[%s10326_s0 + $0x60] sm:$0xff] }
  0xa9   :  { %7246 = vmatpush3.bf16.msra.mxu1 %v7980_v5  ;;  %7225 = vmatprep.subr.bf16.mxu0 %v7981_v6  ;;  %v25_v5 = vld [vmem:[%s10326_s0 + $0x68] sm:$0xff]  ;;  %v6377_v6 = vcombine.low %v24_v4, %v24_v4 }
  0xaa   :  { %7247 = vmatprep.subr.bf16.mxu1 %v7982_v7  ;;  %v6378_v7 = vcombine.high %v24_v4, %v24_v4  ;;  %v8090_v4 = vld [vmem:[%s10325_s1 + $0x8d0] sm:$0xff]  }
  0xac   :  { %7226 = vmatpush3.bf16.msra.mxu0 %v7983_v8  ;;  %v6379_v8 = vcombine.low %v25_v5, %v25_v5 }
  0xad   :  { %7248 = vmatpush3.bf16.msra.mxu1 %v7984_v9  ;;  %7227 = vmatprep.subr.bf16.mxu0 %v7985_v10  ;;  %v8045_v9 = vld [vmem:[%s10325_s1 + $0x740] sm:$0xff]   ;;  %v6380_v10 = vcombine.high %v25_v5, %v25_v5  ;;  %v8091_v5 = vld [vmem:[%s10325_s1 + $0x810] sm:$0xff]  }
  0xae   :  { %7249 = vmatprep.subr.bf16.mxu1 %v7986_v11  ;;  %v8046_v11 = vld [vmem:[%s10325_s1 + $0x7c0] sm:$0xff]  }
  0xb0   :  { %7228 = vmatpush3.bf16.msra.mxu0 %v7987_v12  ;;  %v8047_v12 = vld [vmem:[%s10325_s1 + $0x700] sm:$0xff]  }
  0xb1   :  { %7250 = vmatpush3.bf16.msra.mxu1 %v7988_v13  ;;  %7229 = vmatprep.subr.bf16.mxu0 %v7989_v14  ;;  %v8048_v13 = vld [vmem:[%s10325_s1 + $0x780] sm:$0xff]   ;;  %v8049_v14 = vld [vmem:[%s10325_s1 + $0x748] sm:$0xff]  }
  0xb2   :  { %7251 = vmatprep.subr.bf16.mxu1 %v7990_v15  ;;  %v8050_v15 = vld [vmem:[%s10325_s1 + $0x7c8] sm:$0xff]  }
  0xb4   :  { %7230 = vmatpush3.bf16.msra.mxu0 %v7991_v16  ;;  %v8051_v16 = vld [vmem:[%s10325_s1 + $0x708] sm:$0xff]  }
  0xb5   :  { %7252 = vmatpush3.bf16.msra.mxu1 %v7992_v17  ;;  %7231 = vmatprep.subr.bf16.mxu0 %v7993_v18  ;;  %v8052_v17 = vld [vmem:[%s10325_s1 + $0x788] sm:$0xff]   ;;  %v8053_v18 = vld [vmem:[%s10325_s1 + $0x750] sm:$0xff]  }
  0xb6   :  { %7253 = vmatprep.subr.bf16.mxu1 %v7994_v19  ;;  %v8054_v19 = vld [vmem:[%s10325_s1 + $0x7d0] sm:$0xff]  }
  0xb8   :  { %7232 = vmatpush3.bf16.msra.mxu0 %v7995_v20  ;;  %v8055_v20 = vld [vmem:[%s10325_s1 + $0x710] sm:$0xff]  }
  0xb9   :  { %7254 = vmatpush3.bf16.msra.mxu1 %v7996_v21  ;;  %7233 = vmatprep.subr.bf16.mxu0 %v7997_v22  ;;  %v8056_v21 = vld [vmem:[%s10325_s1 + $0x790] sm:$0xff]   ;;  %v8057_v22 = vld [vmem:[%s10325_s1 + $0x758] sm:$0xff]  }
  0xba   :  { %7255 = vmatprep.subr.bf16.mxu1 %v7998_v23  ;;  %v8058_v23 = vld [vmem:[%s10325_s1 + $0x7d8] sm:$0xff]  }
  0xbc   :  { %7234 = vmatpush3.bf16.msra.mxu0 %v7999_v24  ;;  %v8059_v24 = vld [vmem:[%s10325_s1 + $0x718] sm:$0xff]  }
  0xbd   :  { %7256 = vmatpush3.bf16.msra.mxu1 %v8000_v25  ;;  %7235 = vmatprep.subr.bf16.mxu0 %v8001_v26  ;;  %v8060_v25 = vld [vmem:[%s10325_s1 + $0x798] sm:$0xff]   ;;  %v8061_v26 = vld [vmem:[%s10325_s1 + $0x760] sm:$0xff]  }
  0xbe   :  { %7257 = vmatprep.subr.bf16.mxu1 %v8002_v27  ;;  %v8062_v27 = vld [vmem:[%s10325_s1 + $0x7e0] sm:$0xff]  }
  0xc0   :  { %7236 = vmatpush3.bf16.msra.mxu0 %v8003_v28  ;;  %v8063_v28 = vld [vmem:[%s10325_s1 + $0x720] sm:$0xff]  }
  0xc1   :  { %7258 = vmatpush3.bf16.msra.mxu1 %v8004_v29  ;;  %7265 = vmatprep.subr.bf16.mxu0 %v8009_v36  ;;  %v8066_v36 = vld [vmem:[%s10325_s1 + $0x7e8] sm:$0xff]  }
  0xc2   :  { %7287 = vmatprep.subr.bf16.mxu1 %v8010_v37 }
  0xc3   :  { %5341 = vmatmul.mubr.bf16.vlgmr.msra.gmra.mrb[20].mxu0 %v6373_v32 }
  0xc4   :  { %5381 = vmatmul.mubr.bf16.vlgmr.msra.gmra.mrb[20].mxu1 %v6375_v34  ;;  %7266 = vmatpush3.bf16.msra.mxu0 %v8011_v38 }
  0xc5   :  { %7288 = vmatpush3.bf16.msra.mxu1 %v8012_v39  ;;  %7267 = vmatprep.subr.bf16.mxu0 %v8013_v40  ;;  %v8067_v40 = vld [vmem:[%s10325_s1 + $0x728] sm:$0xff]  }
  0xc6   :  { %7289 = vmatprep.subr.bf16.mxu1 %v8014_v41  ;;  %5420 = vmatprep.mubr.bf16.mxu0 %v6378_v7  ;;  %v8093_v7 = vld [vmem:[%s10325_s1 + $0x858] sm:$0xff]  }
  0xc7   :  { %5460 = vmatprep.mubr.bf16.mxu1 %v6380_v10  ;;  %v8096_v10 = vld [vmem:[%s10325_s1 + $0x898] sm:$0xff]  }
  0xc8   :  { %7268 = vmatpush3.bf16.msra.mxu0 %v8015_v42 }
  0xc9   :  { %7290 = vmatpush3.bf16.msra.mxu1 %v8016_v43  ;;  %7269 = vmatprep.subr.bf16.mxu0 %v8017_v44  ;;  %v8068_v43 = vld [vmem:[%s10325_s1 + $0x7a8] sm:$0xff]  }
  0xca   :  { %7291 = vmatprep.subr.bf16.mxu1 %v8018_v45  ;;  %v8069_v45 = vld [vmem:[%s10325_s1 + $0x770] sm:$0xff]  }
  0xcc   :  { %7270 = vmatpush3.bf16.msra.mxu0 %v8019_v46  ;;  %v8070_v46 = vld [vmem:[%s10325_s1 + $0x7f0] sm:$0xff]  }
  0xcd   :  { %7292 = vmatpush3.bf16.msra.mxu1 %v8020_v47  ;;  %7271 = vmatprep.subr.bf16.mxu0 %v8021_v48  ;;  %v8071_v47 = vld [vmem:[%s10325_s1 + $0x730] sm:$0xff]  }
  0xce   :  { %7293 = vmatprep.subr.bf16.mxu1 %v8022_v49  ;;  %v8072_v48 = vld [vmem:[%s10325_s1 + $0x7b0] sm:$0xff]   ;;  %v8073_v49 = vld [vmem:[%s10325_s1 + $0x778] sm:$0xff]  }
  0xd0   :  { %7272 = vmatpush3.bf16.msra.mxu0 %v8023_v50  ;;  %v8074_v50 = vld [vmem:[%s10325_s1 + $0x7f8] sm:$0xff]  }
  0xd1   :  { %7294 = vmatpush3.bf16.msra.mxu1 %v8024_v51  ;;  %7273 = vmatprep.subr.bf16.mxu0 %v8025_v52  ;;  %v8075_v51 = vld [vmem:[%s10325_s1 + $0x738] sm:$0xff]  }
  0xd2   :  { %7295 = vmatprep.subr.bf16.mxu1 %v8026_v53  ;;  %v8076_v52 = vld [vmem:[%s10325_s1 + $0x7b8] sm:$0xff]   ;;  %v26_v53 = vld [vmem:[%s10326_s0 + $0x70] sm:$0xff] }
  0xd4   :  { %7274 = vmatpush3.bf16.msra.mxu0 %v8027_v54  ;;  %v27_v54 = vld [vmem:[%s10326_s0 + $0x78] sm:$0xff] }
  0xd5   :  { %7296 = vmatpush3.bf16.msra.mxu1 %v8028_v55  ;;  %7275 = vmatprep.subr.bf16.mxu0 %v8029_v56  ;;  %v6381_v55 = vcombine.low %v26_v53, %v26_v53  ;;  %v6382_v56 = vcombine.high %v26_v53, %v26_v53  ;;  %v8125_v53 = vld [vmem:[%s10325_s1 + $0x950] sm:$0xff]  }
  0xd6   :  { %7297 = vmatprep.subr.bf16.mxu1 %v8030_v57  ;;  %v6383_v57 = vcombine.low %v27_v54, %v27_v54 }
  0xd8   :  { %7276 = vmatpush3.bf16.msra.mxu0 %v8031_v58  ;;  %v8081_v58 = vld [vmem:[%s10325_s1 + $0x840] sm:$0xff]  }
  0xd9   :  { %7298 = vmatpush3.bf16.msra.mxu1 %v8032_v59  ;;  %7277 = vmatprep.subr.bf16.mxu0 %v8033_v60  ;;  %v6384_v59 = vcombine.high %v27_v54, %v27_v54  ;;  %v8082_v60 = vld [vmem:[%s10325_s1 + $0x8c0] sm:$0xff]   ;;  %v8126_v54 = vld [vmem:[%s10325_s1 + $0x9d0] sm:$0xff]  }
  0xda   :  { %7299 = vmatprep.subr.bf16.mxu1 %v8034_v61  ;;  %v8083_v61 = vld [vmem:[%s10325_s1 + $0x800] sm:$0xff]  }
  0xdc   :  { %7278 = vmatpush3.bf16.msra.mxu0 %v8035_v62  ;;  %v8084_v62 = vld [vmem:[%s10325_s1 + $0x880] sm:$0xff]  }
  0xdd   :  { %7300 = vmatpush3.bf16.msra.mxu1 %v8036_v63  ;;  %7279 = vmatprep.subr.bf16.mxu0 %v8037_v0  ;;  %v8085_v63 = vld [vmem:[%s10325_s1 + $0x848] sm:$0xff]  }
  0xde   :  { %7301 = vmatprep.subr.bf16.mxu1 %v8038_v1  ;;  %v8086_v0 = vld [vmem:[%s10325_s1 + $0x8c8] sm:$0xff]  }
  0xdf   :  { %v8087_v1 = vld [vmem:[%s10325_s1 + $0x808] sm:$0xff]  }
  0xe0   :  { %7280 = vmatpush3.bf16.msra.mxu0 %v8039_v2  ;;  %v8088_v2 = vld [vmem:[%s10325_s1 + $0x888] sm:$0xff]  }
  0xe1   :  { %7302 = vmatpush3.bf16.msra.mxu1 %v8040_v3  ;;  %7309 = vmatprep.subr.bf16.mxu0 %v8045_v9  ;;  %v8089_v3 = vld [vmem:[%s10325_s1 + $0x850] sm:$0xff]   ;;  %v8095_v9 = vld [vmem:[%s10325_s1 + $0x818] sm:$0xff]  }
  0xe2   :  { %7331 = vmatprep.subr.bf16.mxu1 %v8046_v11  ;;  %v8097_v11 = vld [vmem:[%s10325_s1 + $0x860] sm:$0xff]  }
  0xe3   :  { %5421 = vmatmul.mubr.bf16.vlgmr.msra.gmra.mrb[24].mxu0 %v6377_v6  ;;  %v8092_v6 = vld [vmem:[%s10325_s1 + $0x890] sm:$0xff]  }
  0xe4   :  { %5461 = vmatmul.mubr.bf16.vlgmr.msra.gmra.mrb[24].mxu1 %v6379_v8  ;;  %7310 = vmatpush3.bf16.msra.mxu0 %v8047_v12  ;;  %v8094_v8 = vld [vmem:[%s10325_s1 + $0x8d8] sm:$0xff]   ;;  %v8098_v12 = vld [vmem:[%s10325_s1 + $0x8e0] sm:$0xff]  }
  0xe5   :  { %7332 = vmatpush3.bf16.msra.mxu1 %v8048_v13  ;;  %7311 = vmatprep.subr.bf16.mxu0 %v8049_v14  ;;  %v8099_v13 = vld [vmem:[%s10325_s1 + $0x820] sm:$0xff]  }
  0xe6   :  { %7333 = vmatprep.subr.bf16.mxu1 %v8050_v15  ;;  %5500 = vmatprep.mubr.bf16.mxu0 %v6382_v56  ;;  %v8100_v15 = vld [vmem:[%s10325_s1 + $0x8a0] sm:$0xff]   ;;  %v8128_v56 = vld [vmem:[%s10325_s1 + $0x990] sm:$0xff]  }
  0xe7   :  { %5540 = vmatprep.mubr.bf16.mxu1 %v6384_v59  ;;  %v8131_v59 = vld [vmem:[%s10325_s1 + $0x918] sm:$0xff]  }
  0xe8   :  { %7312 = vmatpush3.bf16.msra.mxu0 %v8051_v16 }
  0xe9   :  { %7334 = vmatpush3.bf16.msra.mxu1 %v8052_v17  ;;  %7313 = vmatprep.subr.bf16.mxu0 %v8053_v18  ;;  %v8101_v18 = vld [vmem:[%s10325_s1 + $0x868] sm:$0xff]  }
  0xea   :  { %7335 = vmatprep.subr.bf16.mxu1 %v8054_v19 }
  0xec   :  { %7314 = vmatpush3.bf16.msra.mxu0 %v8055_v20 }
  0xed   :  { %7336 = vmatpush3.bf16.msra.mxu1 %v8056_v21  ;;  %7315 = vmatprep.subr.bf16.mxu0 %v8057_v22  ;;  %v8102_v21 = vld [vmem:[%s10325_s1 + $0x8e8] sm:$0xff]  }
  0xee   :  { %7337 = vmatprep.subr.bf16.mxu1 %v8058_v23 }
  0xf0   :  { %7316 = vmatpush3.bf16.msra.mxu0 %v8059_v24 }
  0xf1   :  { %7338 = vmatpush3.bf16.msra.mxu1 %v8060_v25  ;;  %7317 = vmatprep.subr.bf16.mxu0 %v8061_v26  ;;  %v8103_v26 = vld [vmem:[%s10325_s1 + $0x828] sm:$0xff]  }
  0xf2   :  { %7339 = vmatprep.subr.bf16.mxu1 %v8062_v27 }
  0xf4   :  { %7318 = vmatpush3.bf16.msra.mxu0 %v8063_v28  ;;  %v8104_v28 = vld [vmem:[%s10325_s1 + $0x8a8] sm:$0xff]  }
  0xf5   :  { %7340 = vmatpush3.bf16.msra.mxu1 %v8064_v30  ;;  %7319 = vmatprep.subr.bf16.mxu0 %v8065_v33  ;;  %v8107_v33 = vld [vmem:[%s10325_s1 + $0x830] sm:$0xff]  }
  0xf6   :  { %v7017_v29 = vpop.f32.mrb[0].mxu0  ;;  %7341 = vmatprep.subr.bf16.mxu1 %v8066_v36  ;;  %v8110_v36 = vld [vmem:[%s10325_s1 + $0x8f8] sm:$0xff]  }
  0xf7   :  { %v7039_v31 = vpop.f32.mrb[0].mxu1  ;;  %v7018_v32 = vpop.f32.mrb[1].mxu0 }
  0xf8   :  { %v7019_v34 = vadd.f32 %v7018_v32, %v7017_v29  ;;  %v7040_v35 = vpop.f32.mrb[1].mxu1  ;;  %v7020_v38 = vpop.f32.mrb[2].mxu0  ;;  %7320 = vmatpush3.bf16.msra.mxu0 %v8067_v40  ;;  %v8106_v32 = vld [vmem:[%s10325_s1 + $0x8f0] sm:$0xff]   ;;  %v29_v40 = vld [vmem:[%s10326_s0 + $0x88] sm:$0xff] }
  0xf9   :  { %v7041_v37 = vadd.f32 %v7040_v35, %v7039_v31  ;;  %v7042_v39 = vpop.f32.mrb[2].mxu1  ;;  %v7021_v41 = vpop.f32.mrb[3].mxu0  ;;  %7342 = vmatpush3.bf16.msra.mxu1 %v8068_v43  ;;  %7321 = vmatprep.subr.bf16.mxu0 %v8069_v45  ;;  %v8105_v31 = vld [vmem:[%s10325_s1 + $0x870] sm:$0xff]   ;;  %v8109_v35 = vld [vmem:[%s10325_s1 + $0x878] sm:$0xff]   ;;  %v6387_v43 = vcombine.low %v29_v40, %v29_v40  ;;  %v6388_v45 = vcombine.high %v29_v40, %v29_v40 }
  0xfa   :  { %v7043_v44 = vpop.f32.mrb[3].mxu1  ;;  %7343 = vmatprep.subr.bf16.mxu1 %v8070_v46  ;;  %v8112_v38 = vld [vmem:[%s10325_s1 + $0x8b8] sm:$0xff]   ;;  %v28_v39 = vld [vmem:[%s10326_s0 + $0x80] sm:$0xff]  ;;  %v8162_v40 = vld [vmem:[%s10325_s1 + $0xad0] sm:$0xff]  }
  0xfb   :  { %v9239_v42 = vadd.f32 %v7041_v37, %v7019_v34  ;;  %v8108_v34 = vld [vmem:[%s10325_s1 + $0x8b0] sm:$0xff]   ;;  %v8111_v37 = vld [vmem:[%s10325_s1 + $0x838] sm:$0xff]   ;;  %v6385_v41 = vcombine.low %v28_v39, %v28_v39  ;;  %v8117_v44 = vld [vmem:[%s10325_s1 + $0x940] sm:$0xff]  }
  0xfc   :  { %7322 = vmatpush3.bf16.msra.mxu0 %v8071_v47  ;;  %v8118_v46 = vld [vmem:[%s10325_s1 + $0x9c0] sm:$0xff]  }
  0xfd   :  { %7344 = vmatpush3.bf16.msra.mxu1 %v8072_v48  ;;  %7323 = vmatprep.subr.bf16.mxu0 %v8073_v49  ;;  %v8119_v47 = vld [vmem:[%s10325_s1 + $0x900] sm:$0xff]   ;;  %v8121_v49 = vld [vmem:[%s10325_s1 + $0x948] sm:$0xff]  }
  0xfe   :  { %7345 = vmatprep.subr.bf16.mxu1 %v8074_v50  ;;  %v8120_v48 = vld [vmem:[%s10325_s1 + $0x980] sm:$0xff]   ;;  %v8122_v50 = vld [vmem:[%s10325_s1 + $0x9c8] sm:$0xff]  }
 0x100   :  { %7324 = vmatpush3.bf16.msra.mxu0 %v8075_v51  ;;  %v8123_v51 = vld [vmem:[%s10325_s1 + $0x908] sm:$0xff]  }
 0x101   :  { %7346 = vmatpush3.bf16.msra.mxu1 %v8076_v52  ;;  %7353 = vmatprep.subr.bf16.mxu0 %v8081_v58  ;;  %v8124_v52 = vld [vmem:[%s10325_s1 + $0x988] sm:$0xff]   ;;  %v8130_v58 = vld [vmem:[%s10325_s1 + $0x9d8] sm:$0xff]  }
 0x102   :  { %7375 = vmatprep.subr.bf16.mxu1 %v8082_v60  ;;  %v8132_v60 = vld [vmem:[%s10325_s1 + $0x998] sm:$0xff]  }
 0x103   :  { %5501 = vmatmul.mubr.bf16.vlgmr.msra.gmra.mrb[28].mxu0 %v6381_v55  ;;  %v8127_v55 = vld [vmem:[%s10325_s1 + $0x910] sm:$0xff]  }
 0x104   :  { %5541 = vmatmul.mubr.bf16.vlgmr.msra.gmra.mrb[28].mxu1 %v6383_v57  ;;  %7354 = vmatpush3.bf16.msra.mxu0 %v8083_v61  ;;  %v8129_v57 = vld [vmem:[%s10325_s1 + $0x958] sm:$0xff]   ;;  %v8133_v61 = vld [vmem:[%s10325_s1 + $0x960] sm:$0xff]  }
 0x105   :  { %7376 = vmatpush3.bf16.msra.mxu1 %v8084_v62  ;;  %7355 = vmatprep.subr.bf16.mxu0 %v8085_v63  ;;  %v8134_v62 = vld [vmem:[%s10325_s1 + $0x9e0] sm:$0xff]  }
 0x106   :  { %7377 = vmatprep.subr.bf16.mxu1 %v8086_v0  ;;  %5620 = vmatprep.mubr.bf16.mxu1 %v6388_v45  ;;  %v8135_v0 = vld [vmem:[%s10325_s1 + $0x920] sm:$0xff]   ;;  %v8167_v45 = vld [vmem:[%s10325_s1 + $0xa18] sm:$0xff]  }
 0x108   :  { %7356 = vmatpush3.bf16.msra.mxu0 %v8087_v1 }
 0x109   :  { %7378 = vmatpush3.bf16.msra.mxu1 %v8088_v2  ;;  %7357 = vmatprep.subr.bf16.mxu0 %v8089_v3  ;;  %v8136_v2 = vld [vmem:[%s10325_s1 + $0x9a0] sm:$0xff]  }
 0x10a   :  { %7379 = vmatprep.subr.bf16.mxu1 %v8090_v4 }
 0x10c   :  { %7358 = vmatpush3.bf16.msra.mxu0 %v8091_v5  ;;  %v8137_v5 = vld [vmem:[%s10325_s1 + $0x968] sm:$0xff]  }
 0x10d   :  { %7380 = vmatpush3.bf16.msra.mxu1 %v8092_v6  ;;  %7359 = vmatprep.subr.bf16.mxu0 %v8093_v7 }
 0x10e   :  { %7381 = vmatprep.subr.bf16.mxu1 %v8094_v8  ;;  %v8138_v8 = vld [vmem:[%s10325_s1 + $0x9e8] sm:$0xff]  }
 0x110   :  { %7360 = vmatpush3.bf16.msra.mxu0 %v8095_v9 }
 0x111   :  { %7382 = vmatpush3.bf16.msra.mxu1 %v8096_v10  ;;  %7361 = vmatprep.subr.bf16.mxu0 %v8097_v11  ;;  %v8139_v11 = vld [vmem:[%s10325_s1 + $0x928] sm:$0xff]  }
 0x112   :  { %7383 = vmatprep.subr.bf16.mxu1 %v8098_v12 }
 0x114   :  { %7362 = vmatpush3.bf16.msra.mxu0 %v8099_v13  ;;  %v8140_v13 = vld [vmem:[%s10325_s1 + $0x9a8] sm:$0xff]  }
 0x115   :  { %7384 = vmatpush3.bf16.msra.mxu1 %v8100_v15  ;;  %7363 = vmatprep.subr.bf16.mxu0 %v8101_v18  ;;  %v8142_v18 = vld [vmem:[%s10325_s1 + $0x9f0] sm:$0xff]  }
 0x116   :  { %v7061_v14 = vpop.f32.mrb[4].mxu0  ;;  %7385 = vmatprep.subr.bf16.mxu1 %v8102_v21  ;;  %v8145_v21 = vld [vmem:[%s10325_s1 + $0x978] sm:$0xff]  }
 0x117   :  { %v7083_v16 = vpop.f32.mrb[4].mxu1  ;;  %v7062_v17 = vpop.f32.mrb[5].mxu0 }
 0x118   :  { %v7063_v19 = vadd.f32 %v7062_v17, %v7061_v14  ;;  %v7084_v20 = vpop.f32.mrb[5].mxu1  ;;  %v7064_v23 = vpop.f32.mrb[6].mxu0  ;;  %7364 = vmatpush3.bf16.msra.mxu0 %v8103_v26 }
 0x119   :  { %v7085_v22 = vadd.f32 %v7084_v20, %v7083_v16  ;;  %v7086_v24 = vpop.f32.mrb[6].mxu1  ;;  %v7065_v27 = vpop.f32.mrb[7].mxu0  ;;  %7386 = vmatpush3.bf16.msra.mxu1 %v8104_v28  ;;  %7365 = vmatprep.subr.bf16.mxu0 %v8105_v31  ;;  %v8141_v16 = vld [vmem:[%s10325_s1 + $0x970] sm:$0xff]   ;;  %v8147_v23 = vld [vmem:[%s10325_s1 + $0x938] sm:$0xff]   ;;  %v8153_v31 = vld [vmem:[%s10325_s1 + $0xa40] sm:$0xff]  }
 0x11a   :  { %v5023_v25 = vadd.f32 %v7063_v19, %v9239_v42  ;;  %v7087_v29 = vpop.f32.mrb[7].mxu1  ;;  %7387 = vmatprep.subr.bf16.mxu1 %v8106_v32  ;;  %v6386_v42 = vcombine.high %v28_v39, %v28_v39  ;;  %v8143_v19 = vld [vmem:[%s10325_s1 + $0x930] sm:$0xff]   ;;  %v8148_v24 = vld [vmem:[%s10325_s1 + $0x9b8] sm:$0xff]   ;;  %v8154_v32 = vld [vmem:[%s10325_s1 + $0xac0] sm:$0xff]  }
 0x11b   :  { %v8144_v20 = vld [vmem:[%s10325_s1 + $0x9b0] sm:$0xff]   ;;  %v31_v28 = vld [vmem:[%s10326_s0 + $0x98] sm:$0xff] }
 0x11c   :  { %v9347_v30 = vadd.f32 %v7085_v22, %v5023_v25  ;;  %7366 = vmatpush3.bf16.msra.mxu0 %v8107_v33  ;;  %5580 = vmatprep.mubr.bf16.mxu0 %v6386_v42  ;;  %v8146_v22 = vld [vmem:[%s10325_s1 + $0x9f8] sm:$0xff]   ;;  %v30_v25 = vld [vmem:[%s10326_s0 + $0x90] sm:$0xff]  ;;  %v6391_v29 = vcombine.low %v31_v28, %v31_v28  ;;  %v8155_v33 = vld [vmem:[%s10325_s1 + $0xa00] sm:$0xff]  }
 0x11d   :  { %7388 = vmatpush3.bf16.msra.mxu1 %v8108_v34  ;;  %7367 = vmatprep.subr.bf16.mxu0 %v8109_v35  ;;  %v6389_v26 = vcombine.low %v30_v25, %v30_v25  ;;  %v6390_v27 = vcombine.high %v30_v25, %v30_v25  ;;  %v8156_v34 = vld [vmem:[%s10325_s1 + $0xa80] sm:$0xff]   ;;  %v8157_v35 = vld [vmem:[%s10325_s1 + $0xa48] sm:$0xff]   ;;  %v8161_v39 = vld [vmem:[%s10325_s1 + $0xa50] sm:$0xff]  }
 0x11e   :  { %7389 = vmatprep.subr.bf16.mxu1 %v8110_v36  ;;  %v8158_v36 = vld [vmem:[%s10325_s1 + $0xac8] sm:$0xff]   ;;  %v8164_v42 = vld [vmem:[%s10325_s1 + $0xa90] sm:$0xff]  }
 0x11f   :  { %v8197_v25 = vld [vmem:[%s10325_s1 + $0xb50] sm:$0xff]  }
 0x120   :  { %7368 = vmatpush3.bf16.msra.mxu0 %v8111_v37  ;;  %v8159_v37 = vld [vmem:[%s10325_s1 + $0xa08] sm:$0xff]  }
 0x121   :  { %7390 = vmatpush3.bf16.msra.mxu1 %v8112_v38  ;;  %7397 = vmatprep.subr.bf16.mxu0 %v8117_v44  ;;  %v8160_v38 = vld [vmem:[%s10325_s1 + $0xa88] sm:$0xff]   ;;  %v8166_v44 = vld [vmem:[%s10325_s1 + $0xad8] sm:$0xff]  }
 0x122   :  { %7419 = vmatprep.subr.bf16.mxu1 %v8118_v46  ;;  %v8168_v46 = vld [vmem:[%s10325_s1 + $0xa98] sm:$0xff]  }
 0x123   :  { %5581 = vmatmul.mubr.bf16.vlgmr.msra.gmra.mrb[32].mxu0 %v6385_v41  ;;  %v8163_v41 = vld [vmem:[%s10325_s1 + $0xa10] sm:$0xff]  }
 0x124   :  { %5621 = vmatmul.mubr.bf16.vlgmr.msra.gmra.mrb[32].mxu1 %v6387_v43  ;;  %7398 = vmatpush3.bf16.msra.mxu0 %v8119_v47  ;;  %v8165_v43 = vld [vmem:[%s10325_s1 + $0xa58] sm:$0xff]   ;;  %v8169_v47 = vld [vmem:[%s10325_s1 + $0xa60] sm:$0xff]  }
 0x125   :  { %7420 = vmatpush3.bf16.msra.mxu1 %v8120_v48  ;;  %7399 = vmatprep.subr.bf16.mxu0 %v8121_v49  ;;  %v8170_v48 = vld [vmem:[%s10325_s1 + $0xae0] sm:$0xff]  }
 0x126   :  { %7421 = vmatprep.subr.bf16.mxu1 %v8122_v50  ;;  %5660 = vmatprep.mubr.bf16.mxu0 %v6390_v27  ;;  %v8171_v50 = vld [vmem:[%s10325_s1 + $0xa20] sm:$0xff]   ;;  %v8199_v27 = vld [vmem:[%s10325_s1 + $0xb10] sm:$0xff]  }
 0x128   :  { %7400 = vmatpush3.bf16.msra.mxu0 %v8123_v51 }
 0x129   :  { %7422 = vmatpush3.bf16.msra.mxu1 %v8124_v52  ;;  %7401 = vmatprep.subr.bf16.mxu0 %v8125_v53  ;;  %v8172_v52 = vld [vmem:[%s10325_s1 + $0xaa0] sm:$0xff]  }
 0x12a   :  { %7423 = vmatprep.subr.bf16.mxu1 %v8126_v54 }
 0x12c   :  { %7402 = vmatpush3.bf16.msra.mxu0 %v8127_v55  ;;  %v8173_v55 = vld [vmem:[%s10325_s1 + $0xa68] sm:$0xff]  }
 0x12d   :  { %7424 = vmatpush3.bf16.msra.mxu1 %v8128_v56  ;;  %7403 = vmatprep.subr.bf16.mxu0 %v8129_v57 }
 0x12e   :  { %7425 = vmatprep.subr.bf16.mxu1 %v8130_v58  ;;  %v8174_v58 = vld [vmem:[%s10325_s1 + $0xae8] sm:$0xff]  }
 0x130   :  { %7404 = vmatpush3.bf16.msra.mxu0 %v8131_v59 }
 0x131   :  { %7426 = vmatpush3.bf16.msra.mxu1 %v8132_v60  ;;  %7405 = vmatprep.subr.bf16.mxu0 %v8133_v61  ;;  %v8175_v61 = vld [vmem:[%s10325_s1 + $0xa28] sm:$0xff]  }
 0x132   :  { %7427 = vmatprep.subr.bf16.mxu1 %v8134_v62 }
 0x134   :  { %7406 = vmatpush3.bf16.msra.mxu0 %v8135_v0 }
 0x135   :  { %7428 = vmatpush3.bf16.msra.mxu1 %v8136_v2  ;;  %7407 = vmatprep.subr.bf16.mxu0 %v8137_v5  ;;  %v8177_v2 = vld [vmem:[%s10325_s1 + $0xa70] sm:$0xff]  }
 0x136   :  { %v7105_v63 = vpop.f32.mrb[8].mxu0  ;;  %7429 = vmatprep.subr.bf16.mxu1 %v8138_v8  ;;  %v8179_v5 = vld [vmem:[%s10325_s1 + $0xa30] sm:$0xff]   ;;  %v8182_v8 = vld [vmem:[%s10325_s1 + $0xaf8] sm:$0xff]  }
 0x137   :  { %v7127_v1 = vpop.f32.mrb[8].mxu1  ;;  %v7106_v3 = vpop.f32.mrb[9].mxu0 }
 0x138   :  { %v7128_v4 = vpop.f32.mrb[9].mxu1  ;;  %v7107_v6 = vadd.f32 %v7106_v3, %v7105_v63  ;;  %v7108_v9 = vpop.f32.mrb[10].mxu0  ;;  %7408 = vmatpush3.bf16.msra.mxu0 %v8139_v11  ;;  %v8176_v63 = vld [vmem:[%s10325_s1 + $0xaa8] sm:$0xff]   ;;  %v32_v11 = vld [vmem:[%s10326_s0 + $0xa0] sm:$0xff] }
 0x139   :  { %v7129_v7 = vadd.f32 %v7128_v4, %v7127_v1  ;;  %v7130_v10 = vpop.f32.mrb[10].mxu1  ;;  %v7109_v14 = vpop.f32.mrb[11].mxu0  ;;  %7430 = vmatpush3.bf16.msra.mxu1 %v8140_v13  ;;  %7409 = vmatprep.subr.bf16.mxu0 %v8141_v16  ;;  %v8178_v4 = vld [vmem:[%s10325_s1 + $0xaf0] sm:$0xff]   ;;  %v8183_v9 = vld [vmem:[%s10325_s1 + $0xa38] sm:$0xff]   ;;  %v6393_v13 = vcombine.low %v32_v11, %v32_v11 }
 0x13a   :  { %v5103_v12 = vadd.f32 %v7107_v6, %v9347_v30  ;;  %v7131_v15 = vpop.f32.mrb[11].mxu1  ;;  %7431 = vmatprep.subr.bf16.mxu1 %v8142_v18  ;;  %v6392_v30 = vcombine.high %v31_v28, %v31_v28  ;;  %v8180_v6 = vld [vmem:[%s10325_s1 + $0xab0] sm:$0xff]   ;;  %v8184_v10 = vld [vmem:[%s10325_s1 + $0xab8] sm:$0xff]   ;;  %v6394_v14 = vcombine.high %v32_v11, %v32_v11  ;;  %v8190_v18 = vld [vmem:[%s10325_s1 + $0xbc0] sm:$0xff]  }
 0x13b   :  { %v8200_v28 = vld [vmem:[%s10325_s1 + $0xb90] sm:$0xff]  }
 0x13c   :  { %v9455_v17 = vadd.f32 %v7129_v7, %v5103_v12  ;;  %7410 = vmatpush3.bf16.msra.mxu0 %v8143_v19  ;;  %5700 = vmatprep.mubr.bf16.mxu1 %v6392_v30  ;;  %v8181_v7 = vld [vmem:[%s10325_s1 + $0xa78] sm:$0xff]   ;;  %v33_v12 = vld [vmem:[%s10326_s0 + $0xa8] sm:$0xff]  ;;  %v8191_v19 = vld [vmem:[%s10325_s1 + $0xb00] sm:$0xff]  }
 0x13d   :  { %7432 = vmatpush3.bf16.msra.mxu1 %v8144_v20  ;;  %7411 = vmatprep.subr.bf16.mxu0 %v8145_v21  ;;  %v6395_v15 = vcombine.low %v33_v12, %v33_v12  ;;  %v6396_v16 = vcombine.high %v33_v12, %v33_v12  ;;  %v8192_v20 = vld [vmem:[%s10325_s1 + $0xb80] sm:$0xff]   ;;  %v8193_v21 = vld [vmem:[%s10325_s1 + $0xb48] sm:$0xff]   ;;  %v8202_v30 = vld [vmem:[%s10325_s1 + $0xbd8] sm:$0xff]  }
 0x13e   :  { %7433 = vmatprep.subr.bf16.mxu1 %v8146_v22  ;;  %v8194_v22 = vld [vmem:[%s10325_s1 + $0xbc8] sm:$0xff]   ;;  %v8233_v11 = vld [vmem:[%s10325_s1 + $0xc50] sm:$0xff]  }
 0x13f   :  { %v8234_v12 = vld [vmem:[%s10325_s1 + $0xcd0] sm:$0xff]  }
 0x140   :  { %7412 = vmatpush3.bf16.msra.mxu0 %v8147_v23  ;;  %v8195_v23 = vld [vmem:[%s10325_s1 + $0xb08] sm:$0xff]  }
 0x141   :  { %7434 = vmatpush3.bf16.msra.mxu1 %v8148_v24  ;;  %7441 = vmatprep.subr.bf16.mxu0 %v8153_v31  ;;  %v8196_v24 = vld [vmem:[%s10325_s1 + $0xb88] sm:$0xff]   ;;  %v8203_v31 = vld [vmem:[%s10325_s1 + $0xb18] sm:$0xff]  }
 0x142   :  { %7463 = vmatprep.subr.bf16.mxu1 %v8154_v32  ;;  %v8204_v32 = vld [vmem:[%s10325_s1 + $0xb98] sm:$0xff]  }
 0x143   :  { %5661 = vmatmul.mubr.bf16.vlgmr.msra.gmra.mrb[36].mxu0 %v6389_v26  ;;  %v8198_v26 = vld [vmem:[%s10325_s1 + $0xbd0] sm:$0xff]  }
 0x144   :  { %5701 = vmatmul.mubr.bf16.vlgmr.msra.gmra.mrb[36].mxu1 %v6391_v29  ;;  %7442 = vmatpush3.bf16.msra.mxu0 %v8155_v33  ;;  %v8201_v29 = vld [vmem:[%s10325_s1 + $0xb58] sm:$0xff]   ;;  %v8205_v33 = vld [vmem:[%s10325_s1 + $0xb60] sm:$0xff]  }
 0x145   :  { %7464 = vmatpush3.bf16.msra.mxu1 %v8156_v34  ;;  %7443 = vmatprep.subr.bf16.mxu0 %v8157_v35  ;;  %v8206_v34 = vld [vmem:[%s10325_s1 + $0xbe0] sm:$0xff]  }
 0x146   :  { %7465 = vmatprep.subr.bf16.mxu1 %v8158_v36  ;;  %5740 = vmatprep.mubr.bf16.mxu0 %v6394_v14  ;;  %v8207_v35 = vld [vmem:[%s10325_s1 + $0xb20] sm:$0xff]   ;;  %v8236_v14 = vld [vmem:[%s10325_s1 + $0xc90] sm:$0xff]  }
 0x147   :  { %5780 = vmatprep.mubr.bf16.mxu1 %v6396_v16  ;;  %v8238_v16 = vld [vmem:[%s10325_s1 + $0xcd8] sm:$0xff]  }
 0x148   :  { %7444 = vmatpush3.bf16.msra.mxu0 %v8159_v37  ;;  %v8208_v37 = vld [vmem:[%s10325_s1 + $0xba0] sm:$0xff]  }
 0x149   :  { %7466 = vmatpush3.bf16.msra.mxu1 %v8160_v38  ;;  %7445 = vmatprep.subr.bf16.mxu0 %v8161_v39 }
 0x14a   :  { %7467 = vmatprep.subr.bf16.mxu1 %v8162_v40 }
 0x14c   :  { %7446 = vmatpush3.bf16.msra.mxu0 %v8163_v41 }
 0x14d   :  { %7468 = vmatpush3.bf16.msra.mxu1 %v8164_v42  ;;  %7447 = vmatprep.subr.bf16.mxu0 %v8165_v43  ;;  %v8209_v43 = vld [vmem:[%s10325_s1 + $0xb68] sm:$0xff]  }
 0x14e   :  { %7469 = vmatprep.subr.bf16.mxu1 %v8166_v44 }
 0x150   :  { %7448 = vmatpush3.bf16.msra.mxu0 %v8167_v45  ;;  %v8210_v45 = vld [vmem:[%s10325_s1 + $0xbe8] sm:$0xff]  }
 0x151   :  { %7470 = vmatpush3.bf16.msra.mxu1 %v8168_v46  ;;  %7449 = vmatprep.subr.bf16.mxu0 %v8169_v47 }
 0x152   :  { %7471 = vmatprep.subr.bf16.mxu1 %v8170_v48  ;;  %v8211_v48 = vld [vmem:[%s10325_s1 + $0xb28] sm:$0xff]  }
 0x154   :  { %7450 = vmatpush3.bf16.msra.mxu0 %v8171_v50  ;;  %v8212_v50 = vld [vmem:[%s10325_s1 + $0xba8] sm:$0xff]  }
 0x155   :  { %7472 = vmatpush3.bf16.msra.mxu1 %v8172_v52  ;;  %7451 = vmatprep.subr.bf16.mxu0 %v8173_v55  ;;  %v8215_v55 = vld [vmem:[%s10325_s1 + $0xb30] sm:$0xff]  }
 0x156   :  { %v7149_v49 = vpop.f32.mrb[12].mxu0  ;;  %7473 = vmatprep.subr.bf16.mxu1 %v8174_v58  ;;  %v8218_v58 = vld [vmem:[%s10325_s1 + $0xbf8] sm:$0xff]  }
 0x157   :  { %v7171_v51 = vpop.f32.mrb[12].mxu1  ;;  %v7150_v53 = vpop.f32.mrb[13].mxu0 }
 0x158   :  { %v7172_v54 = vpop.f32.mrb[13].mxu1  ;;  %v7151_v56 = vadd.f32 %v7150_v53, %v7149_v49  ;;  %v7152_v59 = vpop.f32.mrb[14].mxu0  ;;  %7452 = vmatpush3.bf16.msra.mxu0 %v8175_v61  ;;  %v8213_v53 = vld [vmem:[%s10325_s1 + $0xb70] sm:$0xff]  }
 0x159   :  { %v7173_v57 = vadd.f32 %v7172_v54, %v7171_v51  ;;  %v7174_v60 = vpop.f32.mrb[14].mxu1  ;;  %v7153_v0 = vpop.f32.mrb[15].mxu0  ;;  %7474 = vmatpush3.bf16.msra.mxu1 %v8176_v63  ;;  %7453 = vmatprep.subr.bf16.mxu0 %v8177_v2  ;;  %v8214_v54 = vld [vmem:[%s10325_s1 + $0xbf0] sm:$0xff]   ;;  %v8219_v59 = vld [vmem:[%s10325_s1 + $0xb38] sm:$0xff]  }
 0x15a   :  { %v5183_v62 = vadd.f32 %v7151_v56, %v9455_v17  ;;  %v7175_v1 = vpop.f32.mrb[15].mxu1  ;;  %7475 = vmatprep.subr.bf16.mxu1 %v8178_v4  ;;  %v8189_v17 = vld [vmem:[%s10325_s1 + $0xb40] sm:$0xff]   ;;  %v8216_v56 = vld [vmem:[%s10325_s1 + $0xbb0] sm:$0xff]   ;;  %v8220_v60 = vld [vmem:[%s10325_s1 + $0xbb8] sm:$0xff]  }
 0x15b   :  { %v34_v61 = vld [vmem:[%s10326_s0 + $0xb0] sm:$0xff]  ;;  %v8226_v4 = vld [vmem:[%s10325_s1 + $0xcc0] sm:$0xff]  }
 0x15c   :  { %v9560_v3 = vadd.f32 %v7173_v57, %v5183_v62  ;;  %7454 = vmatpush3.bf16.msra.mxu0 %v8179_v5  ;;  %v8217_v57 = vld [vmem:[%s10325_s1 + $0xb78] sm:$0xff]   ;;  %v6397_v63 = vcombine.low %v34_v61, %v34_v61  ;;  %v6398_v0 = vcombine.high %v34_v61, %v34_v61  ;;  %v8227_v5 = vld [vmem:[%s10325_s1 + $0xc00] sm:$0xff]   ;;  %v8269_v61 = vld [vmem:[%s10325_s1 + $0xd50] sm:$0xff]  }
 0x15d   :  { %7476 = vmatpush3.bf16.msra.mxu1 %v8180_v6  ;;  %7455 = vmatprep.subr.bf16.mxu0 %v8181_v7  ;;  %v35_v62 = vld [vmem:[%s10326_s0 + $0xb8] sm:$0xff]  ;;  %v8228_v6 = vld [vmem:[%s10325_s1 + $0xc80] sm:$0xff]   ;;  %v8229_v7 = vld [vmem:[%s10325_s1 + $0xc48] sm:$0xff]  }
 0x15e   :  { %7477 = vmatprep.subr.bf16.mxu1 %v8182_v8  ;;  %v6399_v1 = vcombine.low %v35_v62, %v35_v62  ;;  %v6400_v2 = vcombine.high %v35_v62, %v35_v62  ;;  %v8230_v8 = vld [vmem:[%s10325_s1 + $0xcc8] sm:$0xff]   ;;  %v8270_v62 = vld [vmem:[%s10325_s1 + $0xdd0] sm:$0xff]  }
 0x160   :  { %7456 = vmatpush3.bf16.msra.mxu0 %v8183_v9  ;;  %v8231_v9 = vld [vmem:[%s10325_s1 + $0xc08] sm:$0xff]  }
 0x161   :  { %7478 = vmatpush3.bf16.msra.mxu1 %v8184_v10  ;;  %7485 = vmatprep.subr.bf16.mxu0 %v8189_v17  ;;  %v8232_v10 = vld [vmem:[%s10325_s1 + $0xc88] sm:$0xff]   ;;  %v8239_v17 = vld [vmem:[%s10325_s1 + $0xc18] sm:$0xff]  }
 0x162   :  { %7507 = vmatprep.subr.bf16.mxu1 %v8190_v18  ;;  %v8240_v18 = vld [vmem:[%s10325_s1 + $0xc98] sm:$0xff]  }
 0x163   :  { %5741 = vmatmul.mubr.bf16.vlgmr.msra.gmra.mrb[40].mxu0 %v6393_v13  ;;  %v8235_v13 = vld [vmem:[%s10325_s1 + $0xc10] sm:$0xff]  }
 0x164   :  { %5781 = vmatmul.mubr.bf16.vlgmr.msra.gmra.mrb[40].mxu1 %v6395_v15  ;;  %7486 = vmatpush3.bf16.msra.mxu0 %v8191_v19  ;;  %v8237_v15 = vld [vmem:[%s10325_s1 + $0xc58] sm:$0xff]   ;;  %v8241_v19 = vld [vmem:[%s10325_s1 + $0xc60] sm:$0xff]  }
 0x165   :  { %7508 = vmatpush3.bf16.msra.mxu1 %v8192_v20  ;;  %7487 = vmatprep.subr.bf16.mxu0 %v8193_v21  ;;  %v8242_v20 = vld [vmem:[%s10325_s1 + $0xce0] sm:$0xff]  }
 0x166   :  { %7509 = vmatprep.subr.bf16.mxu1 %v8194_v22  ;;  %5820 = vmatprep.mubr.bf16.mxu0 %v6398_v0  ;;  %v8243_v22 = vld [vmem:[%s10325_s1 + $0xc20] sm:$0xff]   ;;  %v8272_v0 = vld [vmem:[%s10325_s1 + $0xd90] sm:$0xff]  }
 0x167   :  { %5860 = vmatprep.mubr.bf16.mxu1 %v6400_v2  ;;  %v8274_v2 = vld [vmem:[%s10325_s1 + $0xdd8] sm:$0xff]  }
 0x168   :  { %7488 = vmatpush3.bf16.msra.mxu0 %v8195_v23 }
 0x169   :  { %7510 = vmatpush3.bf16.msra.mxu1 %v8196_v24  ;;  %7489 = vmatprep.subr.bf16.mxu0 %v8197_v25  ;;  %v8244_v24 = vld [vmem:[%s10325_s1 + $0xca0] sm:$0xff]  }
 0x16a   :  { %7511 = vmatprep.subr.bf16.mxu1 %v8198_v26 }
 0x16c   :  { %7490 = vmatpush3.bf16.msra.mxu0 %v8199_v27 }
 0x16d   :  { %7512 = vmatpush3.bf16.msra.mxu1 %v8200_v28  ;;  %7491 = vmatprep.subr.bf16.mxu0 %v8201_v29  ;;  %v8245_v28 = vld [vmem:[%s10325_s1 + $0xc68] sm:$0xff]  }
 0x16e   :  { %7513 = vmatprep.subr.bf16.mxu1 %v8202_v30  ;;  %v8246_v30 = vld [vmem:[%s10325_s1 + $0xce8] sm:$0xff]  }
 0x170   :  { %7492 = vmatpush3.bf16.msra.mxu0 %v8203_v31 }
 0x171   :  { %7514 = vmatpush3.bf16.msra.mxu1 %v8204_v32  ;;  %7493 = vmatprep.subr.bf16.mxu0 %v8205_v33 }
 0x172   :  { %7515 = vmatprep.subr.bf16.mxu1 %v8206_v34  ;;  %v8247_v34 = vld [vmem:[%s10325_s1 + $0xc28] sm:$0xff]  }
 0x174   :  { %7494 = vmatpush3.bf16.msra.mxu0 %v8207_v35  ;;  %v8248_v35 = vld [vmem:[%s10325_s1 + $0xca8] sm:$0xff]  }
 0x175   :  { %7516 = vmatpush3.bf16.msra.mxu1 %v8208_v37  ;;  %7495 = vmatprep.subr.bf16.mxu0 %v8209_v43  ;;  %v8253_v43 = vld [vmem:[%s10325_s1 + $0xc78] sm:$0xff]  }
 0x176   :  { %v7193_v36 = vpop.f32.mrb[16].mxu0  ;;  %7517 = vmatprep.subr.bf16.mxu1 %v8210_v45  ;;  %v8255_v45 = vld [vmem:[%s10325_s1 + $0xc38] sm:$0xff]  }
 0x177   :  { %v7215_v38 = vpop.f32.mrb[16].mxu1  ;;  %v7194_v39 = vpop.f32.mrb[17].mxu0 }
 0x178   :  { %v7216_v40 = vpop.f32.mrb[17].mxu1  ;;  %v7195_v41 = vadd.f32 %v7194_v39, %v7193_v36  ;;  %v7196_v44 = vpop.f32.mrb[18].mxu0  ;;  %7496 = vmatpush3.bf16.msra.mxu0 %v8211_v48  ;;  %v8249_v39 = vld [vmem:[%s10325_s1 + $0xc70] sm:$0xff]   ;;  %v37_v48 = vld [vmem:[%s10326_s0 + $0xc8] sm:$0xff] }
 0x179   :  { %v7217_v42 = vadd.f32 %v7216_v40, %v7215_v38  ;;  %v7218_v46 = vpop.f32.mrb[18].mxu1  ;;  %v7197_v49 = vpop.f32.mrb[19].mxu0  ;;  %7518 = vmatpush3.bf16.msra.mxu1 %v8212_v50  ;;  %7497 = vmatprep.subr.bf16.mxu0 %v8213_v53  ;;  %v8250_v40 = vld [vmem:[%s10325_s1 + $0xcf0] sm:$0xff]   ;;  %v8254_v44 = vld [vmem:[%s10325_s1 + $0xcf8] sm:$0xff]   ;;  %v6404_v53 = vcombine.high %v37_v48, %v37_v48 }
 0x17a   :  { %v5263_v47 = vadd.f32 %v7195_v41, %v9560_v3  ;;  %v7219_v51 = vpop.f32.mrb[19].mxu1  ;;  %7519 = vmatprep.subr.bf16.mxu1 %v8214_v54  ;;  %v8225_v3 = vld [vmem:[%s10325_s1 + $0xc40] sm:$0xff]   ;;  %v8251_v41 = vld [vmem:[%s10325_s1 + $0xc30] sm:$0xff]   ;;  %v8256_v46 = vld [vmem:[%s10325_s1 + $0xcb8] sm:$0xff]  }
 0x17b   :  { %v6403_v51 = vcombine.low %v37_v48, %v37_v48  ;;  %v8262_v54 = vld [vmem:[%s10325_s1 + $0xdc0] sm:$0xff]   ;;  %v8306_v48 = vld [vmem:[%s10325_s1 + $0xed0] sm:$0xff]  }
 0x17c   :  { %v9662_v52 = vadd.f32 %v7217_v42, %v5263_v47  ;;  %7498 = vmatpush3.bf16.msra.mxu0 %v8215_v55  ;;  %v8252_v42 = vld [vmem:[%s10325_s1 + $0xcb0] sm:$0xff]   ;;  %v36_v47 = vld [vmem:[%s10326_s0 + $0xc0] sm:$0xff] }
 0x17d   :  { %7520 = vmatpush3.bf16.msra.mxu1 %v8216_v56  ;;  %7499 = vmatprep.subr.bf16.mxu0 %v8217_v57  ;;  %v6401_v49 = vcombine.low %v36_v47, %v36_v47  ;;  %v6402_v50 = vcombine.high %v36_v47, %v36_v47  ;;  %v8263_v55 = vld [vmem:[%s10325_s1 + $0xd00] sm:$0xff]   ;;  %v8265_v57 = vld [vmem:[%s10325_s1 + $0xd48] sm:$0xff]   ;;  %v8305_v47 = vld [vmem:[%s10325_s1 + $0xe50] sm:$0xff]  }
 0x17e   :  { %7521 = vmatprep.subr.bf16.mxu1 %v8218_v58  ;;  %v8264_v56 = vld [vmem:[%s10325_s1 + $0xd80] sm:$0xff]   ;;  %v8266_v58 = vld [vmem:[%s10325_s1 + $0xdc8] sm:$0xff]  }
 0x180   :  { %7500 = vmatpush3.bf16.msra.mxu0 %v8219_v59  ;;  %v8267_v59 = vld [vmem:[%s10325_s1 + $0xd08] sm:$0xff]  }
 0x181   :  { %7522 = vmatpush3.bf16.msra.mxu1 %v8220_v60  ;;  %7529 = vmatprep.subr.bf16.mxu0 %v8225_v3  ;;  %v8268_v60 = vld [vmem:[%s10325_s1 + $0xd88] sm:$0xff]   ;;  %v8275_v3 = vld [vmem:[%s10325_s1 + $0xd18] sm:$0xff]  }
 0x182   :  { %7551 = vmatprep.subr.bf16.mxu1 %v8226_v4  ;;  %v8276_v4 = vld [vmem:[%s10325_s1 + $0xd98] sm:$0xff]  }
 0x183   :  { %5821 = vmatmul.mubr.bf16.vlgmr.msra.gmra.mrb[44].mxu0 %v6397_v63  ;;  %v8271_v63 = vld [vmem:[%s10325_s1 + $0xd10] sm:$0xff]  }
 0x184   :  { %5861 = vmatmul.mubr.bf16.vlgmr.msra.gmra.mrb[44].mxu1 %v6399_v1  ;;  %7530 = vmatpush3.bf16.msra.mxu0 %v8227_v5  ;;  %v8273_v1 = vld [vmem:[%s10325_s1 + $0xd58] sm:$0xff]   ;;  %v8277_v5 = vld [vmem:[%s10325_s1 + $0xd60] sm:$0xff]  }
 0x185   :  { %7552 = vmatpush3.bf16.msra.mxu1 %v8228_v6  ;;  %7531 = vmatprep.subr.bf16.mxu0 %v8229_v7  ;;  %v8278_v6 = vld [vmem:[%s10325_s1 + $0xde0] sm:$0xff]  }
 0x186   :  { %7553 = vmatprep.subr.bf16.mxu1 %v8230_v8  ;;  %5900 = vmatprep.mubr.bf16.mxu0 %v6402_v50  ;;  %v8279_v8 = vld [vmem:[%s10325_s1 + $0xd20] sm:$0xff]   ;;  %v8308_v50 = vld [vmem:[%s10325_s1 + $0xe90] sm:$0xff]  }
 0x187   :  { %5940 = vmatprep.mubr.bf16.mxu1 %v6404_v53  ;;  %v8311_v53 = vld [vmem:[%s10325_s1 + $0xe18] sm:$0xff]  }
 0x188   :  { %7532 = vmatpush3.bf16.msra.mxu0 %v8231_v9 }
 0x189   :  { %7554 = vmatpush3.bf16.msra.mxu1 %v8232_v10  ;;  %7533 = vmatprep.subr.bf16.mxu0 %v8233_v11  ;;  %v8280_v10 = vld [vmem:[%s10325_s1 + $0xda0] sm:$0xff]  }
 0x18a   :  { %7555 = vmatprep.subr.bf16.mxu1 %v8234_v12 }
 0x18c   :  { %7534 = vmatpush3.bf16.msra.mxu0 %v8235_v13  ;;  %v8281_v13 = vld [vmem:[%s10325_s1 + $0xd68] sm:$0xff]  }
 0x18d   :  { %7556 = vmatpush3.bf16.msra.mxu1 %v8236_v14  ;;  %7535 = vmatprep.subr.bf16.mxu0 %v8237_v15 }
 0x18e   :  { %7557 = vmatprep.subr.bf16.mxu1 %v8238_v16  ;;  %v8282_v16 = vld [vmem:[%s10325_s1 + $0xde8] sm:$0xff]  }
 0x190   :  { %7536 = vmatpush3.bf16.msra.mxu0 %v8239_v17 }
 0x191   :  { %7558 = vmatpush3.bf16.msra.mxu1 %v8240_v18  ;;  %7537 = vmatprep.subr.bf16.mxu0 %v8241_v19  ;;  %v8283_v19 = vld [vmem:[%s10325_s1 + $0xd28] sm:$0xff]  }
 0x192   :  { %7559 = vmatprep.subr.bf16.mxu1 %v8242_v20 }
 0x194   :  { %7538 = vmatpush3.bf16.msra.mxu0 %v8243_v22 }
 0x195   :  { %7560 = vmatpush3.bf16.msra.mxu1 %v8244_v24  ;;  %7539 = vmatprep.subr.bf16.mxu0 %v8245_v28  ;;  %v8285_v24 = vld [vmem:[%s10325_s1 + $0xd70] sm:$0xff]  }
 0x196   :  { %v7237_v21 = vpop.f32.mrb[20].mxu0  ;;  %7561 = vmatprep.subr.bf16.mxu1 %v8246_v30  ;;  %v8288_v28 = vld [vmem:[%s10325_s1 + $0xdb0] sm:$0xff]   ;;  %v8290_v30 = vld [vmem:[%s10325_s1 + $0xdf8] sm:$0xff]  }
 0x197   :  { %v7259_v23 = vpop.f32.mrb[20].mxu1  ;;  %v7238_v25 = vpop.f32.mrb[21].mxu0 }
 0x198   :  { %v7239_v26 = vadd.f32 %v7238_v25, %v7237_v21  ;;  %v7260_v27 = vpop.f32.mrb[21].mxu1  ;;  %v7240_v31 = vpop.f32.mrb[22].mxu0  ;;  %7540 = vmatpush3.bf16.msra.mxu0 %v8247_v34  ;;  %v8284_v21 = vld [vmem:[%s10325_s1 + $0xda8] sm:$0xff]  }
 0x199   :  { %v7261_v29 = vadd.f32 %v7260_v27, %v7259_v23  ;;  %v7262_v33 = vpop.f32.mrb[22].mxu1  ;;  %v7241_v36 = vpop.f32.mrb[23].mxu0  ;;  %7562 = vmatpush3.bf16.msra.mxu1 %v8248_v35  ;;  %7541 = vmatprep.subr.bf16.mxu0 %v8249_v39  ;;  %v8287_v27 = vld [vmem:[%s10325_s1 + $0xd30] sm:$0xff]   ;;  %v8291_v31 = vld [vmem:[%s10325_s1 + $0xd38] sm:$0xff]   ;;  %v8297_v39 = vld [vmem:[%s10325_s1 + $0xe40] sm:$0xff]  }
 0x19a   :  { %v5343_v32 = vadd.f32 %v7239_v26, %v9662_v52  ;;  %v7263_v38 = vpop.f32.mrb[23].mxu1  ;;  %7563 = vmatprep.subr.bf16.mxu1 %v8250_v40  ;;  %v8261_v52 = vld [vmem:[%s10325_s1 + $0xd40] sm:$0xff]   ;;  %v8286_v26 = vld [vmem:[%s10325_s1 + $0xdf0] sm:$0xff]   ;;  %v39_v36 = vld [vmem:[%s10326_s0 + $0xd8] sm:$0xff] }
 0x19b   :  { %v38_v33 = vld [vmem:[%s10326_s0 + $0xd0] sm:$0xff]  ;;  %v6408_v38 = vcombine.high %v39_v36, %v39_v36  ;;  %v8298_v40 = vld [vmem:[%s10325_s1 + $0xec0] sm:$0xff]  }
 0x19c   :  { %v9767_v37 = vadd.f32 %v7261_v29, %v5343_v32  ;;  %7542 = vmatpush3.bf16.msra.mxu0 %v8251_v41  ;;  %v8289_v29 = vld [vmem:[%s10325_s1 + $0xd78] sm:$0xff]   ;;  %v6405_v34 = vcombine.low %v38_v33, %v38_v33  ;;  %v6406_v35 = vcombine.high %v38_v33, %v38_v33  ;;  %v8299_v41 = vld [vmem:[%s10325_s1 + $0xe00] sm:$0xff]   ;;  %v8341_v33 = vld [vmem:[%s10325_s1 + $0xf50] sm:$0xff]  }
 0x19d   :  { %7564 = vmatpush3.bf16.msra.mxu1 %v8252_v42  ;;  %7543 = vmatprep.subr.bf16.mxu0 %v8253_v43  ;;  %v8292_v32 = vld [vmem:[%s10325_s1 + $0xdb8] sm:$0xff]   ;;  %v8300_v42 = vld [vmem:[%s10325_s1 + $0xe80] sm:$0xff]   ;;  %v8301_v43 = vld [vmem:[%s10325_s1 + $0xe48] sm:$0xff]  }
 0x19e   :  { %7565 = vmatprep.subr.bf16.mxu1 %v8254_v44  ;;  %v8302_v44 = vld [vmem:[%s10325_s1 + $0xec8] sm:$0xff]  }
 0x1a0   :  { %7544 = vmatpush3.bf16.msra.mxu0 %v8255_v45  ;;  %v8303_v45 = vld [vmem:[%s10325_s1 + $0xe08] sm:$0xff]  }
 0x1a1   :  { %7566 = vmatpush3.bf16.msra.mxu1 %v8256_v46  ;;  %7573 = vmatprep.subr.bf16.mxu0 %v8261_v52  ;;  %v8304_v46 = vld [vmem:[%s10325_s1 + $0xe88] sm:$0xff]   ;;  %v8310_v52 = vld [vmem:[%s10325_s1 + $0xed8] sm:$0xff]  }
 0x1a2   :  { %7595 = vmatprep.subr.bf16.mxu1 %v8262_v54  ;;  %v8312_v54 = vld [vmem:[%s10325_s1 + $0xe98] sm:$0xff]  }
 0x1a3   :  { %5901 = vmatmul.mubr.bf16.vlgmr.msra.gmra.mrb[48].mxu0 %v6401_v49  ;;  %v8307_v49 = vld [vmem:[%s10325_s1 + $0xe10] sm:$0xff]  }
 0x1a4   :  { %5941 = vmatmul.mubr.bf16.vlgmr.msra.gmra.mrb[48].mxu1 %v6403_v51  ;;  %7574 = vmatpush3.bf16.msra.mxu0 %v8263_v55  ;;  %v8309_v51 = vld [vmem:[%s10325_s1 + $0xe58] sm:$0xff]   ;;  %v8313_v55 = vld [vmem:[%s10325_s1 + $0xe60] sm:$0xff]  }
 0x1a5   :  { %7596 = vmatpush3.bf16.msra.mxu1 %v8264_v56  ;;  %7575 = vmatprep.subr.bf16.mxu0 %v8265_v57  ;;  %v8314_v56 = vld [vmem:[%s10325_s1 + $0xee0] sm:$0xff]  }
 0x1a6   :  { %7597 = vmatprep.subr.bf16.mxu1 %v8266_v58  ;;  %5980 = vmatprep.mubr.bf16.mxu0 %v6406_v35  ;;  %v8315_v58 = vld [vmem:[%s10325_s1 + $0xe20] sm:$0xff]   ;;  %v8343_v35 = vld [vmem:[%s10325_s1 + $0xf10] sm:$0xff]  }
 0x1a7   :  { %6020 = vmatprep.mubr.bf16.mxu1 %v6408_v38  ;;  %v8346_v38 = vld [vmem:[%s10325_s1 + $0xfd8] sm:$0xff]  }
 0x1a8   :  { %7576 = vmatpush3.bf16.msra.mxu0 %v8267_v59 }
 0x1a9   :  { %7598 = vmatpush3.bf16.msra.mxu1 %v8268_v60  ;;  %7577 = vmatprep.subr.bf16.mxu0 %v8269_v61  ;;  %v8316_v60 = vld [vmem:[%s10325_s1 + $0xea0] sm:$0xff]  }
 0x1aa   :  { %7599 = vmatprep.subr.bf16.mxu1 %v8270_v62 }
 0x1ac   :  { %7578 = vmatpush3.bf16.msra.mxu0 %v8271_v63  ;;  %v8317_v63 = vld [vmem:[%s10325_s1 + $0xe68] sm:$0xff]  }
 0x1ad   :  { %7600 = vmatpush3.bf16.msra.mxu1 %v8272_v0  ;;  %7579 = vmatprep.subr.bf16.mxu0 %v8273_v1 }
 0x1ae   :  { %7601 = vmatprep.subr.bf16.mxu1 %v8274_v2  ;;  %v8318_v2 = vld [vmem:[%s10325_s1 + $0xee8] sm:$0xff]  }
 0x1b0   :  { %7580 = vmatpush3.bf16.msra.mxu0 %v8275_v3 }
 0x1b1   :  { %7602 = vmatpush3.bf16.msra.mxu1 %v8276_v4  ;;  %7581 = vmatprep.subr.bf16.mxu0 %v8277_v5  ;;  %v8319_v5 = vld [vmem:[%s10325_s1 + $0xe28] sm:$0xff]  }
 0x1b2   :  { %7603 = vmatprep.subr.bf16.mxu1 %v8278_v6 }
 0x1b4   :  { %7582 = vmatpush3.bf16.msra.mxu0 %v8279_v8 }
 0x1b5   :  { %7604 = vmatpush3.bf16.msra.mxu1 %v8280_v10  ;;  %7583 = vmatprep.subr.bf16.mxu0 %v8281_v13  ;;  %v8321_v10 = vld [vmem:[%s10325_s1 + $0xe70] sm:$0xff]  }
 0x1b6   :  { %v7281_v7 = vpop.f32.mrb[24].mxu0  ;;  %7605 = vmatprep.subr.bf16.mxu1 %v8282_v16  ;;  %v8323_v13 = vld [vmem:[%s10325_s1 + $0xe30] sm:$0xff]   ;;  %v8326_v16 = vld [vmem:[%s10325_s1 + $0xef8] sm:$0xff]  }
 0x1b7   :  { %v7303_v9 = vpop.f32.mrb[24].mxu1  ;;  %v7282_v11 = vpop.f32.mrb[25].mxu0 }
 0x1b8   :  { %v7304_v12 = vpop.f32.mrb[25].mxu1  ;;  %v7283_v14 = vadd.f32 %v7282_v11, %v7281_v7  ;;  %v7284_v17 = vpop.f32.mrb[26].mxu0  ;;  %7584 = vmatpush3.bf16.msra.mxu0 %v8283_v19  ;;  %v8320_v7 = vld [vmem:[%s10325_s1 + $0xea8] sm:$0xff]   ;;  %v40_v19 = vld [vmem:[%s10326_s0 + $0xe0] sm:$0xff] }
 0x1b9   :  { %v7305_v15 = vadd.f32 %v7304_v12, %v7303_v9  ;;  %v7306_v18 = vpop.f32.mrb[26].mxu1  ;;  %v7285_v22 = vpop.f32.mrb[27].mxu0  ;;  %7606 = vmatpush3.bf16.msra.mxu1 %v8284_v21  ;;  %7585 = vmatprep.subr.bf16.mxu0 %v8285_v24  ;;  %v8322_v12 = vld [vmem:[%s10325_s1 + $0xef0] sm:$0xff]   ;;  %v8327_v17 = vld [vmem:[%s10325_s1 + $0xe38] sm:$0xff]   ;;  %v6409_v21 = vcombine.low %v40_v19, %v40_v19 }
 0x1ba   :  { %v5423_v20 = vadd.f32 %v7283_v14, %v9767_v37  ;;  %v7307_v23 = vpop.f32.mrb[27].mxu1  ;;  %7607 = vmatprep.subr.bf16.mxu1 %v8286_v26  ;;  %v6407_v37 = vcombine.low %v39_v36, %v39_v36  ;;  %v8324_v14 = vld [vmem:[%s10325_s1 + $0xeb0] sm:$0xff]   ;;  %v8328_v18 = vld [vmem:[%s10325_s1 + $0xeb8] sm:$0xff]   ;;  %v6410_v22 = vcombine.high %v40_v19, %v40_v19  ;;  %v8334_v26 = vld [vmem:[%s10325_s1 + $0xfc0] sm:$0xff]  }
 0x1bb   :  { %v8344_v36 = vld [vmem:[%s10325_s1 + $0xf90] sm:$0xff]  }
 0x1bc   :  { %v9875_v25 = vadd.f32 %v7305_v15, %v5423_v20  ;;  %7586 = vmatpush3.bf16.msra.mxu0 %v8287_v27  ;;  %v8325_v15 = vld [vmem:[%s10325_s1 + $0xe78] sm:$0xff]   ;;  %v41_v20 = vld [vmem:[%s10326_s0 + $0xe8] sm:$0xff]  ;;  %v8335_v27 = vld [vmem:[%s10325_s1 + $0xf00] sm:$0xff]  }
 0x1bd   :  { %7608 = vmatpush3.bf16.msra.mxu1 %v8288_v28  ;;  %7587 = vmatprep.subr.bf16.mxu0 %v8289_v29  ;;  %v6411_v23 = vcombine.low %v41_v20, %v41_v20  ;;  %v6412_v24 = vcombine.high %v41_v20, %v41_v20  ;;  %v8336_v28 = vld [vmem:[%s10325_s1 + $0xf80] sm:$0xff]   ;;  %v8337_v29 = vld [vmem:[%s10325_s1 + $0xf48] sm:$0xff]   ;;  %v8377_v19 = vld [vmem:[%s10325_s1 + $0x1050] sm:$0xff]  }
 0x1be   :  { %7609 = vmatprep.subr.bf16.mxu1 %v8290_v30  ;;  %v8338_v30 = vld [vmem:[%s10325_s1 + $0xfc8] sm:$0xff]   ;;  %v8378_v20 = vld [vmem:[%s10325_s1 + $0x10d0] sm:$0xff]  }
 0x1c0   :  { %7588 = vmatpush3.bf16.msra.mxu0 %v8291_v31  ;;  %v8339_v31 = vld [vmem:[%s10325_s1 + $0xf08] sm:$0xff]  }
 0x1c1   :  { %7610 = vmatpush3.bf16.msra.mxu1 %v8292_v32  ;;  %7617 = vmatprep.subr.bf16.mxu0 %v8297_v39  ;;  %v8340_v32 = vld [vmem:[%s10325_s1 + $0xf88] sm:$0xff]   ;;  %v8347_v39 = vld [vmem:[%s10325_s1 + $0xf18] sm:$0xff]  }
 0x1c2   :  { %7639 = vmatprep.subr.bf16.mxu1 %v8298_v40  ;;  %v8348_v40 = vld [vmem:[%s10325_s1 + $0xf98] sm:$0xff]  }
 0x1c3   :  { %5981 = vmatmul.mubr.bf16.vlgmr.msra.gmra.mrb[52].mxu0 %v6405_v34  ;;  %v8342_v34 = vld [vmem:[%s10325_s1 + $0xfd0] sm:$0xff]  }
 0x1c4   :  { %6021 = vmatmul.mubr.bf16.vlgmr.msra.gmra.mrb[52].mxu1 %v6407_v37  ;;  %7618 = vmatpush3.bf16.msra.mxu0 %v8299_v41  ;;  %v8345_v37 = vld [vmem:[%s10325_s1 + $0xf58] sm:$0xff]   ;;  %v8349_v41 = vld [vmem:[%s10325_s1 + $0xf60] sm:$0xff]  }
 0x1c5   :  { %7640 = vmatpush3.bf16.msra.mxu1 %v8300_v42  ;;  %7619 = vmatprep.subr.bf16.mxu0 %v8301_v43  ;;  %v8350_v42 = vld [vmem:[%s10325_s1 + $0xfe0] sm:$0xff]  }
 0x1c6   :  { %7641 = vmatprep.subr.bf16.mxu1 %v8302_v44  ;;  %6060 = vmatprep.mubr.bf16.mxu0 %v6410_v22  ;;  %v8351_v43 = vld [vmem:[%s10325_s1 + $0xf20] sm:$0xff]   ;;  %v8380_v22 = vld [vmem:[%s10325_s1 + $0x1090] sm:$0xff]  }
 0x1c7   :  { %6100 = vmatprep.mubr.bf16.mxu1 %v6412_v24  ;;  %v8382_v24 = vld [vmem:[%s10325_s1 + $0x10d8] sm:$0xff]  }
 0x1c8   :  { %7620 = vmatpush3.bf16.msra.mxu0 %v8303_v45  ;;  %v8352_v45 = vld [vmem:[%s10325_s1 + $0xfa0] sm:$0xff]  }
 0x1c9   :  { %7642 = vmatpush3.bf16.msra.mxu1 %v8304_v46  ;;  %7621 = vmatprep.subr.bf16.mxu0 %v8305_v47 }
 0x1ca   :  { %7643 = vmatprep.subr.bf16.mxu1 %v8306_v48 }
 0x1cc   :  { %7622 = vmatpush3.bf16.msra.mxu0 %v8307_v49 }
 0x1cd   :  { %7644 = vmatpush3.bf16.msra.mxu1 %v8308_v50  ;;  %7623 = vmatprep.subr.bf16.mxu0 %v8309_v51  ;;  %v8353_v51 = vld [vmem:[%s10325_s1 + $0xf68] sm:$0xff]  }
 0x1ce   :  { %7645 = vmatprep.subr.bf16.mxu1 %v8310_v52 }
 0x1d0   :  { %7624 = vmatpush3.bf16.msra.mxu0 %v8311_v53  ;;  %v8354_v53 = vld [vmem:[%s10325_s1 + $0xfe8] sm:$0xff]  }
 0x1d1   :  { %7646 = vmatpush3.bf16.msra.mxu1 %v8312_v54  ;;  %7625 = vmatprep.subr.bf16.mxu0 %v8313_v55 }
 0x1d2   :  { %7647 = vmatprep.subr.bf16.mxu1 %v8314_v56  ;;  %v8355_v56 = vld [vmem:[%s10325_s1 + $0xf28] sm:$0xff]  }
 0x1d4   :  { %7626 = vmatpush3.bf16.msra.mxu0 %v8315_v58  ;;  %v8356_v58 = vld [vmem:[%s10325_s1 + $0xfa8] sm:$0xff]  }
 0x1d5   :  { %7648 = vmatpush3.bf16.msra.mxu1 %v8316_v60  ;;  %7627 = vmatprep.subr.bf16.mxu0 %v8317_v63  ;;  %v8359_v63 = vld [vmem:[%s10325_s1 + $0xf30] sm:$0xff]  }
 0x1d6   :  { %v7325_v57 = vpop.f32.mrb[28].mxu0  ;;  %7649 = vmatprep.subr.bf16.mxu1 %v8318_v2  ;;  %v8362_v2 = vld [vmem:[%s10325_s1 + $0xff8] sm:$0xff]  }
 0x1d7   :  { %v7347_v59 = vpop.f32.mrb[28].mxu1  ;;  %v7326_v61 = vpop.f32.mrb[29].mxu0 }
 0x1d8   :  { %v7348_v62 = vpop.f32.mrb[29].mxu1  ;;  %v7327_v0 = vadd.f32 %v7326_v61, %v7325_v57  ;;  %v7328_v3 = vpop.f32.mrb[30].mxu0  ;;  %7628 = vmatpush3.bf16.msra.mxu0 %v8319_v5  ;;  %v8357_v61 = vld [vmem:[%s10325_s1 + $0xf70] sm:$0xff]  }
 0x1d9   :  { %v7349_v1 = vadd.f32 %v7348_v62, %v7347_v59  ;;  %v7350_v4 = vpop.f32.mrb[30].mxu1  ;;  %v7329_v8 = vpop.f32.mrb[31].mxu0  ;;  %7650 = vmatpush3.bf16.msra.mxu1 %v8320_v7  ;;  %7629 = vmatprep.subr.bf16.mxu0 %v8321_v10  ;;  %v8358_v62 = vld [vmem:[%s10325_s1 + $0xff0] sm:$0xff]   ;;  %v8363_v3 = vld [vmem:[%s10325_s1 + $0xf38] sm:$0xff]  }
 0x1da   :  { %v5503_v6 = vadd.f32 %v7327_v0, %v9875_v25  ;;  %v7351_v9 = vpop.f32.mrb[31].mxu1  ;;  %7651 = vmatprep.subr.bf16.mxu1 %v8322_v12  ;;  %v8333_v25 = vld [vmem:[%s10325_s1 + $0xf40] sm:$0xff]   ;;  %v8360_v0 = vld [vmem:[%s10325_s1 + $0xfb0] sm:$0xff]   ;;  %v8364_v4 = vld [vmem:[%s10325_s1 + $0xfb8] sm:$0xff]  }
 0x1db   :  { %v42_v5 = vld [vmem:[%s10326_s0 + $0xf0] sm:$0xff]  ;;  %v8370_v12 = vld [vmem:[%s10325_s1 + $0x10c0] sm:$0xff]  }
 0x1dc   :  { %v9980_v11 = vadd.f32 %v7349_v1, %v5503_v6  ;;  %7630 = vmatpush3.bf16.msra.mxu0 %v8323_v13  ;;  %v8361_v1 = vld [vmem:[%s10325_s1 + $0xf78] sm:$0xff]   ;;  %v6413_v7 = vcombine.low %v42_v5, %v42_v5  ;;  %v6414_v8 = vcombine.high %v42_v5, %v42_v5  ;;  %v8371_v13 = vld [vmem:[%s10325_s1 + $0x1000] sm:$0xff]   ;;  %v8413_v5 = vld [vmem:[%s10325_s1 + $0x1150] sm:$0xff]  }
 0x1dd   :  { %7652 = vmatpush3.bf16.msra.mxu1 %v8324_v14  ;;  %7631 = vmatprep.subr.bf16.mxu0 %v8325_v15  ;;  %v43_v6 = vld [vmem:[%s10326_s0 + $0xf8] sm:$0xff]  ;;  %v8372_v14 = vld [vmem:[%s10325_s1 + $0x1080] sm:$0xff]   ;;  %v8373_v15 = vld [vmem:[%s10325_s1 + $0x1048] sm:$0xff]  }
 0x1de   :  { %7653 = vmatprep.subr.bf16.mxu1 %v8326_v16  ;;  %v6415_v9 = vcombine.low %v43_v6, %v43_v6  ;;  %v6416_v10 = vcombine.high %v43_v6, %v43_v6  ;;  %v8374_v16 = vld [vmem:[%s10325_s1 + $0x10c8] sm:$0xff]   ;;  %v8414_v6 = vld [vmem:[%s10325_s1 + $0x11d0] sm:$0xff]  }
 0x1e0   :  { %7632 = vmatpush3.bf16.msra.mxu0 %v8327_v17  ;;  %v8375_v17 = vld [vmem:[%s10325_s1 + $0x1008] sm:$0xff]  }
 0x1e1   :  { %7654 = vmatpush3.bf16.msra.mxu1 %v8328_v18  ;;  %7661 = vmatprep.subr.bf16.mxu0 %v8333_v25  ;;  %v8376_v18 = vld [vmem:[%s10325_s1 + $0x1088] sm:$0xff]   ;;  %v8383_v25 = vld [vmem:[%s10325_s1 + $0x1018] sm:$0xff]  }
 0x1e2   :  { %7683 = vmatprep.subr.bf16.mxu1 %v8334_v26  ;;  %v8384_v26 = vld [vmem:[%s10325_s1 + $0x1098] sm:$0xff]  }
 0x1e3   :  { %6061 = vmatmul.mubr.bf16.vlgmr.msra.gmra.mrb[56].mxu0 %v6409_v21  ;;  %v8379_v21 = vld [vmem:[%s10325_s1 + $0x1010] sm:$0xff]  }
 0x1e4   :  { %6101 = vmatmul.mubr.bf16.vlgmr.msra.gmra.mrb[56].mxu1 %v6411_v23  ;;  %7662 = vmatpush3.bf16.msra.mxu0 %v8335_v27  ;;  %v8381_v23 = vld [vmem:[%s10325_s1 + $0x1058] sm:$0xff]   ;;  %v8385_v27 = vld [vmem:[%s10325_s1 + $0x1060] sm:$0xff]  }
 0x1e5   :  { %7684 = vmatpush3.bf16.msra.mxu1 %v8336_v28  ;;  %7663 = vmatprep.subr.bf16.mxu0 %v8337_v29  ;;  %v8386_v28 = vld [vmem:[%s10325_s1 + $0x10e0] sm:$0xff]  }
 0x1e6   :  { %7685 = vmatprep.subr.bf16.mxu1 %v8338_v30  ;;  %6140 = vmatprep.mubr.bf16.mxu0 %v6414_v8  ;;  %v8387_v29 = vld [vmem:[%s10325_s1 + $0x1020] sm:$0xff]   ;;  %v8416_v8 = vld [vmem:[%s10325_s1 + $0x1190] sm:$0xff]  }
 0x1e7   :  { %6180 = vmatprep.mubr.bf16.mxu1 %v6416_v10  ;;  %v8418_v10 = vld [vmem:[%s10325_s1 + $0x11d8] sm:$0xff]  }
 0x1e8   :  { %7664 = vmatpush3.bf16.msra.mxu0 %v8339_v31  ;;  %v8388_v31 = vld [vmem:[%s10325_s1 + $0x10a0] sm:$0xff]  }
 0x1e9   :  { %7686 = vmatpush3.bf16.msra.mxu1 %v8340_v32  ;;  %7665 = vmatprep.subr.bf16.mxu0 %v8341_v33 }
 0x1ea   :  { %7687 = vmatprep.subr.bf16.mxu1 %v8342_v34 }
 0x1ec   :  { %7666 = vmatpush3.bf16.msra.mxu0 %v8343_v35 }
 0x1ed   :  { %7688 = vmatpush3.bf16.msra.mxu1 %v8344_v36  ;;  %7667 = vmatprep.subr.bf16.mxu0 %v8345_v37  ;;  %v8389_v37 = vld [vmem:[%s10325_s1 + $0x1068] sm:$0xff]  }
 0x1ee   :  { %7689 = vmatprep.subr.bf16.mxu1 %v8346_v38 }
 0x1f0   :  { %7668 = vmatpush3.bf16.msra.mxu0 %v8347_v39  ;;  %v8390_v39 = vld [vmem:[%s10325_s1 + $0x10e8] sm:$0xff]  }
 0x1f1   :  { %7690 = vmatpush3.bf16.msra.mxu1 %v8348_v40  ;;  %7669 = vmatprep.subr.bf16.mxu0 %v8349_v41 }
 0x1f2   :  { %7691 = vmatprep.subr.bf16.mxu1 %v8350_v42  ;;  %v8391_v42 = vld [vmem:[%s10325_s1 + $0x1028] sm:$0xff]  }
 0x1f4   :  { %7670 = vmatpush3.bf16.msra.mxu0 %v8351_v43 }
 0x1f5   :  { %7692 = vmatpush3.bf16.msra.mxu1 %v8352_v45  ;;  %7671 = vmatprep.subr.bf16.mxu0 %v8353_v51  ;;  %v8397_v51 = vld [vmem:[%s10325_s1 + $0x1078] sm:$0xff]  }
 0x1f6   :  { %v7369_v44 = vpop.f32.mrb[32].mxu0  ;;  %7693 = vmatprep.subr.bf16.mxu1 %v8354_v53  ;;  %v8399_v53 = vld [vmem:[%s10325_s1 + $0x1038] sm:$0xff]  }
 0x1f7   :  { %v7391_v46 = vpop.f32.mrb[32].mxu1  ;;  %v7370_v47 = vpop.f32.mrb[33].mxu0 }
 0x1f8   :  { %v7392_v48 = vpop.f32.mrb[33].mxu1  ;;  %v7371_v49 = vadd.f32 %v7370_v47, %v7369_v44  ;;  %v7372_v52 = vpop.f32.mrb[34].mxu0  ;;  %7672 = vmatpush3.bf16.msra.mxu0 %v8355_v56  ;;  %v8392_v44 = vld [vmem:[%s10325_s1 + $0x10a8] sm:$0xff]   ;;  %v8393_v47 = vld [vmem:[%s10325_s1 + $0x1070] sm:$0xff]  }
 0x1f9   :  { %v7393_v50 = vadd.f32 %v7392_v48, %v7391_v46  ;;  %v7394_v54 = vpop.f32.mrb[34].mxu1  ;;  %v7373_v57 = vpop.f32.mrb[35].mxu0  ;;  %7694 = vmatpush3.bf16.msra.mxu1 %v8356_v58  ;;  %7673 = vmatprep.subr.bf16.mxu0 %v8357_v61  ;;  %v8394_v48 = vld [vmem:[%s10325_s1 + $0x10f0] sm:$0xff]   ;;  %v8398_v52 = vld [vmem:[%s10325_s1 + $0x10f8] sm:$0xff]   ;;  %v45_v56 = vld [vmem:[%s10326_s0 + $0x108] sm:$0xff] }
 0x1fa   :  { %v5583_v55 = vadd.f32 %v7371_v49, %v9980_v11  ;;  %v7395_v59 = vpop.f32.mrb[35].mxu1  ;;  %7695 = vmatprep.subr.bf16.mxu1 %v8358_v62  ;;  %v8369_v11 = vld [vmem:[%s10325_s1 + $0x1040] sm:$0xff]   ;;  %v8395_v49 = vld [vmem:[%s10325_s1 + $0x1030] sm:$0xff]   ;;  %v8400_v54 = vld [vmem:[%s10325_s1 + $0x10b8] sm:$0xff]  }
 0x1fb   :  { %v6419_v59 = vcombine.low %v45_v56, %v45_v56  ;;  %v8405_v61 = vld [vmem:[%s10325_s1 + $0x1140] sm:$0xff]  }
 0x1fc   :  { %v10082_v60 = vadd.f32 %v7393_v50, %v5583_v55  ;;  %7674 = vmatpush3.bf16.msra.mxu0 %v8359_v63  ;;  %v8396_v50 = vld [vmem:[%s10325_s1 + $0x10b0] sm:$0xff]   ;;  %v44_v55 = vld [vmem:[%s10326_s0 + $0x100] sm:$0xff] }
 0x1fd   :  { %7696 = vmatpush3.bf16.msra.mxu1 %v8360_v0  ;;  %7675 = vmatprep.subr.bf16.mxu0 %v8361_v1  ;;  %v6417_v57 = vcombine.low %v44_v55, %v44_v55  ;;  %v6418_v58 = vcombine.high %v44_v55, %v44_v55  ;;  %v8406_v62 = vld [vmem:[%s10325_s1 + $0x11c0] sm:$0xff]   ;;  %v8409_v1 = vld [vmem:[%s10325_s1 + $0x1148] sm:$0xff]  }
 0x1fe   :  { %7697 = vmatprep.subr.bf16.mxu1 %v8362_v2  ;;  %v8407_v63 = vld [vmem:[%s10325_s1 + $0x1100] sm:$0xff]   ;;  %v8410_v2 = vld [vmem:[%s10325_s1 + $0x11c8] sm:$0xff]  }
 0x1ff   :  { %v8408_v0 = vld [vmem:[%s10325_s1 + $0x1180] sm:$0xff]  }
 0x200   :  { %7676 = vmatpush3.bf16.msra.mxu0 %v8363_v3  ;;  %v8411_v3 = vld [vmem:[%s10325_s1 + $0x1108] sm:$0xff]  }
 0x201   :  { %7698 = vmatpush3.bf16.msra.mxu1 %v8364_v4  ;;  %7705 = vmatprep.subr.bf16.mxu0 %v8369_v11  ;;  %v8412_v4 = vld [vmem:[%s10325_s1 + $0x1188] sm:$0xff]   ;;  %v8419_v11 = vld [vmem:[%s10325_s1 + $0x1118] sm:$0xff]  }
 0x202   :  { %7727 = vmatprep.subr.bf16.mxu1 %v8370_v12  ;;  %v8420_v12 = vld [vmem:[%s10325_s1 + $0x1198] sm:$0xff]  }
 0x203   :  { %6141 = vmatmul.mubr.bf16.vlgmr.msra.gmra.mrb[60].mxu0 %v6413_v7  ;;  %v8415_v7 = vld [vmem:[%s10325_s1 + $0x1110] sm:$0xff]  }
 0x204   :  { %6181 = vmatmul.mubr.bf16.vlgmr.msra.gmra.mrb[60].mxu1 %v6415_v9  ;;  %7706 = vmatpush3.bf16.msra.mxu0 %v8371_v13  ;;  %v8417_v9 = vld [vmem:[%s10325_s1 + $0x1158] sm:$0xff]   ;;  %v8421_v13 = vld [vmem:[%s10325_s1 + $0x1160] sm:$0xff]  }
 0x205   :  { %7728 = vmatpush3.bf16.msra.mxu1 %v8372_v14  ;;  %7707 = vmatprep.subr.bf16.mxu0 %v8373_v15  ;;  %v8422_v14 = vld [vmem:[%s10325_s1 + $0x11e0] sm:$0xff]  }
 0x206   :  { %7729 = vmatprep.subr.bf16.mxu1 %v8374_v16  ;;  %6220 = vmatprep.mubr.bf16.mxu0 %v6418_v58  ;;  %v8423_v16 = vld [vmem:[%s10325_s1 + $0x1120] sm:$0xff]  }
 0x208   :  { %7708 = vmatpush3.bf16.msra.mxu0 %v8375_v17 }
 0x209   :  { %7730 = vmatpush3.bf16.msra.mxu1 %v8376_v18  ;;  %7709 = vmatprep.subr.bf16.mxu0 %v8377_v19  ;;  %v8424_v18 = vld [vmem:[%s10325_s1 + $0x11a0] sm:$0xff]  }
 0x20a   :  { %7731 = vmatprep.subr.bf16.mxu1 %v8378_v20 }
 0x20c   :  { %7710 = vmatpush3.bf16.msra.mxu0 %v8379_v21 }
 0x20d   :  { %7732 = vmatpush3.bf16.msra.mxu1 %v8380_v22  ;;  %7711 = vmatprep.subr.bf16.mxu0 %v8381_v23  ;;  %v8425_v22 = vld [vmem:[%s10325_s1 + $0x1168] sm:$0xff]  }
 0x20e   :  { %7733 = vmatprep.subr.bf16.mxu1 %v8382_v24  ;;  %v8426_v24 = vld [vmem:[%s10325_s1 + $0x11e8] sm:$0xff]  }
 0x210   :  { %7712 = vmatpush3.bf16.msra.mxu0 %v8383_v25 }
 0x211   :  { %7734 = vmatpush3.bf16.msra.mxu1 %v8384_v26  ;;  %7713 = vmatprep.subr.bf16.mxu0 %v8385_v27 }
 0x212   :  { %7735 = vmatprep.subr.bf16.mxu1 %v8386_v28  ;;  %v8427_v28 = vld [vmem:[%s10325_s1 + $0x1128] sm:$0xff]  }
 0x214   :  { %7714 = vmatpush3.bf16.msra.mxu0 %v8387_v29  ;;  %v8428_v29 = vld [vmem:[%s10325_s1 + $0x11a8] sm:$0xff]  }
 0x215   :  { %7736 = vmatpush3.bf16.msra.mxu1 %v8388_v31  ;;  %7715 = vmatprep.subr.bf16.mxu0 %v8389_v37  ;;  %v8433_v37 = vld [vmem:[%s10325_s1 + $0x1178] sm:$0xff]  }
 0x216   :  { %v7413_v30 = vpop.f32.mrb[36].mxu0  ;;  %7737 = vmatprep.subr.bf16.mxu1 %v8390_v39  ;;  %v8435_v39 = vld [vmem:[%s10325_s1 + $0x1138] sm:$0xff]  }
 0x217   :  { %v7435_v32 = vpop.f32.mrb[36].mxu1  ;;  %v7414_v33 = vpop.f32.mrb[37].mxu0 }
 0x218   :  { %v7436_v34 = vpop.f32.mrb[37].mxu1  ;;  %v7415_v35 = vadd.f32 %v7414_v33, %v7413_v30  ;;  %v7416_v38 = vpop.f32.mrb[38].mxu0  ;;  %7716 = vmatpush3.bf16.msra.mxu0 %v8391_v42  ;;  %v8429_v33 = vld [vmem:[%s10325_s1 + $0x1170] sm:$0xff]   ;;  %v47_v42 = vld [vmem:[%s10326_s0 + $0x118] sm:$0xff] }
 0x219   :  { %v7437_v36 = vadd.f32 %v7436_v34, %v7435_v32  ;;  %v7438_v40 = vpop.f32.mrb[38].mxu1  ;;  %v7417_v43 = vpop.f32.mrb[39].mxu0  ;;  %7738 = vmatpush3.bf16.msra.mxu1 %v8392_v44  ;;  %7717 = vmatprep.subr.bf16.mxu0 %v8393_v47  ;;  %v8430_v34 = vld [vmem:[%s10325_s1 + $0x11f0] sm:$0xff]   ;;  %v8434_v38 = vld [vmem:[%s10325_s1 + $0x11f8] sm:$0xff]  }
 0x21a   :  { %v5663_v41 = vadd.f32 %v7415_v35, %v10082_v60  ;;  %v7439_v45 = vpop.f32.mrb[39].mxu1  ;;  %7739 = vmatprep.subr.bf16.mxu1 %v8394_v48  ;;  %v6420_v60 = vcombine.high %v45_v56, %v45_v56  ;;  %v8431_v35 = vld [vmem:[%s10325_s1 + $0x1130] sm:$0xff]   ;;  %v8436_v40 = vld [vmem:[%s10325_s1 + $0x11b8] sm:$0xff]  }
 0x21b   :  { %v6423_v45 = vcombine.low %v47_v42, %v47_v42 }
 0x21c   :  { %v10187_v46 = vadd.f32 %v7437_v36, %v5663_v41  ;;  %7718 = vmatpush3.bf16.msra.mxu0 %v8395_v49  ;;  %6260 = vmatprep.mubr.bf16.mxu1 %v6420_v60  ;;  %v8432_v36 = vld [vmem:[%s10325_s1 + $0x11b0] sm:$0xff]  }
 0x21d   :  { %7740 = vmatpush3.bf16.msra.mxu1 %v8396_v50  ;;  %7719 = vmatprep.subr.bf16.mxu0 %v8397_v51  ;;  %v46_v41 = vld [vmem:[%s10326_s0 + $0x110] sm:$0xff] }
 0x21e   :  { %7741 = vmatprep.subr.bf16.mxu1 %v8398_v52  ;;  %v6421_v43 = vcombine.low %v46_v41, %v46_v41  ;;  %v6422_v44 = vcombine.high %v46_v41, %v46_v41 }
 0x220   :  { %7720 = vmatpush3.bf16.msra.mxu0 %v8399_v53 }
 0x221   :  { %7742 = vmatpush3.bf16.msra.mxu1 %v8400_v54  ;;  %7749 = vmatprep.subr.bf16.mxu0 %v8405_v61 }
 0x222   :  { %7771 = vmatprep.subr.bf16.mxu1 %v8406_v62 }
 0x223   :  { %6221 = vmatmul.mubr.bf16.vlgmr.msra.gmra.mrb[64].mxu0 %v6417_v57 }
 0x224   :  { %6261 = vmatmul.mubr.bf16.vlgmr.msra.gmra.mrb[64].mxu1 %v6419_v59  ;;  %7750 = vmatpush3.bf16.msra.mxu0 %v8407_v63 }
 0x225   :  { %7772 = vmatpush3.bf16.msra.mxu1 %v8408_v0  ;;  %7751 = vmatprep.subr.bf16.mxu0 %v8409_v1 }
 0x226   :  { %7773 = vmatprep.subr.bf16.mxu1 %v8410_v2  ;;  %6300 = vmatprep.mubr.bf16.mxu0 %v6422_v44 }
 0x228   :  { %7752 = vmatpush3.bf16.msra.mxu0 %v8411_v3 }
 0x229   :  { %7774 = vmatpush3.bf16.msra.mxu1 %v8412_v4  ;;  %7753 = vmatprep.subr.bf16.mxu0 %v8413_v5 }
 0x22a   :  { %7775 = vmatprep.subr.bf16.mxu1 %v8414_v6 }
 0x22c   :  { %7754 = vmatpush3.bf16.msra.mxu0 %v8415_v7 }
 0x22d   :  { %7776 = vmatpush3.bf16.msra.mxu1 %v8416_v8  ;;  %7755 = vmatprep.subr.bf16.mxu0 %v8417_v9 }
 0x22e   :  { %7777 = vmatprep.subr.bf16.mxu1 %v8418_v10 }
 0x230   :  { %7756 = vmatpush3.bf16.msra.mxu0 %v8419_v11 }
 0x231   :  { %7778 = vmatpush3.bf16.msra.mxu1 %v8420_v12  ;;  %7757 = vmatprep.subr.bf16.mxu0 %v8421_v13 }
 0x232   :  { %7779 = vmatprep.subr.bf16.mxu1 %v8422_v14 }
 0x234   :  { %7758 = vmatpush3.bf16.msra.mxu0 %v8423_v16 }
 0x235   :  { %7780 = vmatpush3.bf16.msra.mxu1 %v8424_v18  ;;  %7759 = vmatprep.subr.bf16.mxu0 %v8425_v22 }
 0x236   :  { %v7457_v15 = vpop.f32.mrb[40].mxu0  ;;  %7781 = vmatprep.subr.bf16.mxu1 %v8426_v24 }
 0x237   :  { %v7479_v17 = vpop.f32.mrb[40].mxu1  ;;  %v7458_v19 = vpop.f32.mrb[41].mxu0 }
 0x238   :  { %v7459_v20 = vadd.f32 %v7458_v19, %v7457_v15  ;;  %v7480_v21 = vpop.f32.mrb[41].mxu1  ;;  %v7460_v25 = vpop.f32.mrb[42].mxu0  ;;  %7760 = vmatpush3.bf16.msra.mxu0 %v8427_v28 }
 0x239   :  { %v7481_v23 = vadd.f32 %v7480_v21, %v7479_v17  ;;  %v7482_v27 = vpop.f32.mrb[42].mxu1  ;;  %v7461_v30 = vpop.f32.mrb[43].mxu0  ;;  %7782 = vmatpush3.bf16.msra.mxu1 %v8428_v29  ;;  %7761 = vmatprep.subr.bf16.mxu0 %v8429_v33 }
 0x23a   :  { %v5743_v26 = vadd.f32 %v7459_v20, %v10187_v46  ;;  %v7483_v32 = vpop.f32.mrb[43].mxu1  ;;  %7783 = vmatprep.subr.bf16.mxu1 %v8430_v34  ;;  %v6424_v46 = vcombine.high %v47_v42, %v47_v42 }
 0x23c   :  { %v5783_v31 = vadd.f32 %v7481_v23, %v5743_v26  ;;  %7762 = vmatpush3.bf16.msra.mxu0 %v8431_v35  ;;  %6340 = vmatprep.mubr.bf16.mxu1 %v6424_v46 }
 0x23d   :  { %7784 = vmatpush3.bf16.msra.mxu1 %v8432_v36  ;;  %7763 = vmatprep.subr.bf16.mxu0 %v8433_v37 }
 0x23e   :  { %7785 = vmatprep.subr.bf16.mxu1 %v8434_v38 }
 0x240   :  { %7764 = vmatpush3.bf16.msra.mxu0 %v8435_v39 }
 0x241   :  { %7786 = vmatpush3.bf16.msra.mxu1 %v8436_v40 }
 0x243   :  { %6301 = vmatmul.mubr.bf16.vlgmr.msra.gmra.mrb[68].mxu0 %v6421_v43 }
 0x244   :  { %6341 = vmatmul.mubr.bf16.vlgmr.msra.gmra.mrb[68].mxu1 %v6423_v45 }
 0x256   :  { %v7501_v47 = vpop.f32.mrb[44].mxu0 }
 0x257   :  { %v7523_v48 = vpop.f32.mrb[44].mxu1  ;;  %v7502_v49 = vpop.f32.mrb[45].mxu0 }
 0x258   :  { %v7503_v50 = vadd.f32 %v7502_v49, %v7501_v47  ;;  %v7524_v51 = vpop.f32.mrb[45].mxu1  ;;  %v7504_v52 = vpop.f32.mrb[46].mxu0 }
 0x259   :  { %v7525_v53 = vadd.f32 %v7524_v51, %v7523_v48  ;;  %v7526_v54 = vpop.f32.mrb[46].mxu1  ;;  %v7505_v55 = vpop.f32.mrb[47].mxu0 }
 0x25a   :  { %v5823_v56 = vadd.f32 %v7503_v50, %v5783_v31  ;;  %v7527_v57 = vpop.f32.mrb[47].mxu1 }
 0x25c   :  { %v5863_v58 = vadd.f32 %v7525_v53, %v5823_v56 }
 0x276   :  { %v7545_v59 = vpop.f32.mrb[48].mxu0 }
 0x277   :  { %v7567_v60 = vpop.f32.mrb[48].mxu1  ;;  %v7546_v61 = vpop.f32.mrb[49].mxu0 }
 0x278   :  { %v7547_v62 = vadd.f32 %v7546_v61, %v7545_v59  ;;  %v7568_v63 = vpop.f32.mrb[49].mxu1  ;;  %v7548_v0 = vpop.f32.mrb[50].mxu0 }
 0x279   :  { %v7569_v1 = vadd.f32 %v7568_v63, %v7567_v60  ;;  %v7570_v2 = vpop.f32.mrb[50].mxu1  ;;  %v7549_v3 = vpop.f32.mrb[51].mxu0 }
 0x27a   :  { %v5903_v4 = vadd.f32 %v7547_v62, %v5863_v58  ;;  %v7571_v5 = vpop.f32.mrb[51].mxu1 }
 0x27c   :  { %v5943_v6 = vadd.f32 %v7569_v1, %v5903_v4 }
 0x296   :  { %v7589_v7 = vpop.f32.mrb[52].mxu0 }
 0x297   :  { %v7611_v8 = vpop.f32.mrb[52].mxu1  ;;  %v7590_v9 = vpop.f32.mrb[53].mxu0 }
 0x298   :  { %v7612_v10 = vpop.f32.mrb[53].mxu1  ;;  %v7591_v11 = vadd.f32 %v7590_v9, %v7589_v7  ;;  %v7592_v13 = vpop.f32.mrb[54].mxu0 }
 0x299   :  { %v7613_v12 = vadd.f32 %v7612_v10, %v7611_v8  ;;  %v7614_v14 = vpop.f32.mrb[54].mxu1  ;;  %v7593_v15 = vpop.f32.mrb[55].mxu0 }
 0x29a   :  { %v7615_v16 = vpop.f32.mrb[55].mxu1  ;;  %v5983_v17 = vadd.f32 %v7591_v11, %v5943_v6 }
 0x29c   :  { %v6023_v18 = vadd.f32 %v7613_v12, %v5983_v17 }
 0x2b6   :  { %v7633_v19 = vpop.f32.mrb[56].mxu0 }
 0x2b7   :  { %v7655_v20 = vpop.f32.mrb[56].mxu1  ;;  %v7634_v21 = vpop.f32.mrb[57].mxu0 }
 0x2b8   :  { %v7635_v22 = vadd.f32 %v7634_v21, %v7633_v19  ;;  %v7656_v23 = vpop.f32.mrb[57].mxu1  ;;  %v7636_v24 = vpop.f32.mrb[58].mxu0 }
 0x2b9   :  { %v7657_v25 = vadd.f32 %v7656_v23, %v7655_v20  ;;  %v7658_v26 = vpop.f32.mrb[58].mxu1  ;;  %v7637_v27 = vpop.f32.mrb[59].mxu0 }
 0x2ba   :  { %v6063_v28 = vadd.f32 %v7635_v22, %v6023_v18  ;;  %v7659_v29 = vpop.f32.mrb[59].mxu1 }
 0x2bc   :  { %v6103_v30 = vadd.f32 %v7657_v25, %v6063_v28 }
 0x2d6   :  { %v7677_v31 = vpop.f32.mrb[60].mxu0 }
 0x2d7   :  { %v7699_v32 = vpop.f32.mrb[60].mxu1  ;;  %v7678_v33 = vpop.f32.mrb[61].mxu0 }
 0x2d8   :  { %v7679_v34 = vadd.f32 %v7678_v33, %v7677_v31  ;;  %v7700_v35 = vpop.f32.mrb[61].mxu1  ;;  %v7680_v36 = vpop.f32.mrb[62].mxu0 }
 0x2d9   :  { %v7701_v37 = vadd.f32 %v7700_v35, %v7699_v32  ;;  %v7702_v38 = vpop.f32.mrb[62].mxu1  ;;  %v7681_v39 = vpop.f32.mrb[63].mxu0 }
 0x2da   :  { %v6143_v40 = vadd.f32 %v7679_v34, %v6103_v30  ;;  %v7703_v41 = vpop.f32.mrb[63].mxu1 }
 0x2dc   :  { %v6183_v42 = vadd.f32 %v7701_v37, %v6143_v40 }
 0x2f6   :  { %v7721_v43 = vpop.f32.mrb[64].mxu0 }
 0x2f7   :  { %v7743_v44 = vpop.f32.mrb[64].mxu1  ;;  %v7722_v45 = vpop.f32.mrb[65].mxu0 }
 0x2f8   :  { %v7723_v46 = vadd.f32 %v7722_v45, %v7721_v43  ;;  %v7744_v47 = vpop.f32.mrb[65].mxu1  ;;  %v7724_v48 = vpop.f32.mrb[66].mxu0 }
 0x2f9   :  { %v7745_v49 = vadd.f32 %v7744_v47, %v7743_v44  ;;  %v7746_v50 = vpop.f32.mrb[66].mxu1  ;;  %v7725_v51 = vpop.f32.mrb[67].mxu0 }
 0x2fa   :  { %v6223_v52 = vadd.f32 %v7723_v46, %v6183_v42  ;;  %v7747_v53 = vpop.f32.mrb[67].mxu1 }
 0x2fc   :  { %v6263_v54 = vadd.f32 %v7745_v49, %v6223_v52 }
 0x316   :  { %v7765_v55 = vpop.f32.mrb[68].mxu0 }
 0x317   :  { %v7787_v56 = vpop.f32.mrb[68].mxu1  ;;  %v7766_v57 = vpop.f32.mrb[69].mxu0 }
 0x318   :  { %v7767_v58 = vadd.f32 %v7766_v57, %v7765_v55  ;;  %v7788_v59 = vpop.f32.mrb[69].mxu1  ;;  %v7768_v60 = vpop.f32.mrb[70].mxu0 }
 0x319   :  { %v7789_v61 = vadd.f32 %v7788_v59, %v7787_v56  ;;  %v7790_v62 = vpop.f32.mrb[70].mxu1  ;;  %v7769_v63 = vpop.f32.mrb[71].mxu0 }
 0x31a   :  { %v6303_v0 = vadd.f32 %v7767_v58, %v6263_v54  ;;  %v7791_v1 = vpop.f32.mrb[71].mxu1 }
 0x31c   :  { %v6343_v2 = vadd.f32 %v7789_v61, %v6303_v0 }
 0x31e   :  { %6348 = vst [vmem:[%s10327_s2] sm:$0xff] %v6343_v2 }

</bundles_post_ra>
